<compile_context>
chip_gen: v5e
topology: v5e:2x2
jax: 0.10.0
libtpu: 0.0.40
codegen_flags: <defaults>
</compile_context>

<pallas_src>
import functools

import jax
import jax.numpy as jnp
from jax.experimental import pallas as pl
from jax.experimental.pallas import tpu as pltpu


# ------------------------------------------------------------------
# VMEM limit: ~7/8 of physical VMEM (112 MiB v5e/v6e, 56 MiB v7x)
# ------------------------------------------------------------------

def _vmem_limit_bytes():
    try:
        info = pltpu.get_tpu_info()
        cap = int(getattr(info, "vmem_capacity_bytes", 128 * 1024 * 1024))
    except Exception:
        cap = 128 * 1024 * 1024
    return (cap * 7) // 8


_VMEM_LIMIT = _vmem_limit_bytes()


# ------------------------------------------------------------------
# in-kernel helpers (f32 math)
# ------------------------------------------------------------------

def _ln_f32(x, g, b, eps=1e-5):
    mu = jnp.mean(x, axis=-1, keepdims=True)
    var = jnp.mean(jnp.square(x - mu), axis=-1, keepdims=True)
    return (x - mu) * jax.lax.rsqrt(var + eps) * g + b


# ------------------------------------------------------------------
# Kernel 1: patch-embed matmul + cls row + pos_emb add + ln_pre   (one grid step / image)
# ------------------------------------------------------------------

def _embed_kernel(p_ref, w_ref, add_ref, g_ref, b_ref, o_ref):
    # p_ref: [1, N, CPP] real patches only; add_ref: [S_pad, D] f32 where
    # row 0 = class_embedding + pos_emb[0], rows 1..N = pos_emb[1..N], padded rows = 0.
    xp = jnp.dot(p_ref[0].astype(w_ref.dtype), w_ref[...],
                 preferred_element_type=jnp.float32)                      # [N, D] f32
    s_pad, d = add_ref.shape
    n = xp.shape[0]
    pieces = [jnp.zeros((1, d), jnp.float32), xp]                         # cls slot = 0 patch
    tail = s_pad - 1 - n
    if tail > 0:
        pieces.append(jnp.zeros((tail, d), jnp.float32))                  # padded tokens
    x = jnp.concatenate(pieces, axis=0) + add_ref[...]                    # [S_pad, D]
    o_ref[0] = _ln_f32(x, g_ref[...], b_ref[...]).astype(o_ref.dtype)


def embed(patches, w_conv_flat, add_emb, g, b):
    B, N, CPP = patches.shape
    S_pad, D = add_emb.shape
    return pl.pallas_call(
        _embed_kernel,
        out_shape=jax.ShapeDtypeStruct((B, S_pad, D), jnp.float32),
        grid=(B,),
        in_specs=[
            pl.BlockSpec((1, N, CPP), lambda i: (i, 0, 0)),
            pl.BlockSpec((CPP, D), lambda i: (0, 0)),
            pl.BlockSpec((S_pad, D), lambda i: (0, 0)),
            pl.BlockSpec((1, D), lambda i: (0, 0)),
            pl.BlockSpec((1, D), lambda i: (0, 0)),
        ],
        out_specs=pl.BlockSpec((1, S_pad, D), lambda i: (i, 0, 0)),
        compiler_params=pltpu.CompilerParams(
            dimension_semantics=("parallel",),
            vmem_limit_bytes=_VMEM_LIMIT),
    )(patches, w_conv_flat, add_emb, g, b)


# ------------------------------------------------------------------
# Kernel 2: ALL transformer (residual attention) blocks in one call
#   grid = (B, L);  residual x stays resident in VMEM across the L axis
# ------------------------------------------------------------------

def _stack_kernel(x_ref, g1_ref, b1_ref, wqkv_ref, bqkv_ref, wout_ref, bout_ref,
                  g2_ref, b2_ref, wfc_ref, bfc_ref, wproj_ref, bproj_ref, o_ref,
                  *, heads, valid_s):
    # At layer 0, seed the VMEM-resident residual stream from the embed output.
    @pl.when(pl.program_id(1) == 0)
    def _():
        o_ref[...] = x_ref[...]

    x = o_ref[0].astype(jnp.float32)                                      # [S_pad, D]
    s_pad, D = x.shape
    dh = D // heads
    mxu = wqkv_ref.dtype                                                  # bf16

    # --- attention branch: x = x + out_proj(MHA(ln1(x))) ---
    y = _ln_f32(x, g1_ref[0], b1_ref[0])
    # 1/sqrt(dh) scale is pre-folded into the Q columns of wqkv/bqkv at init time.
    qkv = jnp.dot(y.astype(mxu), wqkv_ref[0],
                  preferred_element_type=jnp.float32) + bqkv_ref[0]       # [S_pad, 3D] f32

    # key-padding mask (static: only emitted when S_pad > valid token count)
    if s_pad > valid_s:
        key_ids = jax.lax.broadcasted_iota(jnp.int32, (s_pad, s_pad), 1)
        kmask = jnp.where(key_ids < valid_s, 0.0, -1e30).astype(jnp.float32)
    else:
        kmask = None

    head_outs = []
    for h in range(heads):                                                # static unroll
        q_h = qkv[:, h * dh:(h + 1) * dh].astype(mxu)
        k_h = qkv[:, D + h * dh:D + (h + 1) * dh].astype(mxu)
        v_h = qkv[:, 2 * D + h * dh:2 * D + (h + 1) * dh].astype(mxu)
        s = jax.lax.dot_general(q_h, k_h, (((1,), (1,)), ((), ())),
                                preferred_element_type=jnp.float32)       # [S_pad, S_pad]
        if kmask is not None:
            s = s + kmask
        s = s - jnp.max(s, axis=-1, keepdims=True)                        # f32 softmax
        p = jnp.exp(s)
        p = p * pl.reciprocal(jnp.sum(p, axis=-1, keepdims=True), approx=True)
        head_outs.append(jnp.dot(p.astype(mxu), v_h,
                                 preferred_element_type=jnp.float32))     # [S_pad, dh]
    # merge heads along lanes, then ONE full-contraction (K=D) out_proj matmul
    att_in = jnp.concatenate(head_outs, axis=-1).astype(mxu)              # [S_pad, D]
    att = jnp.dot(att_in, wout_ref[0], preferred_element_type=jnp.float32)
    x = x + att + bout_ref[0]

    # --- MLP branch: x = x + proj(QuickGELU(fc(ln2(x)))) ---
    y = _ln_f32(x, g2_ref[0], b2_ref[0])
    hdn = jnp.dot(y.astype(mxu), wfc_ref[0],
                  preferred_element_type=jnp.float32) + bfc_ref[0]        # [S_pad, 4D]
    hdn = hdn * jax.nn.sigmoid(1.702 * hdn)      # QuickGELU f32 (v5e-safe; bf16 ok on v6e+)
    out = jnp.dot(hdn.astype(mxu), wproj_ref[0],
                  preferred_element_type=jnp.float32) + bproj_ref[0]
    o_ref[0] = (x + out).astype(o_ref.dtype)


def transformer_stack(x, params, *, heads, valid_s):
    B, S_pad, D = x.shape
    L = params["wqkv"].shape[0]
    d_ff = params["wfc"].shape[2]
    assert D % heads == 0

    def lspec(a, b):   # per-layer stacked param [L, a, b], indexed by the layer grid axis
        return pl.BlockSpec((1, a, b), lambda i, l: (l, 0, 0))

    # advisory cost hint for XLA scheduling around the custom call
    flops = int(B * L * (2 * S_pad * D * (3 * D + D + 2 * d_ff) + 4 * S_pad * S_pad * D))
    transc = int(B * L * (S_pad * S_pad + S_pad * d_ff))
    wbytes = L * 2 * (3 * D * D + D * D + 2 * D * d_ff) \
        + L * 4 * (3 * D + D + d_ff + D + 4 * D)
    bytes_acc = int(wbytes + 2 * B * S_pad * D * 4)

    return pl.pallas_call(
        functools.partial(_stack_kernel, heads=heads, valid_s=valid_s),
        out_shape=jax.ShapeDtypeStruct((B, S_pad, D), x.dtype),
        grid=(B, L),
        in_specs=[
            pl.BlockSpec((1, S_pad, D), lambda i, l: (i, 0, 0)),   # x (constant over L)
            lspec(1, D), lspec(1, D),                              # ln1 g/b
            lspec(D, 3 * D), lspec(1, 3 * D),                      # in_proj w/b
            lspec(D, D), lspec(1, D),                              # out_proj w/b
            lspec(1, D), lspec(1, D),                              # ln2 g/b
            lspec(D, d_ff), lspec(1, d_ff),                        # fc w/b
            lspec(d_ff, D), lspec(1, D),                           # proj w/b
        ],
        # output block constant over the L axis -> residual stream resident in VMEM,
        # only written back to HBM when the batch index changes.
        out_specs=pl.BlockSpec((1, S_pad, D), lambda i, l: (i, 0, 0)),
        compiler_params=pltpu.CompilerParams(
            dimension_semantics=("parallel", "arbitrary"),
            vmem_limit_bytes=_VMEM_LIMIT),
        cost_estimate=pl.CostEstimate(flops=flops, transcendentals=transc,
                                      bytes_accessed=bytes_acc),
    )(x, params["ln1_g"], params["ln1_b"], params["wqkv"], params["bqkv"],
      params["wout"], params["bout"], params["ln2_g"], params["ln2_b"],
      params["wfc"], params["bfc"], params["wproj"], params["bproj"])


# ------------------------------------------------------------------
# Kernel 3: ln_post (cls rows only) + final projection, fused
# ------------------------------------------------------------------

def _head_kernel(x_ref, g_ref, b_ref, w_ref, o_ref):
    y = _ln_f32(x_ref[...].astype(jnp.float32), g_ref[...], b_ref[...])
    o_ref[...] = jnp.dot(y.astype(w_ref.dtype), w_ref[...],
                         preferred_element_type=jnp.float32).astype(o_ref.dtype)


def head(cls_x, g, b, w_proj):
    B, _ = cls_x.shape
    out_dim = w_proj.shape[1]
    return pl.pallas_call(
        _head_kernel,
        out_shape=jax.ShapeDtypeStruct((B, out_dim), jnp.float32),
    )(cls_x, g, b, w_proj)


# ------------------------------------------------------------------
# Deterministic parameter init (shapes follow CLIP VisionTransformer)
#   * per-layer weights are stacked into [L, ...] arrays for the layer grid axis
#   * matmul weights stored bf16 and transposed to [in, out]
#   * conv1 weight pre-flattened: [C*P*P, width]  (== Conv2d weight .reshape(D,-1).T)
#   * 1/sqrt(dh) attention scale folded into the Q part of in_proj (weight + bias)
# ------------------------------------------------------------------

def init_params(key, *, in_ch, image_size, patch_size, width, layers, heads, out_dim):
    ks = jax.random.split(key, 4 + layers)
    scale = width ** -0.5
    grid = image_size // patch_size
    n_tok = grid * grid + 1
    cpp = in_ch * patch_size * patch_size
    attn_scale = (width // heads) ** -0.5
    conv_w = jax.random.normal(ks[0], (width, in_ch, patch_size, patch_size),
                               jnp.float32) * cpp ** -0.5

    ln1_g, ln1_b, ln2_g, ln2_b = [], [], [], []
    wqkv, bqkv, wout, bout, wfc, bfc, wproj, bproj = [], [], [], [], [], [], [], []
    for l in range(layers):
        kb = jax.random.split(ks[4 + l], 4)
        w_in = scale * jax.random.normal(kb[0], (width, 3 * width), jnp.float32)
        b_in = jnp.zeros((1, 3 * width), jnp.float32)
        w_in = w_in.at[:, :width].multiply(attn_scale)      # fold attention scale into Q
        b_in = b_in.at[:, :width].multiply(attn_scale)
        ln1_g.append(jnp.ones((1, width), jnp.float32))
        ln1_b.append(jnp.zeros((1, width), jnp.float32))
        ln2_g.append(jnp.ones((1, width), jnp.float32))
        ln2_b.append(jnp.zeros((1, width), jnp.float32))
        wqkv.append(w_in.astype(jnp.bfloat16))
        bqkv.append(b_in)
        wout.append((scale * jax.random.normal(kb[1], (width, width), jnp.float32)
                     ).astype(jnp.bfloat16))
        bout.append(jnp.zeros((1, width), jnp.float32))
        wfc.append((scale * jax.random.normal(kb[2], (width, 4 * width), jnp.float32)
                    ).astype(jnp.bfloat16))
        bfc.append(jnp.zeros((1, 4 * width), jnp.float32))
        wproj.append(((4 * width) ** -0.5 *
                      jax.random.normal(kb[3], (4 * width, width), jnp.float32)
                      ).astype(jnp.bfloat16))
        bproj.append(jnp.zeros((1, width), jnp.float32))

    stack = lambda xs: jnp.stack(xs, axis=0)
    return {
        "conv_w_flat": conv_w.reshape(width, cpp).T.astype(jnp.bfloat16),
        "class_embedding": scale * jax.random.normal(ks[1], (width,), jnp.float32),
        "pos_emb": scale * jax.random.normal(ks[2], (n_tok, width), jnp.float32),
        "ln_pre_g": jnp.ones((1, width), jnp.float32),
        "ln_pre_b": jnp.zeros((1, width), jnp.float32),
        "ln_post_g": jnp.ones((1, width), jnp.float32),
        "ln_post_b": jnp.zeros((1, width), jnp.float32),
        "proj": (scale * jax.random.normal(ks[3], (width, out_dim), jnp.float32)
                 ).astype(jnp.bfloat16),
        "ln1_g": stack(ln1_g), "ln1_b": stack(ln1_b),
        "wqkv": stack(wqkv), "bqkv": stack(bqkv),
        "wout": stack(wout), "bout": stack(bout),
        "ln2_g": stack(ln2_g), "ln2_b": stack(ln2_b),
        "wfc": stack(wfc), "bfc": stack(bfc),
        "wproj": stack(wproj), "bproj": stack(bproj),
    }


# ------------------------------------------------------------------
# ImageCLIP.forward == model.encode_image(image, prompt_token)
# ------------------------------------------------------------------

@functools.partial(jax.jit, static_argnames=("patch_size", "heads", "seq_align"))
def image_clip_forward(params, image, prompt_token=None, *, patch_size, heads,
                       seq_align=128):
    B, C, H, W = image.shape
    P = patch_size
    Gh, Gw = H // P, W // P
    CPP = C * P * P
    n_patches = Gh * Gw
    S = n_patches + 1                                   # cls + patches (valid tokens)
    S_pad = ((S + seq_align - 1) // seq_align) * seq_align
    D = params["pos_emb"].shape[1]

    # patch extraction matching nn.Conv2d(C, D, kernel=stride=P) weight flattening (c,ph,pw)
    # TODO(synk): fold this transpose into the embed kernel's index_map to avoid one HBM pass.
    patches = (image.reshape(B, C, Gh, P, Gw, P)
               .transpose(0, 2, 4, 1, 3, 5)
               .reshape(B, n_patches, CPP))

    # additive term: row 0 carries class_embedding + pos_emb[0]; padded rows are zero.
    add_emb = jnp.zeros((S_pad, D), jnp.float32)
    add_emb = add_emb.at[:S].set(params["pos_emb"])
    add_emb = add_emb.at[0].add(params["class_embedding"])

    if prompt_token is not None:
        # TODO(synk): ZSRobust prompt-token injection path not implemented (script uses None)
        pass

    # conv1 + cls row + pos_emb + ln_pre, fused (one grid step per image)
    x = embed(patches, params["conv_w_flat"], add_emb,
              params["ln_pre_g"], params["ln_pre_b"])                     # [B, S_pad, D] f32

    # all residual attention blocks in ONE pallas_call, grid=(B, L)
    x = transformer_stack(x, params, heads=heads, valid_s=S)

    # ln_post on class token + final projection, fused
    cls_x = x[:, 0, :]                                                    # [B, D]
    return head(cls_x, params["ln_post_g"], params["ln_post_b"], params["proj"])


# ------------------------------------------------------------------
# Driver
# ------------------------------------------------------------------

if __name__ == "__main__":
    key = jax.random.PRNGKey(0)
    k_param, k_img = jax.random.split(key)

    # Small ViT config: 32x32 image, 3 channels, patch 8 -> 16 patches + cls = 17 tokens
    # (padded to 128), width 32, 4 heads, 2 layers, output dim 16.
    PATCH, WIDTH, LAYERS, HEADS, OUT_DIM = 8, 32, 2, 4, 16
    params = init_params(
        k_param, in_ch=3, image_size=32, patch_size=PATCH,
        width=WIDTH, layers=LAYERS, heads=HEADS, out_dim=OUT_DIM,
    )

    image = jax.random.normal(k_img, (2, 3, 32, 32), jnp.float32)  # NCHW, like PyTorch

    out = image_clip_forward(params, image, patch_size=PATCH, heads=HEADS)
    out = jax.block_until_ready(out)
    assert out.shape == (2, OUT_DIM), out.shape
    assert bool(jnp.all(jnp.isfinite(out))), "non-finite output"
    print("KERNEL_OK")
</pallas_src>

<mosaic_0001>
module attributes {stable_mosaic.version = 11 : i64} {
  func.func @_embed_kernel(%arg0: i32, %arg1: memref<1x16x192xf32, #tpu.memory_space<vmem>>, %arg2: memref<192x32xbf16, #tpu.memory_space<vmem>>, %arg3: memref<128x32xf32, #tpu.memory_space<vmem>>, %arg4: memref<1x32xf32, #tpu.memory_space<vmem>>, %arg5: memref<1x32xf32, #tpu.memory_space<vmem>>, %arg6: memref<1x128x32xf32, #tpu.memory_space<vmem>>) attributes {dimension_semantics = [#tpu.dimension_semantics<parallel>], iteration_bounds = array<i64: 2>, scalar_prefetch = 0 : i64, scratch_operands = 0 : i64, tpu.core_type = #tpu.core_type<tc>, window_params = [{transform_indices = @transform_0, window_bounds = array<i64: 1, 16, 192>}, {pipeline_mode = #tpu.pipeline_mode<synchronous>, transform_indices = @transform_1, window_bounds = array<i64: 192, 32>}, {pipeline_mode = #tpu.pipeline_mode<synchronous>, transform_indices = @transform_2, window_bounds = array<i64: 128, 32>}, {pipeline_mode = #tpu.pipeline_mode<synchronous>, transform_indices = @transform_3, window_bounds = array<i64: 1, 32>}, {pipeline_mode = #tpu.pipeline_mode<synchronous>, transform_indices = @transform_4, window_bounds = array<i64: 1, 32>}, {transform_indices = @transform_5, window_bounds = array<i64: 1, 128, 32>}]} {
    %c0 = arith.constant 0 : index
    %c0_0 = arith.constant 0 : index
    %c0_1 = arith.constant 0 : index
    %0 = vector.load %arg1[%c0, %c0_0, %c0_1] : memref<1x16x192xf32, #tpu.memory_space<vmem>>, vector<1x16x192xf32>
    %1 = vector.shape_cast %0 : vector<1x16x192xf32> to vector<16x192xf32>
    %2 = arith.truncf %1 : vector<16x192xf32> to vector<16x192xbf16>
    %c0_2 = arith.constant 0 : index
    %c0_3 = arith.constant 0 : index
    %3 = vector.load %arg2[%c0_2, %c0_3] : memref<192x32xbf16, #tpu.memory_space<vmem>>, vector<192x32xbf16>
    %cst = arith.constant dense<0.000000e+00> : vector<16x32xf32>
    %4 = tpu.matmul %2, %3, %cst {dimension_numbers = #tpu.dot_dimension_numbers<[1], [0], [0], [1], [0, 0, 1, 1], [], []>} : vector<16x192xbf16>, vector<192x32xbf16>, vector<16x32xf32> -> vector<16x32xf32>
    %cst_4 = arith.constant 0.000000e+00 : f32
    %5 = vector.broadcast %cst_4 : f32 to vector<1x32xf32>
    %cst_5 = arith.constant 0.000000e+00 : f32
    %6 = vector.broadcast %cst_5 : f32 to vector<111x32xf32>
    %7 = tpu.concatenate %5, %4, %6 in 0 : vector<1x32xf32>, vector<16x32xf32>, vector<111x32xf32> -> vector<128x32xf32>
    %c0_6 = arith.constant 0 : index
    %c0_7 = arith.constant 0 : index
    %8 = vector.load %arg3[%c0_6, %c0_7] : memref<128x32xf32, #tpu.memory_space<vmem>>, vector<128x32xf32>
    %9 = arith.addf %7, %8 : vector<128x32xf32>
    %c0_8 = arith.constant 0 : index
    %c0_9 = arith.constant 0 : index
    %10 = vector.load %arg4[%c0_8, %c0_9] : memref<1x32xf32, #tpu.memory_space<vmem>>, vector<1x32xf32>
    %c0_10 = arith.constant 0 : index
    %c0_11 = arith.constant 0 : index
    %11 = vector.load %arg5[%c0_10, %c0_11] : memref<1x32xf32, #tpu.memory_space<vmem>>, vector<1x32xf32>
    %cst_12 = arith.constant dense<0.000000e+00> : vector<128xf32>
    %12 = vector.multi_reduction <add>, %9, %cst_12 [1] : vector<128x32xf32> to vector<128xf32>
    %13 = vector.shape_cast %12 : vector<128xf32> to vector<128x1xf32>
    %cst_13 = arith.constant 3.200000e+01 : f32
    %14 = vector.broadcast %cst_13 : f32 to vector<128x1xf32>
    %15 = arith.divf %13, %14 : vector<128x1xf32>
    %16 = vector.broadcast %15 : vector<128x1xf32> to vector<128x32xf32>
    %17 = arith.subf %9, %16 : vector<128x32xf32>
    %18 = arith.mulf %17, %17 : vector<128x32xf32>
    %cst_14 = arith.constant dense<0.000000e+00> : vector<128xf32>
    %19 = vector.multi_reduction <add>, %18, %cst_14 [1] : vector<128x32xf32> to vector<128xf32>
    %20 = vector.shape_cast %19 : vector<128xf32> to vector<128x1xf32>
    %cst_15 = arith.constant 3.200000e+01 : f32
    %21 = vector.broadcast %cst_15 : f32 to vector<128x1xf32>
    %22 = arith.divf %20, %21 : vector<128x1xf32>
    %23 = vector.broadcast %15 : vector<128x1xf32> to vector<128x32xf32>
    %24 = arith.subf %9, %23 : vector<128x32xf32>
    %cst_16 = arith.constant 9.99999974E-6 : f32
    %25 = vector.broadcast %cst_16 : f32 to vector<128x1xf32>
    %26 = arith.addf %22, %25 : vector<128x1xf32>
    %27 = math.rsqrt %26 : vector<128x1xf32>
    %28 = vector.broadcast %27 : vector<128x1xf32> to vector<128x32xf32>
    %29 = arith.mulf %24, %28 : vector<128x32xf32>
    %30 = vector.broadcast %10 : vector<1x32xf32> to vector<128x32xf32>
    %31 = arith.mulf %29, %30 : vector<128x32xf32>
    %32 = vector.broadcast %11 : vector<1x32xf32> to vector<128x32xf32>
    %33 = arith.addf %31, %32 : vector<128x32xf32>
    %c0_17 = arith.constant 0 : index
    %c0_18 = arith.constant 0 : index
    %c0_19 = arith.constant 0 : index
    %34 = vector.load %arg6[%c0_17, %c0_18, %c0_19] : memref<1x128x32xf32, #tpu.memory_space<vmem>>, vector<1x128x32xf32>
    %35 = vector.shape_cast %34 : vector<1x128x32xf32> to vector<128x32xf32>
    %36 = vector.shape_cast %33 : vector<128x32xf32> to vector<1x128x32xf32>
    tpu.vector_store %arg6[%c0_17, %c0_18, %c0_19], %36 {strides = array<i32>} : memref<1x128x32xf32, #tpu.memory_space<vmem>>, vector<1x128x32xf32>,
    return
  }
  func.func @transform_0(%arg0: i32) -> (i32, i32, i32) {
    %c0_i32 = arith.constant 0 : i32
    %c0_i32_0 = arith.constant 0 : i32
    %c0_i32_1 = arith.constant 0 : i32
    return %arg0, %c0_i32, %c0_i32_0 : i32, i32, i32
  }
  func.func @transform_1(%arg0: i32) -> (i32, i32) {
    %c0_i32 = arith.constant 0 : i32
    %c0_i32_0 = arith.constant 0 : i32
    %c0_i32_1 = arith.constant 0 : i32
    return %c0_i32, %c0_i32_0 : i32, i32
  }
  func.func @transform_2(%arg0: i32) -> (i32, i32) {
    %c0_i32 = arith.constant 0 : i32
    %c0_i32_0 = arith.constant 0 : i32
    %c0_i32_1 = arith.constant 0 : i32
    return %c0_i32, %c0_i32_0 : i32, i32
  }
  func.func @transform_3(%arg0: i32) -> (i32, i32) {
    %c0_i32 = arith.constant 0 : i32
    %c0_i32_0 = arith.constant 0 : i32
    %c0_i32_1 = arith.constant 0 : i32
    return %c0_i32, %c0_i32_0 : i32, i32
  }
  func.func @transform_4(%arg0: i32) -> (i32, i32) {
    %c0_i32 = arith.constant 0 : i32
    %c0_i32_0 = arith.constant 0 : i32
    %c0_i32_1 = arith.constant 0 : i32
    return %c0_i32, %c0_i32_0 : i32, i32
  }
  func.func @transform_5(%arg0: i32) -> (i32, i32, i32) {
    %c0_i32 = arith.constant 0 : i32
    %c0_i32_0 = arith.constant 0 : i32
    %c0_i32_1 = arith.constant 0 : i32
    return %arg0, %c0_i32, %c0_i32_0 : i32, i32, i32
  }
}

module attributes {stable_mosaic.version = 11 : i64} {
  func.func @_stack_kernel(%arg0: i32, %arg1: i32, %arg2: memref<1x128x32xf32, #tpu.memory_space<vmem>>, %arg3: memref<1x1x32xf32, #tpu.memory_space<vmem>>, %arg4: memref<1x1x32xf32, #tpu.memory_space<vmem>>, %arg5: memref<1x32x96xbf16, #tpu.memory_space<vmem>>, %arg6: memref<1x1x96xf32, #tpu.memory_space<vmem>>, %arg7: memref<1x32x32xbf16, #tpu.memory_space<vmem>>, %arg8: memref<1x1x32xf32, #tpu.memory_space<vmem>>, %arg9: memref<1x1x32xf32, #tpu.memory_space<vmem>>, %arg10: memref<1x1x32xf32, #tpu.memory_space<vmem>>, %arg11: memref<1x32x128xbf16, #tpu.memory_space<vmem>>, %arg12: memref<1x1x128xf32, #tpu.memory_space<vmem>>, %arg13: memref<1x128x32xbf16, #tpu.memory_space<vmem>>, %arg14: memref<1x1x32xf32, #tpu.memory_space<vmem>>, %arg15: memref<1x128x32xf32, #tpu.memory_space<vmem>>) attributes {dimension_semantics = [#tpu.dimension_semantics<parallel>, #tpu.dimension_semantics<arbitrary>], iteration_bounds = array<i64: 2, 2>, scalar_prefetch = 0 : i64, scratch_operands = 0 : i64, tpu.core_type = #tpu.core_type<tc>, window_params = [{transform_indices = @transform_0, window_bounds = array<i64: 1, 128, 32>}, {transform_indices = @transform_1, window_bounds = array<i64: 1, 1, 32>}, {transform_indices = @transform_2, window_bounds = array<i64: 1, 1, 32>}, {transform_indices = @transform_3, window_bounds = array<i64: 1, 32, 96>}, {transform_indices = @transform_4, window_bounds = array<i64: 1, 1, 96>}, {transform_indices = @transform_5, window_bounds = array<i64: 1, 32, 32>}, {transform_indices = @transform_6, window_bounds = array<i64: 1, 1, 32>}, {transform_indices = @transform_7, window_bounds = array<i64: 1, 1, 32>}, {transform_indices = @transform_8, window_bounds = array<i64: 1, 1, 32>}, {transform_indices = @transform_9, window_bounds = array<i64: 1, 32, 128>}, {transform_indices = @transform_10, window_bounds = array<i64: 1, 1, 128>}, {transform_indices = @transform_11, window_bounds = array<i64: 1, 128, 32>}, {transform_indices = @transform_12, window_bounds = array<i64: 1, 1, 32>}, {transform_indices = @transform_13, window_bounds = array<i64: 1, 128, 32>}]} {
    %c0_i32 = arith.constant 0 : i32
    %0 = arith.cmpi eq, %arg1, %c0_i32 : i32
    %1 = arith.extui %0 : i1 to i32
    %c0_i32_0 = arith.constant 0 : i32
    %2 = arith.cmpi ne, %1, %c0_i32_0 : i32
    scf.if %2 {
      %c0_75 = arith.constant 0 : index
      %c0_76 = arith.constant 0 : index
      %c0_77 = arith.constant 0 : index
      %189 = vector.load %arg2[%c0_75, %c0_76, %c0_77] : memref<1x128x32xf32, #tpu.memory_space<vmem>>, vector<1x128x32xf32>
      %c0_78 = arith.constant 0 : index
      %c0_79 = arith.constant 0 : index
      %c0_80 = arith.constant 0 : index
      %190 = vector.load %arg15[%c0_78, %c0_79, %c0_80] : memref<1x128x32xf32, #tpu.memory_space<vmem>>, vector<1x128x32xf32>
      tpu.vector_store %arg15[%c0_78, %c0_79, %c0_80], %189 {strides = array<i32>} : memref<1x128x32xf32, #tpu.memory_space<vmem>>, vector<1x128x32xf32>,
    } else {
    }
    %c0 = arith.constant 0 : index
    %c0_1 = arith.constant 0 : index
    %c0_2 = arith.constant 0 : index
    %3 = vector.load %arg15[%c0, %c0_1, %c0_2] : memref<1x128x32xf32, #tpu.memory_space<vmem>>, vector<1x128x32xf32>
    %4 = vector.shape_cast %3 : vector<1x128x32xf32> to vector<128x32xf32>
    %c0_3 = arith.constant 0 : index
    %c0_4 = arith.constant 0 : index
    %c0_5 = arith.constant 0 : index
    %5 = vector.load %arg3[%c0_3, %c0_4, %c0_5] : memref<1x1x32xf32, #tpu.memory_space<vmem>>, vector<1x1x32xf32>
    %6 = vector.shape_cast %5 : vector<1x1x32xf32> to vector<1x32xf32>
    %c0_6 = arith.constant 0 : index
    %c0_7 = arith.constant 0 : index
    %c0_8 = arith.constant 0 : index
    %7 = vector.load %arg4[%c0_6, %c0_7, %c0_8] : memref<1x1x32xf32, #tpu.memory_space<vmem>>, vector<1x1x32xf32>
    %8 = vector.shape_cast %7 : vector<1x1x32xf32> to vector<1x32xf32>
    %cst = arith.constant dense<0.000000e+00> : vector<128xf32>
    %9 = vector.multi_reduction <add>, %4, %cst [1] : vector<128x32xf32> to vector<128xf32>
    %10 = vector.shape_cast %9 : vector<128xf32> to vector<128x1xf32>
    %cst_9 = arith.constant 3.200000e+01 : f32
    %11 = vector.broadcast %cst_9 : f32 to vector<128x1xf32>
    %12 = arith.divf %10, %11 : vector<128x1xf32>
    %13 = vector.broadcast %12 : vector<128x1xf32> to vector<128x32xf32>
    %14 = arith.subf %4, %13 : vector<128x32xf32>
    %15 = arith.mulf %14, %14 : vector<128x32xf32>
    %cst_10 = arith.constant dense<0.000000e+00> : vector<128xf32>
    %16 = vector.multi_reduction <add>, %15, %cst_10 [1] : vector<128x32xf32> to vector<128xf32>
    %17 = vector.shape_cast %16 : vector<128xf32> to vector<128x1xf32>
    %cst_11 = arith.constant 3.200000e+01 : f32
    %18 = vector.broadcast %cst_11 : f32 to vector<128x1xf32>
    %19 = arith.divf %17, %18 : vector<128x1xf32>
    %20 = vector.broadcast %12 : vector<128x1xf32> to vector<128x32xf32>
    %21 = arith.subf %4, %20 : vector<128x32xf32>
    %cst_12 = arith.constant 9.99999974E-6 : f32
    %22 = vector.broadcast %cst_12 : f32 to vector<128x1xf32>
    %23 = arith.addf %19, %22 : vector<128x1xf32>
    %24 = math.rsqrt %23 : vector<128x1xf32>
    %25 = vector.broadcast %24 : vector<128x1xf32> to vector<128x32xf32>
    %26 = arith.mulf %21, %25 : vector<128x32xf32>
    %27 = vector.broadcast %6 : vector<1x32xf32> to vector<128x32xf32>
    %28 = arith.mulf %26, %27 : vector<128x32xf32>
    %29 = vector.broadcast %8 : vector<1x32xf32> to vector<128x32xf32>
    %30 = arith.addf %28, %29 : vector<128x32xf32>
    %31 = arith.truncf %30 : vector<128x32xf32> to vector<128x32xbf16>
    %c0_13 = arith.constant 0 : index
    %c0_14 = arith.constant 0 : index
    %c0_15 = arith.constant 0 : index
    %32 = vector.load %arg5[%c0_13, %c0_14, %c0_15] : memref<1x32x96xbf16, #tpu.memory_space<vmem>>, vector<1x32x96xbf16>
    %33 = vector.shape_cast %32 : vector<1x32x96xbf16> to vector<32x96xbf16>
    %cst_16 = arith.constant dense<0.000000e+00> : vector<128x96xf32>
    %34 = tpu.matmul %31, %33, %cst_16 {dimension_numbers = #tpu.dot_dimension_numbers<[1], [0], [0], [1], [0, 0, 1, 1], [], []>} : vector<128x32xbf16>, vector<32x96xbf16>, vector<128x96xf32> -> vector<128x96xf32>
    %c0_17 = arith.constant 0 : index
    %c0_18 = arith.constant 0 : index
    %c0_19 = arith.constant 0 : index
    %35 = vector.load %arg6[%c0_17, %c0_18, %c0_19] : memref<1x1x96xf32, #tpu.memory_space<vmem>>, vector<1x1x96xf32>
    %36 = vector.shape_cast %35 : vector<1x1x96xf32> to vector<1x96xf32>
    %37 = vector.broadcast %36 : vector<1x96xf32> to vector<128x96xf32>
    %38 = arith.addf %34, %37 : vector<128x96xf32>
    %39 = tpu.iota {dimensions = array<i32: 1>} : vector<128x128xi32>
    %c17_i32 = arith.constant 17 : i32
    %40 = vector.broadcast %c17_i32 : i32 to vector<128x128xi32>
    %41 = arith.cmpi slt, %39, %40 : vector<128x128xi32>
    %cst_20 = arith.constant 0.000000e+00 : f32
    %cst_21 = arith.constant -1.000000e+30 : f32
    %42 = vector.broadcast %cst_20 : f32 to vector<128x128xf32>
    %43 = vector.broadcast %cst_21 : f32 to vector<128x128xf32>
    %44 = arith.select %41, %42, %43 : vector<128x128xi1>, vector<128x128xf32>
    %45 = vector.extract_strided_slice %38 {offsets = [0, 0], sizes = [128, 8], strides = [1, 1]} : vector<128x96xf32> to vector<128x8xf32>
    %46 = arith.truncf %45 : vector<128x8xf32> to vector<128x8xbf16>
    %47 = vector.extract_strided_slice %38 {offsets = [0, 32], sizes = [128, 8], strides = [1, 1]} : vector<128x96xf32> to vector<128x8xf32>
    %48 = arith.truncf %47 : vector<128x8xf32> to vector<128x8xbf16>
    %49 = vector.extract_strided_slice %38 {offsets = [0, 64], sizes = [128, 8], strides = [1, 1]} : vector<128x96xf32> to vector<128x8xf32>
    %50 = arith.truncf %49 : vector<128x8xf32> to vector<128x8xbf16>
    %cst_22 = arith.constant dense<0.000000e+00> : vector<128x128xf32>
    %51 = tpu.matmul %46, %48, %cst_22 {dimension_numbers = #tpu.dot_dimension_numbers<[1], [1], [0], [0], [0, 0, 1, 0], [], []>} : vector<128x8xbf16>, vector<128x8xbf16>, vector<128x128xf32> -> vector<128x128xf32>
    %52 = arith.addf %51, %44 : vector<128x128xf32>
    %cst_23 = arith.constant dense<0xFF800000> : vector<128xf32>
    %53 = vector.multi_reduction <maximumf>, %52, %cst_23 [1] : vector<128x128xf32> to vector<128xf32>
    %54 = vector.shape_cast %53 : vector<128xf32> to vector<128x1xf32>
    %55 = vector.broadcast %54 : vector<128x1xf32> to vector<128x128xf32>
    %56 = arith.subf %52, %55 : vector<128x128xf32>
    %57 = math.exp %56 : vector<128x128xf32>
    %cst_24 = arith.constant dense<0.000000e+00> : vector<128xf32>
    %58 = vector.multi_reduction <add>, %57, %cst_24 [1] : vector<128x128xf32> to vector<128xf32>
    %59 = vector.shape_cast %58 : vector<128xf32> to vector<128x1xf32>
    %60 = tpu.reciprocal %59 {approx = true} : vector<128x1xf32> -> vector<128x1xf32>
    %61 = vector.broadcast %60 : vector<128x1xf32> to vector<128x128xf32>
    %62 = arith.mulf %57, %61 : vector<128x128xf32>
    %63 = arith.truncf %62 : vector<128x128xf32> to vector<128x128xbf16>
    %cst_25 = arith.constant dense<0.000000e+00> : vector<128x8xf32>
    %64 = tpu.matmul %63, %50, %cst_25 {dimension_numbers = #tpu.dot_dimension_numbers<[1], [0], [0], [1], [0, 0, 1, 1], [], []>} : vector<128x128xbf16>, vector<128x8xbf16>, vector<128x8xf32> -> vector<128x8xf32>
    %65 = vector.extract_strided_slice %38 {offsets = [0, 8], sizes = [128, 8], strides = [1, 1]} : vector<128x96xf32> to vector<128x8xf32>
    %66 = arith.truncf %65 : vector<128x8xf32> to vector<128x8xbf16>
    %67 = vector.extract_strided_slice %38 {offsets = [0, 40], sizes = [128, 8], strides = [1, 1]} : vector<128x96xf32> to vector<128x8xf32>
    %68 = arith.truncf %67 : vector<128x8xf32> to vector<128x8xbf16>
    %69 = vector.extract_strided_slice %38 {offsets = [0, 72], sizes = [128, 8], strides = [1, 1]} : vector<128x96xf32> to vector<128x8xf32>
    %70 = arith.truncf %69 : vector<128x8xf32> to vector<128x8xbf16>
    %cst_26 = arith.constant dense<0.000000e+00> : vector<128x128xf32>
    %71 = tpu.matmul %66, %68, %cst_26 {dimension_numbers = #tpu.dot_dimension_numbers<[1], [1], [0], [0], [0, 0, 1, 0], [], []>} : vector<128x8xbf16>, vector<128x8xbf16>, vector<128x128xf32> -> vector<128x128xf32>
    %72 = arith.addf %71, %44 : vector<128x128xf32>
    %cst_27 = arith.constant dense<0xFF800000> : vector<128xf32>
    %73 = vector.multi_reduction <maximumf>, %72, %cst_27 [1] : vector<128x128xf32> to vector<128xf32>
    %74 = vector.shape_cast %73 : vector<128xf32> to vector<128x1xf32>
    %75 = vector.broadcast %74 : vector<128x1xf32> to vector<128x128xf32>
    %76 = arith.subf %72, %75 : vector<128x128xf32>
    %77 = math.exp %76 : vector<128x128xf32>
    %cst_28 = arith.constant dense<0.000000e+00> : vector<128xf32>
    %78 = vector.multi_reduction <add>, %77, %cst_28 [1] : vector<128x128xf32> to vector<128xf32>
    %79 = vector.shape_cast %78 : vector<128xf32> to vector<128x1xf32>
    %80 = tpu.reciprocal %79 {approx = true} : vector<128x1xf32> -> vector<128x1xf32>
    %81 = vector.broadcast %80 : vector<128x1xf32> to vector<128x128xf32>
    %82 = arith.mulf %77, %81 : vector<128x128xf32>
    %83 = arith.truncf %82 : vector<128x128xf32> to vector<128x128xbf16>
    %cst_29 = arith.constant dense<0.000000e+00> : vector<128x8xf32>
    %84 = tpu.matmul %83, %70, %cst_29 {dimension_numbers = #tpu.dot_dimension_numbers<[1], [0], [0], [1], [0, 0, 1, 1], [], []>} : vector<128x128xbf16>, vector<128x8xbf16>, vector<128x8xf32> -> vector<128x8xf32>
    %85 = vector.extract_strided_slice %38 {offsets = [0, 16], sizes = [128, 8], strides = [1, 1]} : vector<128x96xf32> to vector<128x8xf32>
    %86 = arith.truncf %85 : vector<128x8xf32> to vector<128x8xbf16>
    %87 = vector.extract_strided_slice %38 {offsets = [0, 48], sizes = [128, 8], strides = [1, 1]} : vector<128x96xf32> to vector<128x8xf32>
    %88 = arith.truncf %87 : vector<128x8xf32> to vector<128x8xbf16>
    %89 = vector.extract_strided_slice %38 {offsets = [0, 80], sizes = [128, 8], strides = [1, 1]} : vector<128x96xf32> to vector<128x8xf32>
    %90 = arith.truncf %89 : vector<128x8xf32> to vector<128x8xbf16>
    %cst_30 = arith.constant dense<0.000000e+00> : vector<128x128xf32>
    %91 = tpu.matmul %86, %88, %cst_30 {dimension_numbers = #tpu.dot_dimension_numbers<[1], [1], [0], [0], [0, 0, 1, 0], [], []>} : vector<128x8xbf16>, vector<128x8xbf16>, vector<128x128xf32> -> vector<128x128xf32>
    %92 = arith.addf %91, %44 : vector<128x128xf32>
    %cst_31 = arith.constant dense<0xFF800000> : vector<128xf32>
    %93 = vector.multi_reduction <maximumf>, %92, %cst_31 [1] : vector<128x128xf32> to vector<128xf32>
    %94 = vector.shape_cast %93 : vector<128xf32> to vector<128x1xf32>
    %95 = vector.broadcast %94 : vector<128x1xf32> to vector<128x128xf32>
    %96 = arith.subf %92, %95 : vector<128x128xf32>
    %97 = math.exp %96 : vector<128x128xf32>
    %cst_32 = arith.constant dense<0.000000e+00> : vector<128xf32>
    %98 = vector.multi_reduction <add>, %97, %cst_32 [1] : vector<128x128xf32> to vector<128xf32>
    %99 = vector.shape_cast %98 : vector<128xf32> to vector<128x1xf32>
    %100 = tpu.reciprocal %99 {approx = true} : vector<128x1xf32> -> vector<128x1xf32>
    %101 = vector.broadcast %100 : vector<128x1xf32> to vector<128x128xf32>
    %102 = arith.mulf %97, %101 : vector<128x128xf32>
    %103 = arith.truncf %102 : vector<128x128xf32> to vector<128x128xbf16>
    %cst_33 = arith.constant dense<0.000000e+00> : vector<128x8xf32>
    %104 = tpu.matmul %103, %90, %cst_33 {dimension_numbers = #tpu.dot_dimension_numbers<[1], [0], [0], [1], [0, 0, 1, 1], [], []>} : vector<128x128xbf16>, vector<128x8xbf16>, vector<128x8xf32> -> vector<128x8xf32>
    %105 = vector.extract_strided_slice %38 {offsets = [0, 24], sizes = [128, 8], strides = [1, 1]} : vector<128x96xf32> to vector<128x8xf32>
    %106 = arith.truncf %105 : vector<128x8xf32> to vector<128x8xbf16>
    %107 = vector.extract_strided_slice %38 {offsets = [0, 56], sizes = [128, 8], strides = [1, 1]} : vector<128x96xf32> to vector<128x8xf32>
    %108 = arith.truncf %107 : vector<128x8xf32> to vector<128x8xbf16>
    %109 = vector.extract_strided_slice %38 {offsets = [0, 88], sizes = [128, 8], strides = [1, 1]} : vector<128x96xf32> to vector<128x8xf32>
    %110 = arith.truncf %109 : vector<128x8xf32> to vector<128x8xbf16>
    %cst_34 = arith.constant dense<0.000000e+00> : vector<128x128xf32>
    %111 = tpu.matmul %106, %108, %cst_34 {dimension_numbers = #tpu.dot_dimension_numbers<[1], [1], [0], [0], [0, 0, 1, 0], [], []>} : vector<128x8xbf16>, vector<128x8xbf16>, vector<128x128xf32> -> vector<128x128xf32>
    %112 = arith.addf %111, %44 : vector<128x128xf32>
    %cst_35 = arith.constant dense<0xFF800000> : vector<128xf32>
    %113 = vector.multi_reduction <maximumf>, %112, %cst_35 [1] : vector<128x128xf32> to vector<128xf32>
    %114 = vector.shape_cast %113 : vector<128xf32> to vector<128x1xf32>
    %115 = vector.broadcast %114 : vector<128x1xf32> to vector<128x128xf32>
    %116 = arith.subf %112, %115 : vector<128x128xf32>
    %117 = math.exp %116 : vector<128x128xf32>
    %cst_36 = arith.constant dense<0.000000e+00> : vector<128xf32>
    %118 = vector.multi_reduction <add>, %117, %cst_36 [1] : vector<128x128xf32> to vector<128xf32>
    %119 = vector.shape_cast %118 : vector<128xf32> to vector<128x1xf32>
    %120 = tpu.reciprocal %119 {approx = true} : vector<128x1xf32> -> vector<128x1xf32>
    %121 = vector.broadcast %120 : vector<128x1xf32> to vector<128x128xf32>
    %122 = arith.mulf %117, %121 : vector<128x128xf32>
    %123 = arith.truncf %122 : vector<128x128xf32> to vector<128x128xbf16>
    %cst_37 = arith.constant dense<0.000000e+00> : vector<128x8xf32>
    %124 = tpu.matmul %123, %110, %cst_37 {dimension_numbers = #tpu.dot_dimension_numbers<[1], [0], [0], [1], [0, 0, 1, 1], [], []>} : vector<128x128xbf16>, vector<128x8xbf16>, vector<128x8xf32> -> vector<128x8xf32>
    %125 = tpu.concatenate %64, %84, %104, %124 in 1 : vector<128x8xf32>, vector<128x8xf32>, vector<128x8xf32>, vector<128x8xf32> -> vector<128x32xf32>
    %126 = arith.truncf %125 : vector<128x32xf32> to vector<128x32xbf16>
    %c0_38 = arith.constant 0 : index
    %c0_39 = arith.constant 0 : index
    %c0_40 = arith.constant 0 : index
    %127 = vector.load %arg7[%c0_38, %c0_39, %c0_40] : memref<1x32x32xbf16, #tpu.memory_space<vmem>>, vector<1x32x32xbf16>
    %128 = vector.shape_cast %127 : vector<1x32x32xbf16> to vector<32x32xbf16>
    %cst_41 = arith.constant dense<0.000000e+00> : vector<128x32xf32>
    %129 = tpu.matmul %126, %128, %cst_41 {dimension_numbers = #tpu.dot_dimension_numbers<[1], [0], [0], [1], [0, 0, 1, 1], [], []>} : vector<128x32xbf16>, vector<32x32xbf16>, vector<128x32xf32> -> vector<128x32xf32>
    %130 = arith.addf %4, %129 : vector<128x32xf32>
    %c0_42 = arith.constant 0 : index
    %c0_43 = arith.constant 0 : index
    %c0_44 = arith.constant 0 : index
    %131 = vector.load %arg8[%c0_42, %c0_43, %c0_44] : memref<1x1x32xf32, #tpu.memory_space<vmem>>, vector<1x1x32xf32>
    %132 = vector.shape_cast %131 : vector<1x1x32xf32> to vector<1x32xf32>
    %133 = vector.broadcast %132 : vector<1x32xf32> to vector<128x32xf32>
    %134 = arith.addf %130, %133 : vector<128x32xf32>
    %c0_45 = arith.constant 0 : index
    %c0_46 = arith.constant 0 : index
    %c0_47 = arith.constant 0 : index
    %135 = vector.load %arg9[%c0_45, %c0_46, %c0_47] : memref<1x1x32xf32, #tpu.memory_space<vmem>>, vector<1x1x32xf32>
    %136 = vector.shape_cast %135 : vector<1x1x32xf32> to vector<1x32xf32>
    %c0_48 = arith.constant 0 : index
    %c0_49 = arith.constant 0 : index
    %c0_50 = arith.constant 0 : index
    %137 = vector.load %arg10[%c0_48, %c0_49, %c0_50] : memref<1x1x32xf32, #tpu.memory_space<vmem>>, vector<1x1x32xf32>
    %138 = vector.shape_cast %137 : vector<1x1x32xf32> to vector<1x32xf32>
    %cst_51 = arith.constant dense<0.000000e+00> : vector<128xf32>
    %139 = vector.multi_reduction <add>, %134, %cst_51 [1] : vector<128x32xf32> to vector<128xf32>
    %140 = vector.shape_cast %139 : vector<128xf32> to vector<128x1xf32>
    %cst_52 = arith.constant 3.200000e+01 : f32
    %141 = vector.broadcast %cst_52 : f32 to vector<128x1xf32>
    %142 = arith.divf %140, %141 : vector<128x1xf32>
    %143 = vector.broadcast %142 : vector<128x1xf32> to vector<128x32xf32>
    %144 = arith.subf %134, %143 : vector<128x32xf32>
    %145 = arith.mulf %144, %144 : vector<128x32xf32>
    %cst_53 = arith.constant dense<0.000000e+00> : vector<128xf32>
    %146 = vector.multi_reduction <add>, %145, %cst_53 [1] : vector<128x32xf32> to vector<128xf32>
    %147 = vector.shape_cast %146 : vector<128xf32> to vector<128x1xf32>
    %cst_54 = arith.constant 3.200000e+01 : f32
    %148 = vector.broadcast %cst_54 : f32 to vector<128x1xf32>
    %149 = arith.divf %147, %148 : vector<128x1xf32>
    %150 = vector.broadcast %142 : vector<128x1xf32> to vector<128x32xf32>
    %151 = arith.subf %134, %150 : vector<128x32xf32>
    %cst_55 = arith.constant 9.99999974E-6 : f32
    %152 = vector.broadcast %cst_55 : f32 to vector<128x1xf32>
    %153 = arith.addf %149, %152 : vector<128x1xf32>
    %154 = math.rsqrt %153 : vector<128x1xf32>
    %155 = vector.broadcast %154 : vector<128x1xf32> to vector<128x32xf32>
    %156 = arith.mulf %151, %155 : vector<128x32xf32>
    %157 = vector.broadcast %136 : vector<1x32xf32> to vector<128x32xf32>
    %158 = arith.mulf %156, %157 : vector<128x32xf32>
    %159 = vector.broadcast %138 : vector<1x32xf32> to vector<128x32xf32>
    %160 = arith.addf %158, %159 : vector<128x32xf32>
    %161 = arith.truncf %160 : vector<128x32xf32> to vector<128x32xbf16>
    %c0_56 = arith.constant 0 : index
    %c0_57 = arith.constant 0 : index
    %c0_58 = arith.constant 0 : index
    %162 = vector.load %arg11[%c0_56, %c0_57, %c0_58] : memref<1x32x128xbf16, #tpu.memory_space<vmem>>, vector<1x32x128xbf16>
    %163 = vector.shape_cast %162 : vector<1x32x128xbf16> to vector<32x128xbf16>
    %cst_59 = arith.constant dense<0.000000e+00> : vector<128x128xf32>
    %164 = tpu.matmul %161, %163, %cst_59 {dimension_numbers = #tpu.dot_dimension_numbers<[1], [0], [0], [1], [0, 0, 1, 1], [], []>} : vector<128x32xbf16>, vector<32x128xbf16>, vector<128x128xf32> -> vector<128x128xf32>
    %c0_60 = arith.constant 0 : index
    %c0_61 = arith.constant 0 : index
    %c0_62 = arith.constant 0 : index
    %165 = vector.load %arg12[%c0_60, %c0_61, %c0_62] : memref<1x1x128xf32, #tpu.memory_space<vmem>>, vector<1x1x128xf32>
    %166 = vector.shape_cast %165 : vector<1x1x128xf32> to vector<1x128xf32>
    %167 = vector.broadcast %166 : vector<1x128xf32> to vector<128x128xf32>
    %168 = arith.addf %164, %167 : vector<128x128xf32>
    %cst_63 = arith.constant 1.702000e+00 : f32
    %169 = vector.broadcast %cst_63 : f32 to vector<128x128xf32>
    %170 = arith.mulf %169, %168 : vector<128x128xf32>
    %171 = arith.negf %170 : vector<128x128xf32>
    %172 = math.exp %171 : vector<128x128xf32>
    %cst_64 = arith.constant 1.000000e+00 : f32
    %173 = vector.broadcast %cst_64 : f32 to vector<128x128xf32>
    %174 = arith.addf %173, %172 : vector<128x128xf32>
    %175 = arith.divf %173, %174 : vector<128x128xf32>
    %176 = arith.mulf %168, %175 : vector<128x128xf32>
    %177 = arith.truncf %176 : vector<128x128xf32> to vector<128x128xbf16>
    %c0_65 = arith.constant 0 : index
    %c0_66 = arith.constant 0 : index
    %c0_67 = arith.constant 0 : index
    %178 = vector.load %arg13[%c0_65, %c0_66, %c0_67] : memref<1x128x32xbf16, #tpu.memory_space<vmem>>, vector<1x128x32xbf16>
    %179 = vector.shape_cast %178 : vector<1x128x32xbf16> to vector<128x32xbf16>
    %cst_68 = arith.constant dense<0.000000e+00> : vector<128x32xf32>
    %180 = tpu.matmul %177, %179, %cst_68 {dimension_numbers = #tpu.dot_dimension_numbers<[1], [0], [0], [1], [0, 0, 1, 1], [], []>} : vector<128x128xbf16>, vector<128x32xbf16>, vector<128x32xf32> -> vector<128x32xf32>
    %c0_69 = arith.constant 0 : index
    %c0_70 = arith.constant 0 : index
    %c0_71 = arith.constant 0 : index
    %181 = vector.load %arg14[%c0_69, %c0_70, %c0_71] : memref<1x1x32xf32, #tpu.memory_space<vmem>>, vector<1x1x32xf32>
    %182 = vector.shape_cast %181 : vector<1x1x32xf32> to vector<1x32xf32>
    %183 = vector.broadcast %182 : vector<1x32xf32> to vector<128x32xf32>
    %184 = arith.addf %180, %183 : vector<128x32xf32>
    %185 = arith.addf %134, %184 : vector<128x32xf32>
    %c0_72 = arith.constant 0 : index
    %c0_73 = arith.constant 0 : index
    %c0_74 = arith.constant 0 : index
    %186 = vector.load %arg15[%c0_72, %c0_73, %c0_74] : memref<1x128x32xf32, #tpu.memory_space<vmem>>, vector<1x128x32xf32>
    %187 = vector.shape_cast %186 : vector<1x128x32xf32> to vector<128x32xf32>
    %188 = vector.shape_cast %185 : vector<128x32xf32> to vector<1x128x32xf32>
    tpu.vector_store %arg15[%c0_72, %c0_73, %c0_74], %188 {strides = array<i32>} : memref<1x128x32xf32, #tpu.memory_space<vmem>>, vector<1x128x32xf32>,
    return
  }
  func.func @transform_0(%arg0: i32, %arg1: i32) -> (i32, i32, i32) {
    %c0_i32 = arith.constant 0 : i32
    %c0_i32_0 = arith.constant 0 : i32
    %c0_i32_1 = arith.constant 0 : i32
    return %arg0, %c0_i32, %c0_i32_0 : i32, i32, i32
  }
  func.func @transform_1(%arg0: i32, %arg1: i32) -> (i32, i32, i32) {
    %c0_i32 = arith.constant 0 : i32
    %c0_i32_0 = arith.constant 0 : i32
    %c0_i32_1 = arith.constant 0 : i32
    return %arg1, %c0_i32, %c0_i32_0 : i32, i32, i32
  }
  func.func @transform_2(%arg0: i32, %arg1: i32) -> (i32, i32, i32) {
    %c0_i32 = arith.constant 0 : i32
    %c0_i32_0 = arith.constant 0 : i32
    %c0_i32_1 = arith.constant 0 : i32
    return %arg1, %c0_i32, %c0_i32_0 : i32, i32, i32
  }
  func.func @transform_3(%arg0: i32, %arg1: i32) -> (i32, i32, i32) {
    %c0_i32 = arith.constant 0 : i32
    %c0_i32_0 = arith.constant 0 : i32
    %c0_i32_1 = arith.constant 0 : i32
    return %arg1, %c0_i32, %c0_i32_0 : i32, i32, i32
  }
  func.func @transform_4(%arg0: i32, %arg1: i32) -> (i32, i32, i32) {
    %c0_i32 = arith.constant 0 : i32
    %c0_i32_0 = arith.constant 0 : i32
    %c0_i32_1 = arith.constant 0 : i32
    return %arg1, %c0_i32, %c0_i32_0 : i32, i32, i32
  }
  func.func @transform_5(%arg0: i32, %arg1: i32) -> (i32, i32, i32) {
    %c0_i32 = arith.constant 0 : i32
    %c0_i32_0 = arith.constant 0 : i32
    %c0_i32_1 = arith.constant 0 : i32
    return %arg1, %c0_i32, %c0_i32_0 : i32, i32, i32
  }
  func.func @transform_6(%arg0: i32, %arg1: i32) -> (i32, i32, i32) {
    %c0_i32 = arith.constant 0 : i32
    %c0_i32_0 = arith.constant 0 : i32
    %c0_i32_1 = arith.constant 0 : i32
    return %arg1, %c0_i32, %c0_i32_0 : i32, i32, i32
  }
  func.func @transform_7(%arg0: i32, %arg1: i32) -> (i32, i32, i32) {
    %c0_i32 = arith.constant 0 : i32
    %c0_i32_0 = arith.constant 0 : i32
    %c0_i32_1 = arith.constant 0 : i32
    return %arg1, %c0_i32, %c0_i32_0 : i32, i32, i32
  }
  func.func @transform_8(%arg0: i32, %arg1: i32) -> (i32, i32, i32) {
    %c0_i32 = arith.constant 0 : i32
    %c0_i32_0 = arith.constant 0 : i32
    %c0_i32_1 = arith.constant 0 : i32
    return %arg1, %c0_i32, %c0_i32_0 : i32, i32, i32
  }
  func.func @transform_9(%arg0: i32, %arg1: i32) -> (i32, i32, i32) {
    %c0_i32 = arith.constant 0 : i32
    %c0_i32_0 = arith.constant 0 : i32
    %c0_i32_1 = arith.constant 0 : i32
    return %arg1, %c0_i32, %c0_i32_0 : i32, i32, i32
  }
  func.func @transform_10(%arg0: i32, %arg1: i32) -> (i32, i32, i32) {
    %c0_i32 = arith.constant 0 : i32
    %c0_i32_0 = arith.constant 0 : i32
    %c0_i32_1 = arith.constant 0 : i32
    return %arg1, %c0_i32, %c0_i32_0 : i32, i32, i32
  }
  func.func @transform_11(%arg0: i32, %arg1: i32) -> (i32, i32, i32) {
    %c0_i32 = arith.constant 0 : i32
    %c0_i32_0 = arith.constant 0 : i32
    %c0_i32_1 = arith.constant 0 : i32
    return %arg1, %c0_i32, %c0_i32_0 : i32, i32, i32
  }
  func.func @transform_12(%arg0: i32, %arg1: i32) -> (i32, i32, i32) {
    %c0_i32 = arith.constant 0 : i32
    %c0_i32_0 = arith.constant 0 : i32
    %c0_i32_1 = arith.constant 0 : i32
    return %arg1, %c0_i32, %c0_i32_0 : i32, i32, i32
  }
  func.func @transform_13(%arg0: i32, %arg1: i32) -> (i32, i32, i32) {
    %c0_i32 = arith.constant 0 : i32
    %c0_i32_0 = arith.constant 0 : i32
    %c0_i32_1 = arith.constant 0 : i32
    return %arg0, %c0_i32, %c0_i32_0 : i32, i32, i32
  }
}

module attributes {stable_mosaic.version = 11 : i64} {
  func.func @_head_kernel(%arg0: memref<2x32xf32, #tpu.memory_space<vmem>>, %arg1: memref<1x32xf32, #tpu.memory_space<vmem>>, %arg2: memref<1x32xf32, #tpu.memory_space<vmem>>, %arg3: memref<32x16xbf16, #tpu.memory_space<vmem>>, %arg4: memref<2x16xf32, #tpu.memory_space<vmem>>) attributes {dimension_semantics = [], scalar_prefetch = 0 : i64, scratch_operands = 0 : i64, tpu.core_type = #tpu.core_type<tc>} {
    %c0 = arith.constant 0 : index
    %c0_0 = arith.constant 0 : index
    %0 = vector.load %arg0[%c0, %c0_0] : memref<2x32xf32, #tpu.memory_space<vmem>>, vector<2x32xf32>
    %c0_1 = arith.constant 0 : index
    %c0_2 = arith.constant 0 : index
    %1 = vector.load %arg1[%c0_1, %c0_2] : memref<1x32xf32, #tpu.memory_space<vmem>>, vector<1x32xf32>
    %c0_3 = arith.constant 0 : index
    %c0_4 = arith.constant 0 : index
    %2 = vector.load %arg2[%c0_3, %c0_4] : memref<1x32xf32, #tpu.memory_space<vmem>>, vector<1x32xf32>
    %cst = arith.constant dense<0.000000e+00> : vector<2xf32>
    %3 = vector.multi_reduction <add>, %0, %cst [1] : vector<2x32xf32> to vector<2xf32>
    %4 = vector.shape_cast %3 : vector<2xf32> to vector<2x1xf32>
    %cst_5 = arith.constant 3.200000e+01 : f32
    %5 = vector.broadcast %cst_5 : f32 to vector<2x1xf32>
    %6 = arith.divf %4, %5 : vector<2x1xf32>
    %7 = vector.broadcast %6 : vector<2x1xf32> to vector<2x32xf32>
    %8 = arith.subf %0, %7 : vector<2x32xf32>
    %9 = arith.mulf %8, %8 : vector<2x32xf32>
    %cst_6 = arith.constant dense<0.000000e+00> : vector<2xf32>
    %10 = vector.multi_reduction <add>, %9, %cst_6 [1] : vector<2x32xf32> to vector<2xf32>
    %11 = vector.shape_cast %10 : vector<2xf32> to vector<2x1xf32>
    %cst_7 = arith.constant 3.200000e+01 : f32
    %12 = vector.broadcast %cst_7 : f32 to vector<2x1xf32>
    %13 = arith.divf %11, %12 : vector<2x1xf32>
    %14 = vector.broadcast %6 : vector<2x1xf32> to vector<2x32xf32>
    %15 = arith.subf %0, %14 : vector<2x32xf32>
    %cst_8 = arith.constant 9.99999974E-6 : f32
    %16 = vector.broadcast %cst_8 : f32 to vector<2x1xf32>
    %17 = arith.addf %13, %16 : vector<2x1xf32>
    %18 = math.rsqrt %17 : vector<2x1xf32>
    %19 = vector.broadcast %18 : vector<2x1xf32> to vector<2x32xf32>
    %20 = arith.mulf %15, %19 : vector<2x32xf32>
    %21 = vector.broadcast %1 : vector<1x32xf32> to vector<2x32xf32>
    %22 = arith.mulf %20, %21 : vector<2x32xf32>
    %23 = vector.broadcast %2 : vector<1x32xf32> to vector<2x32xf32>
    %24 = arith.addf %22, %23 : vector<2x32xf32>
    %25 = arith.truncf %24 : vector<2x32xf32> to vector<2x32xbf16>
    %c0_9 = arith.constant 0 : index
    %c0_10 = arith.constant 0 : index
    %26 = vector.load %arg3[%c0_9, %c0_10] : memref<32x16xbf16, #tpu.memory_space<vmem>>, vector<32x16xbf16>
    %cst_11 = arith.constant dense<0.000000e+00> : vector<2x16xf32>
    %27 = tpu.matmul %25, %26, %cst_11 {dimension_numbers = #tpu.dot_dimension_numbers<[1], [0], [0], [1], [0, 0, 1, 1], [], []>} : vector<2x32xbf16>, vector<32x16xbf16>, vector<2x16xf32> -> vector<2x16xf32>
    %c0_12 = arith.constant 0 : index
    %c0_13 = arith.constant 0 : index
    %28 = vector.load %arg4[%c0_12, %c0_13] : memref<2x16xf32, #tpu.memory_space<vmem>>, vector<2x16xf32>
    tpu.vector_store %arg4[%c0_12, %c0_13], %27 {strides = array<i32>} : memref<2x16xf32, #tpu.memory_space<vmem>>, vector<2x16xf32>,
    return
  }
}

</mosaic_0001>

<bundles_post_ra>
// kernel: image_clip_forward.5
= control target key start
LH: loop header
LB: loop body
LE: loop exit
PB: predicated region body
PF: predicated region fallthrough
CT: control target
= control target key end

     0   :  { %vm22_vm0 = vcmask 254976   ;;  %s204_s0 = inlined_call_operand.vmem [shape: f32[2,32], index: 0, kind: input, shape index: {}]   ;;  %s205_s1 = inlined_call_operand.vmem [shape: f32[1,32], index: 1, kind: input, shape index: {}]   ;;  %s206_s2 = inlined_call_operand.vmem [shape: f32[1,32], index: 2, kind: input, shape index: {}]   ;;  %s207_s3 = inlined_call_operand.vmem [shape: bf16[32,16], index: 3, kind: input, shape index: {}]   ;;  %s208_s4 = inlined_call_operand.hbm [shape: f32[2,16], index: 4, kind: output, shape index: {}]  }
   0x1   :  { %v19_v0 = vld [vmem:[%s204_s0] sm:$0x3] }
   0x2   :  { %v23_v1 = vsel %vm22_vm0, %v19_v0, 0.0 }
   0x3   :  { %9 = vsyncpa [#allocation3], 0  ;;  %24 = vadd.xlane.f32.xlu0 %v23_v1  ;;  %v157_v2 = vmov 32.0   ;;  %v122_v14 = vld [vmem:[%s207_s3 + $0x8] sm:$0xff]  ;;  %v121_v15 = vld [vmem:[%s207_s3] sm:$0xff]  ;;  %vm77_vm5 = vcmask 261120  }
   0x4   :  { %127 = vrcp.f32 %v157_v2  ;;  %87 = vmatpush.bf16.msra.mxu0 %v122_v14  ;;  %v125_v25 = vld [vmem:[%s205_s1] ss:$0 sm:$0xff]  ;;  %s158_s23 = smov [#allocation2]   ;;  %s103_s27 = sshll.u32 %s208_s4, 4  ;;  %vm94_vm6 = vcmask 123904   ;;  %s104_s27 = int_to_ptr.hbm [resolvable:$true] %s103_s27 }
   0x5   :  { %v126_v28 = vld [vmem:[%s206_s2] ss:$0 sm:$0xff]  ;;  %s101_s24 = sshll.u32 %s158_s23, 4  ;;  %s102_s24 = int_to_ptr.vmem [resolvable:$true] %s101_s24 }
   0x8   :  { %88 = vmatpush.bf16.msra.mxu0 %v121_v15 }
   0xa   :  { %v128_v3 = vpop.eup %127 }
   0xb   :  { %v27_v4 = vmul.f32 32.0, %v128_v3  ;;  %vm31_vm1 = vweird.f32 %v128_v3 }
   0xd   :  { %v28_v5 = vsub.f32 1.0, %v27_v4 }
   0xf   :  { %v29_v6 = vmul.f32 %v128_v3, %v28_v5 }
  0x11   :  { %v30_v7 = vadd.f32 %v128_v3, %v29_v6 }
  0x13   :  { %v32_v8 = vsel %vm31_vm1, %v128_v3, %v30_v7 }
  0x76   :  { %v25_v9 = vpop.xlane.xlu0 %24 }
  0x77   :  { %v33_v10 = vmul.f32 %v32_v8, %v25_v9 }
  0x79   :  { %v34_v11 = vsub.f32 %v19_v0, %v33_v10 }
  0x7b   :  { %v35_v12 = vmul.f32 %v34_v11, %v34_v11 }
  0x7d   :  { %v36_v13 = vsel %vm22_vm0, %v35_v12, 0.0 }
  0x7e   :  { %37 = vadd.xlane.f32.xlu0 %v36_v13 }
  0xf1   :  { %v38_v16 = vpop.xlane.xlu0 %37 }
  0xf2   :  { %v39_v17 = vmul.f32 %v38_v16, %v32_v8 }
  0xf4   :  { %v40_v18 = vadd.f32 1e-05, %v39_v17 }
  0xf6   :  { %129 = vrsqrt.f32 %v40_v18  ;;  %vm47_vm3 = vweird.f32 %v40_v18 }
  0xfc   :  { %v130_v19 = vpop.eup %129 }
  0xfd   :  { %v42_v20 = vmul.f32 %v130_v19, %v40_v18  ;;  %vm48_vm2 = vweird.f32 %v130_v19 }
  0xfe   :  { %vm49_vm4 = vmor %vm47_vm3, %vm48_vm2 }
  0xff   :  { %v43_v21 = vmul.f32 %v130_v19, %v42_v20 }
 0x101   :  { %v44_v22 = vmul.f32 0.5, %v43_v21 }
 0x103   :  { %v45_v23 = vsub.f32 1.5, %v44_v22 }
 0x105   :  { %v46_v24 = vmul.f32 %v130_v19, %v45_v23 }
 0x107   :  { %v50_v26 = vsel %vm49_vm4, %v130_v19, %v46_v24 }
 0x108   :  { %v51_v27 = vmul.f32 %v50_v26, %v34_v11 }
 0x10a   :  { %v55_v29 = vmul.f32 %v125_v25, %v51_v27 }
 0x10c   :  { %v59_v30 = vadd.f32 %v126_v28, %v55_v29 }
 0x10e   :  { %v60_v31 = vpack.c.bf16 %v59_v30, %v59_v30 }
 0x110   :  { %120 = vmatmul.msk.bf16.vlgmr.msra.gmra.mxu0 %vm77_vm5, %v60_v31 }
 0x18d   :  { %v90_v32 = vpop.f32.mrf.mxu0 }
 0x18e   :  { %95 = vst.msk [vmem:[#allocation2] sm:$0x3] %vm94_vm6, %v90_v32 }
 0x18f   :  { %106 = dma.vmem_to_hbm [thread:$0]  %s102_s24, 32, %s104_s27, [#allocation3]  }
 0x195   :  { %v92_v33 = vpop.f32.mrf.mxu0 }
 0x196   :  { %155 = dma.done.wait [#allocation3], 32  }
 0x197   :  { %156 = vsyncadd [#allocation3], 4294967264 }
 0x198   :  { %111 = vsyncpa [#allocation3], 1 }

// kernel: image_clip_forward.3
= control target key start
LH: loop header
LB: loop body
LE: loop exit
PB: predicated region body
PF: predicated region fallthrough
CT: control target
= control target key end

     0   :  { %s1032_s18 = smov 0   ;;  %s1443_s0 = inlined_call_operand.vmem [shape: f32[2,16,192], index: 0, kind: input, shape index: {}]   ;;  %s1444_s1 = inlined_call_operand.vmem [shape: bf16[192,32], index: 1, kind: input, shape index: {}]   ;;  %s1445_s2 = inlined_call_operand.vmem [shape: f32[128,32], index: 2, kind: input, shape index: {}]   ;;  %s1446_s3 = inlined_call_operand.vmem [shape: f32[1,32], index: 3, kind: input, shape index: {}]   ;;  %s1447_s4 = inlined_call_operand.vmem [shape: f32[1,32], index: 4, kind: input, shape index: {}]   ;;  %s1448_s5 = inlined_call_operand.vmem [shape: f32[2,128,32], index: 5, kind: output, shape index: {}]  }
   0x1 LB: > { %s874_s19 = sadd.s32 4294967295, %s999_s18   ;;  %p878_p0 = scmp.ge.s32.totalorder %s999_s18, 1  ;;  %s999_s18 = sphi %s1032_s18, %s15_s18  }
   0x2   : > { %p187_p1 = scmp.lt.s32.totalorder %s999_s18, 3 }
   0x4   : > { %p188_p2 = pnand %p878_p0, %p187_p1 }
   0x5   : > { %p215_p3 = scmp.lt.s32.totalorder (!%p188_p2), %s874_s19, 1 }
   0x6   : > { %191 = sbr.rel (%p188_p2) target bundleno = 465 (0x1d1), region = 40 }
   0xb   : > { %v1043_v0 = vld [vmem:[%s1445_s2 + $0x20] sm:$0xff]  ;;  %vm405_vm0 = vcmask 261120   ;;  %v1048_v1 = vld [vmem:[%s1445_s2 + $0x18] sm:$0xff]  ;;  %s1450_s19 = smov (!%p215_p3, %s874_s19), 1  ;;  %v942_v6 = vld [vmem:[%s1444_s1 + $0x30] sm:$0xff]  ;;  %vm328_vm1 = vcmask 523264  }
   0xc   : > { %v943_v2 = vld [vmem:[%s1444_s1 + $0x38] sm:$0xff]  ;;  %v418_v3 = vsel %vm405_vm0, %v1043_v0, 0.0  ;;  %v415_v4 = vsel %vm405_vm0, %v1048_v1, 0.0  ;;  %v946_v8 = vld [vmem:[%s1444_s1 + $0x50] sm:$0xff]  ;;  %v1081_v10 = vld [vmem:[%s1445_s2 + $0x28] sm:$0xff]  ;;  %s934_s13 = sshll.u32 %s1450_s19, 5 }
   0xd   : > { %419 = vadd.xlane.f32.xlu2 %v418_v3  ;;  %416 = vadd.xlane.f32.xlu1 %v415_v4  ;;  %v947_v5 = vld [vmem:[%s1444_s1 + $0x58] sm:$0xff]  ;;  %v1076_v9 = vld [vmem:[%s1445_s2 + $0x30] sm:$0xff]  ;;  %v941_v13 = vld [vmem:[%s1444_s1 + $0x28] sm:$0xff]  ;;  %v421_v14 = vsel %vm405_vm0, %v1081_v10, 0.0  ;;  %s1099_s22 = scalar_lea.vmem %s1443_s0, %s934_s13  ;;  %v1001_v40 = vmov 32.0   ;;  %vm362_vm3 = vcmask 1040384  }
   0xe   : > { %332 = vmatpush.bf16.msra.mxu0 %v943_v2  ;;  %v1068_v7 = vld [vmem:[%s1445_s2 + $0x38] sm:$0xff]  ;;  %350 = vmatpush.bf16.msra.mxu1 %v947_v5  ;;  %v424_v11 = vsel %vm405_vm0, %v1076_v9, 0.0  ;;  %v945_v15 = vld [vmem:[%s1444_s1 + $0x48] sm:$0xff]  ;;  %v940_v17 = vld [vmem:[%s1444_s1 + $0x20] sm:$0xff]  ;;  %959 = vrcp.f32 %v1001_v40  ;;  %s935_s11 = sshll.u32 %s1450_s19, 7 }
   0xf   : > { %v427_v12 = vsel %vm405_vm0, %v1068_v7, 0.0  ;;  %425 = vadd.xlane.f32.xlu0 %v424_v11  ;;  %v1104_v16 = vld [vmem:[%s1445_s2 + $0x48] sm:$0xff]  ;;  %v1112_v18 = vld [vmem:[%s1445_s2 + $0x50] sm:$0xff]  ;;  %v944_v19 = vld [vmem:[%s1444_s1 + $0x40] sm:$0xff]  ;;  %s1296_s16 = scalar_lea.vmem %s1448_s5, %s935_s11 }
  0x10   : > { %v227_v20 = vld [vmem:[%s1099_s22 + $0x8] sm:$0xff]  ;;  %v229_v21 = vld [vmem:[%s1099_s22 + $0x18] sm:$0xff]  ;;  %v433_v22 = vsel %vm405_vm0, %v1104_v16, 0.0  ;;  %v1124_v23 = vld [vmem:[%s1445_s2 + $0x40] sm:$0xff]  ;;  %v436_v24 = vsel %vm405_vm0, %v1112_v18, 0.0 }
  0x11   : > { %v939_v25 = vld [vmem:[%s1444_s1 + $0x18] sm:$0xff]  ;;  %v231_v26 = vpack.c.bf16 %v229_v21, %v227_v20  ;;  %v430_v27 = vsel %vm405_vm0, %v1124_v23, 0.0  ;;  %v1136_v28 = vld [vmem:[%s1445_s2 + $0x60] sm:$0xff]  ;;  %v938_v29 = vld [vmem:[%s1444_s1 + $0x10] sm:$0xff] }
  0x12   : > { %333 = vmatpush.bf16.msra.mxu0 %v942_v6  ;;  %351 = vmatpush.bf16.msra.mxu1 %v946_v8  ;;  %v442_v30 = vsel %vm405_vm0, %v1136_v28, 0.0  ;;  %v1146_v31 = vld [vmem:[%s1445_s2 + $0x58] sm:$0xff]  ;;  %v937_v32 = vld [vmem:[%s1444_s1 + $0x8] sm:$0xff]  ;;  %v936_v34 = vld [vmem:[%s1444_s1] sm:$0xff] }
  0x13   : > { %v439_v33 = vsel %vm405_vm0, %v1146_v31, 0.0  ;;  %v226_v35 = vld [vmem:[%s1099_s22] sm:$0xff]  ;;  %v228_v36 = vld [vmem:[%s1099_s22 + $0x10] sm:$0xff]  ;;  %v1185_v60 = vld [vmem:[%s1445_s2 + $0x68] sm:$0xff] }
  0x14   : > { %v1161_v37 = vld [vmem:[%s1445_s2 + $0x70] sm:$0xff]  ;;  %v230_v38 = vpack.c.bf16 %v228_v36, %v226_v35  ;;  %v960_v41 = vpop.eup %959  ;;  %v445_v61 = vsel %vm405_vm0, %v1185_v60, 0.0  ;;  %v371_v6 = vld [vmem:[%s1445_s2] sm:$0xff] }
  0x15   : > { %428 = vadd.xlane.f32.xlu1 %v427_v12  ;;  %422 = vadd.xlane.f32.xlu2 %v421_v14  ;;  %v448_v39 = vsel %vm405_vm0, %v1161_v37, 0.0  ;;  %v455_v42 = vmul.f32 32.0, %v960_v41  ;;  %vm459_vm2 = vweird.f32 %v960_v41 }
  0x16   : > { %334 = vmatpush.bf16.msra.mxu0 %v941_v13  ;;  %352 = vmatpush.bf16.msra.mxu1 %v945_v15 }
  0x17   : > { %434 = vadd.xlane.f32.xlu0 %v433_v22  ;;  %v456_v43 = vsub.f32 1.0, %v455_v42 }
  0x19   : > { %v457_v44 = vmul.f32 %v960_v41, %v456_v43 }
  0x1a   : > { %335 = vmatpush.bf16.msra.mxu0 %v940_v17  ;;  %353 = vmatpush.bf16.msra.mxu1 %v944_v19  ;;  %v372_v19 = vld [vmem:[%s1445_s2 + $0x8] sm:$0xff] }
  0x1b   : > { %v458_v45 = vadd.f32 %v960_v41, %v457_v44 }
  0x1d   : > { %437 = vadd.xlane.f32.xlu1 %v436_v24  ;;  %431 = vadd.xlane.f32.xlu2 %v430_v27  ;;  %v1165_v46 = vsel %vm459_vm2, %v960_v41, %v458_v45 }
  0x1e   : > { %336 = vmatpush.bf16.msra.mxu0 %v939_v25  ;;  %931 = vmatmul.msk.bf16.vlgmr.msra.gmra.mxu1 %vm328_vm1, %v231_v26 }
  0x1f   : > { %443 = vadd.xlane.f32.xlu0 %v442_v30 }
  0x22   : > { %337 = vmatpush.bf16.msra.mxu0 %v938_v29 }
  0x25   : > { %440 = vadd.xlane.f32.xlu2 %v439_v33  ;;  %446 = vadd.xlane.f32.xlu1 %v445_v61 }
  0x26   : > { %338 = vmatpush.bf16.msra.mxu0 %v937_v32 }
  0x2a   : > { %339 = vmatpush.bf16.msra.mxu0 %v936_v34  ;;  %v1230_v34 = vld [vmem:[%s1445_s2 + $0x78] sm:$0xff] }
  0x2b   : > { %v451_v41 = vsel %vm405_vm0, %v1230_v34, 0.0 }
  0x2d   : > { %340 = vmatmul.bf16.vlgmr.msra.gmra.mxu0 %v230_v38  ;;  %449 = vadd.xlane.f32.xlu2 %v448_v39 }
  0x80   : > { %v420_v47 = vpop.xlane.xlu2 %419  ;;  %v417_v48 = vpop.xlane.xlu1 %416 }
  0x81   : > { %v465_v49 = vmul.f32 %v1165_v46, %v420_v47  ;;  %v464_v15 = vmul.f32 %v1165_v46, %v417_v48 }
  0x82   : > { %v426_v20 = vpop.xlane.xlu0 %425 }
  0x83   : > { %v1169_v50 = vsub.f32 %v1043_v0, %v465_v49  ;;  %v1213_v25 = vsub.f32 %v1048_v1, %v464_v15  ;;  %v467_v32 = vmul.f32 %v1165_v46, %v426_v20 }
  0x85   : > { %v497_v51 = vmul.f32 %v1169_v50, %v1169_v50  ;;  %v496_v1 = vmul.f32 %v1213_v25, %v1213_v25  ;;  %v1233_v38 = vsub.f32 %v1076_v9, %v467_v32 }
  0x87   : > { %v521_v52 = vsel %vm405_vm0, %v497_v51, 0.0  ;;  %v518_v40 = vsel %vm405_vm0, %v496_v1, 0.0  ;;  %v499_v44 = vmul.f32 %v1233_v38, %v1233_v38 }
  0x88   : > { %522 = vadd.xlane.f32.xlu2 %v521_v52  ;;  %v429_v53 = vpop.xlane.xlu1 %428  ;;  %v423_v21 = vpop.xlane.xlu2 %422 }
  0x89   : > { %v468_v54 = vmul.f32 %v1165_v46, %v429_v53  ;;  %v466_v33 = vmul.f32 %v1165_v46, %v423_v21  ;;  %v527_v47 = vsel %vm405_vm0, %v499_v44, 0.0 }
  0x8a   : > { %v435_v35 = vpop.xlane.xlu0 %434 }
  0x8b   : > { %v1176_v55 = vsub.f32 %v1068_v7, %v468_v54  ;;  %v1236_v39 = vsub.f32 %v1081_v10, %v466_v33  ;;  %v470_v42 = vmul.f32 %v1165_v46, %v435_v35 }
  0x8d   : > { %v500_v56 = vmul.f32 %v1176_v55, %v1176_v55  ;;  %v498_v9 = vmul.f32 %v1236_v39, %v1236_v39  ;;  %v1248_v10 = vsub.f32 %v1104_v16, %v470_v42 }
  0x8f   : > { %v530_v57 = vsel %vm405_vm0, %v500_v56, 0.0  ;;  %v524_v48 = vsel %vm405_vm0, %v498_v9, 0.0  ;;  %v502_v54 = vmul.f32 %v1248_v10, %v1248_v10 }
  0x90   : > { %531 = vadd.xlane.f32.xlu2 %v530_v57  ;;  %v438_v58 = vpop.xlane.xlu1 %437  ;;  %v432_v36 = vpop.xlane.xlu2 %431 }
  0x91   : > { %v471_v59 = vmul.f32 %v1165_v46, %v438_v58  ;;  %v469_v43 = vmul.f32 %v1165_v46, %v432_v36  ;;  %v536_v57 = vsel %vm405_vm0, %v502_v54, 0.0 }
  0x92   : > { %v444_v49 = vpop.xlane.xlu0 %443 }
  0x93   : > { %v1190_v62 = vsub.f32 %v1112_v18, %v471_v59  ;;  %v373_v18 = vld [vmem:[%s1445_s2 + $0x10] sm:$0xff]  ;;  %v1251_v45 = vsub.f32 %v1124_v23, %v469_v43  ;;  %v473_v52 = vmul.f32 %v1165_v46, %v444_v49 }
  0x95   : > { %v503_v63 = vmul.f32 %v1190_v62, %v1190_v62  ;;  %v501_v16 = vmul.f32 %v1251_v45, %v1251_v45  ;;  %v1262_v23 = vsub.f32 %v1136_v28, %v473_v52 }
  0x97   : > { %v539_v0 = vsel %vm405_vm0, %v503_v63, 0.0  ;;  %v533_v58 = vsel %vm405_vm0, %v501_v16, 0.0  ;;  %v505_v59 = vmul.f32 %v1262_v23, %v1262_v23 }
  0x98   : > { %540 = vadd.xlane.f32.xlu2 %v539_v0  ;;  %v441_v51 = vpop.xlane.xlu2 %440  ;;  %v447_v16 = vpop.xlane.xlu1 %446 }
  0x99   : > { %v472_v53 = vmul.f32 %v1165_v46, %v441_v51  ;;  %v545_v63 = vsel %vm405_vm0, %v505_v59, 0.0 }
  0x9b   : > { %v355_v2 = vpop.f32.mrf.mxu1  ;;  %v1265_v56 = vsub.f32 %v1146_v31, %v472_v53 }
  0x9d   : > { %v504_v61 = vmul.f32 %v1265_v56, %v1265_v56 }
  0x9f   : > { %v542_v28 = vsel %vm405_vm0, %v504_v61, 0.0 }
  0xa0   : > { %v1275_v31 = vpop.xlane.xlu2 %449 }
  0xa3   : > { %v357_v11 = vpop.f32.mrf.mxu1 }
  0xaa   : > { %v341_v3 = vpop.f32.mrf.mxu0 }
  0xab   : > { %v356_v4 = vadd.f32 %v355_v2, %v341_v3 }
  0xad   : > { %v363_v5 = vrot.slane %v356_v4, 7 }
  0xaf   : > { %v369_v7 = vsel %vm362_vm3, 0.0, %v363_v5 }
  0xb0   : > { %v1199_v8 = vadd.f32 %v371_v6, %v369_v7 }
  0xb2   : > { %v343_v12 = vpop.f32.mrf.mxu0  ;;  %v406_v13 = vsel %vm405_vm0, %v1199_v8, 0.0 }
  0xb3   : > { %v358_v14 = vadd.f32 %v357_v11, %v343_v12  ;;  %407 = vadd.xlane.f32.xlu0 %v406_v13 }
  0xb5   : > { %v364_v17 = vrot.slane %v358_v14, 7 }
  0xb7   : > { %v370_v22 = vsel %vm362_vm3, %v364_v17, 0.0  ;;  %v365_v24 = vsel %vm362_vm3, %v363_v5, %v364_v17 }
  0xb8   : > { %v1215_v26 = vadd.f32 %v373_v18, %v370_v22  ;;  %v1217_v27 = vadd.f32 %v372_v19, %v365_v24  ;;  %v1283_v22 = vld [vmem:[%s1446_s3] ss:$0 sm:$0xff] }
  0xba   : > { %v412_v29 = vsel %vm405_vm0, %v1215_v26, 0.0  ;;  %v409_v30 = vsel %vm405_vm0, %v1217_v27, 0.0 }
  0xbb   : > { %413 = vadd.xlane.f32.xlu1 %v412_v29  ;;  %410 = vadd.xlane.f32.xlu0 %v409_v30  ;;  %v1289_v30 = vld [vmem:[%s1447_s4] ss:$0 sm:$0xff] }
  0xc3   : > { %519 = vadd.xlane.f32.xlu1 %v518_v40  ;;  %452 = vadd.xlane.f32.xlu0 %v451_v41 }
  0xcb   : > { %528 = vadd.xlane.f32.xlu1 %v527_v47  ;;  %525 = vadd.xlane.f32.xlu0 %v524_v48 }
  0xd3   : > { %537 = vadd.xlane.f32.xlu1 %v536_v57  ;;  %534 = vadd.xlane.f32.xlu0 %v533_v58 }
  0xdb   : > { %546 = vadd.xlane.f32.xlu1 %v545_v63  ;;  %543 = vadd.xlane.f32.xlu0 %v542_v28 }
  0xfb   : > { %v523_v0 = vpop.xlane.xlu2 %522 }
  0xfc   : > { %v561_v2 = vmul.f32 %v523_v0, %v1165_v46  ;;  %v475_v0 = vmul.f32 %v1165_v46, %v1275_v31 }
  0xfe   : > { %v577_v3 = vadd.f32 1e-05, %v561_v2 }
 0x100   : > { %961 = vrsqrt.f32 %v577_v3  ;;  %vm635_vm4 = vweird.f32 %v577_v3 }
 0x103   : > { %v532_v4 = vpop.xlane.xlu2 %531 }
 0x104   : > { %v564_v5 = vmul.f32 %v532_v4, %v1165_v46  ;;  %v474_v4 = vmul.f32 %v1165_v46, %v447_v16 }
 0x106   : > { %v962_v6 = vpop.eup %961  ;;  %v580_v7 = vadd.f32 1e-05, %v564_v5 }
 0x107   : > { %v630_v11 = vmul.f32 %v962_v6, %v577_v3  ;;  %vm636_vm5 = vweird.f32 %v962_v6 }
 0x108   : > { %963 = vrsqrt.f32 %v580_v7  ;;  %vm637_vm6 = vmor %vm635_vm4, %vm636_vm5  ;;  %vm665_vm7 = vweird.f32 %v580_v7 }
 0x109   : > { %v631_v12 = vmul.f32 %v962_v6, %v630_v11  ;;  %v1337_v11 = vsub.f32 %v1185_v60, %v474_v4 }
 0x10b   : > { %v632_v13 = vmul.f32 0.5, %v631_v12  ;;  %v541_v14 = vpop.xlane.xlu2 %540  ;;  %v506_v60 = vmul.f32 %v1337_v11, %v1337_v11 }
 0x10c   : > { %v567_v15 = vmul.f32 %v541_v14, %v1165_v46 }
 0x10d   : > { %v633_v17 = vsub.f32 1.5, %v632_v13 }
 0x10e   : > { %v964_v18 = vpop.eup %963  ;;  %v583_v19 = vadd.f32 1e-05, %v567_v15 }
 0x10f   : > { %v634_v20 = vmul.f32 %v962_v6, %v633_v17  ;;  %v660_v21 = vmul.f32 %v964_v18, %v580_v7  ;;  %vm666_vm8 = vweird.f32 %v964_v18 }
 0x110   : > { %965 = vrsqrt.f32 %v583_v19  ;;  %vm667_vm9 = vmor %vm665_vm7, %vm666_vm8  ;;  %vm695_vm10 = vweird.f32 %v583_v19 }
 0x111   : > { %v638_v24 = vsel %vm637_vm6, %v962_v6, %v634_v20  ;;  %v661_v29 = vmul.f32 %v964_v18, %v660_v21  ;;  %v1330_v6 = vsub.f32 %v1161_v37, %v475_v0  ;;  %v548_v21 = vsel %vm405_vm0, %v506_v60, 0.0 }
 0x112   : > { %v753_v32 = vmul.f32 %v638_v24, %v1169_v50 }
 0x113   : > { %v662_v33 = vmul.f32 0.5, %v661_v29  ;;  %v507_v15 = vmul.f32 %v1330_v6, %v1330_v6 }
 0x114   : > { %v772_v1 = vmul.f32 %v1283_v22, %v753_v32 }
 0x115   : > { %v663_v35 = vsub.f32 1.5, %v662_v33 }
 0x116   : > { %v966_v36 = vpop.eup %965  ;;  %v791_v40 = vadd.f32 %v1289_v30, %v772_v1 }
 0x117   : > { %v664_v41 = vmul.f32 %v964_v18, %v663_v35  ;;  %v690_v42 = vmul.f32 %v966_v36, %v583_v19  ;;  %vm696_vm11 = vweird.f32 %v966_v36  ;;  %v551_v19 = vsel %vm405_vm0, %v507_v15, 0.0 }
 0x118   : > { %807 = vst.msk [vmem:[%s1296_s16 + $0x20] sm:$0xff] %vm405_vm0, %v791_v40  ;;  %vm697_vm12 = vmor %vm695_vm10, %vm696_vm11 }
 0x119   : > { %v668_v50 = vsel %vm667_vm9, %v964_v18, %v664_v41  ;;  %v691_v43 = vmul.f32 %v966_v36, %v690_v42 }
 0x11a   : > { %v756_v44 = vmul.f32 %v668_v50, %v1176_v55 }
 0x11b   : > { %v692_v9 = vmul.f32 0.5, %v691_v43 }
 0x11c   : > { %v775_v47 = vmul.f32 %v1283_v22, %v756_v44 }
 0x11d   : > { %v693_v48 = vsub.f32 1.5, %v692_v9 }
 0x11e   : > { %v794_v49 = vadd.f32 %v1289_v30, %v775_v47 }
 0x11f   : > { %v694_v51 = vmul.f32 %v966_v36, %v693_v48 }
 0x120   : > { %810 = vst.msk [vmem:[%s1296_s16 + $0x38] sm:$0xff] %vm405_vm0, %v794_v49 }
 0x121   : > { %v698_v52 = vsel %vm697_vm12, %v966_v36, %v694_v51 }
 0x122   : > { %v759_v53 = vmul.f32 %v698_v52, %v1190_v62 }
 0x124   : > { %v778_v54 = vmul.f32 %v1283_v22, %v759_v53 }
 0x126   : > { %v797_v55 = vadd.f32 %v1289_v30, %v778_v54  ;;  %v408_v57 = vpop.xlane.xlu0 %407 }
 0x127   : > { %v461_v58 = vmul.f32 %v1165_v46, %v408_v57 }
 0x128   : > { %813 = vst.msk [vmem:[%s1296_s16 + $0x50] sm:$0xff] %vm405_vm0, %v797_v55 }
 0x129   : > { %v1313_v59 = vsub.f32 %v1199_v8, %v461_v58 }
 0x12b   : > { %v493_v61 = vmul.f32 %v1313_v59, %v1313_v59 }
 0x12d   : > { %v509_v63 = vsel %vm405_vm0, %v493_v61, 0.0 }
 0x12e   : > { %510 = vadd.xlane.f32.xlu1 %v509_v63  ;;  %v414_v62 = vpop.xlane.xlu1 %413  ;;  %v411_v28 = vpop.xlane.xlu0 %410 }
 0x12f   : > { %v463_v2 = vmul.f32 %v1165_v46, %v414_v62  ;;  %v462_v3 = vmul.f32 %v1165_v46, %v411_v28 }
 0x131   : > { %v1324_v8 = vsub.f32 %v1215_v26, %v463_v2  ;;  %v1327_v5 = vsub.f32 %v1217_v27, %v462_v3 }
 0x133   : > { %v495_v7 = vmul.f32 %v1324_v8, %v1324_v8  ;;  %v494_v31 = vmul.f32 %v1327_v5, %v1327_v5 }
 0x135   : > { %v515_v12 = vsel %vm405_vm0, %v495_v7, 0.0  ;;  %v512_v26 = vsel %vm405_vm0, %v494_v31, 0.0 }
 0x136   : > { %v520_v13 = vpop.xlane.xlu1 %519  ;;  %516 = vadd.xlane.f32.xlu0 %v515_v12  ;;  %513 = vadd.xlane.f32.xlu2 %v512_v26  ;;  %v453_v27 = vpop.xlane.xlu0 %452 }
 0x137   : > { %v560_v37 = vmul.f32 %v520_v13, %v1165_v46  ;;  %v476_v14 = vmul.f32 %v1165_v46, %v453_v27 }
 0x139   : > { %v576_v17 = vadd.f32 1e-05, %v560_v37  ;;  %v1346_v18 = vsub.f32 %v1230_v34, %v476_v14 }
 0x13b   : > { %967 = vrsqrt.f32 %v576_v17  ;;  %v508_v20 = vmul.f32 %v1346_v18, %v1346_v18  ;;  %vm625_vm13 = vweird.f32 %v576_v17 }
 0x13d   : > { %v554_v24 = vsel %vm405_vm0, %v508_v20, 0.0 }
 0x13e   : > { %v529_v29 = vpop.xlane.xlu1 %528  ;;  %552 = vadd.xlane.f32.xlu0 %v551_v19  ;;  %549 = vadd.xlane.f32.xlu2 %v548_v21  ;;  %v526_v32 = vpop.xlane.xlu0 %525 }
 0x13f   : > { %v563_v34 = vmul.f32 %v529_v29, %v1165_v46  ;;  %555 = vadd.xlane.f32.xlu1 %v554_v24  ;;  %v562_v33 = vmul.f32 %v526_v32, %v1165_v46 }
 0x141   : > { %v968_v1 = vpop.eup %967  ;;  %v579_v35 = vadd.f32 1e-05, %v563_v34  ;;  %v578_v36 = vadd.f32 1e-05, %v562_v33 }
 0x142   : > { %v620_v40 = vmul.f32 %v968_v1, %v576_v17  ;;  %vm626_vm14 = vweird.f32 %v968_v1 }
 0x143   : > { %969 = vrsqrt.f32 %v579_v35  ;;  %vm627_vm15 = vmor %vm625_vm13, %vm626_vm14  ;;  %vm655_vm1 = vweird.f32 %v579_v35  ;;  %vm645_vm3 = vweird.f32 %v578_v36 }
 0x144   : > { %v621_v41 = vmul.f32 %v968_v1, %v620_v40  ;;  %971 = vrsqrt.f32 %v578_v36 }
 0x146   : > { %v622_v42 = vmul.f32 0.5, %v621_v41  ;;  %v538_v50 = vpop.xlane.xlu1 %537  ;;  %v535_v43 = vpop.xlane.xlu0 %534 }
 0x147   : > { %v566_v44 = vmul.f32 %v538_v50, %v1165_v46  ;;  %v565_v9 = vmul.f32 %v535_v43, %v1165_v46 }
 0x148   : > { %v623_v47 = vsub.f32 1.5, %v622_v42 }
 0x149   : > { %v970_v48 = vpop.eup %969  ;;  %v582_v49 = vadd.f32 1e-05, %v566_v44  ;;  %v581_v51 = vadd.f32 1e-05, %v565_v9 }
 0x14a   : > { %v972_v52 = vpop.eup %971  ;;  %v624_v53 = vmul.f32 %v968_v1, %v623_v47  ;;  %v650_v54 = vmul.f32 %v970_v48, %v579_v35  ;;  %vm656_vm2 = vweird.f32 %v970_v48 }
 0x14b   : > { %v640_v16 = vmul.f32 %v972_v52, %v578_v36  ;;  %973 = vrsqrt.f32 %v582_v49  ;;  %vm646_vm4 = vweird.f32 %v972_v52  ;;  %vm657_vm5 = vmor %vm655_vm1, %vm656_vm2  ;;  %vm685_vm7 = vweird.f32 %v582_v49 }
 0x14c   : > { %v628_v55 = vsel %vm627_vm15, %v968_v1, %v624_v53  ;;  %v651_v57 = vmul.f32 %v970_v48, %v650_v54  ;;  %975 = vrsqrt.f32 %v581_v51  ;;  %vm647_vm6 = vmor %vm645_vm3, %vm646_vm4  ;;  %vm675_vm9 = vweird.f32 %v581_v51 }
 0x14d   : > { %v752_v58 = vmul.f32 %v628_v55, %v1213_v25  ;;  %v641_v61 = vmul.f32 %v972_v52, %v640_v16 }
 0x14e   : > { %v652_v63 = vmul.f32 0.5, %v651_v57  ;;  %v547_v62 = vpop.xlane.xlu1 %546  ;;  %v544_v28 = vpop.xlane.xlu0 %543 }
 0x14f   : > { %v771_v0 = vmul.f32 %v1283_v22, %v752_v58  ;;  %v642_v2 = vmul.f32 0.5, %v641_v61  ;;  %v569_v3 = vmul.f32 %v547_v62, %v1165_v46  ;;  %v568_v4 = vmul.f32 %v544_v28, %v1165_v46 }
 0x150   : > { %v653_v7 = vsub.f32 1.5, %v652_v63 }
 0x151   : > { %v974_v31 = vpop.eup %973  ;;  %v790_v25 = vadd.f32 %v1289_v30, %v771_v0  ;;  %v643_v12 = vsub.f32 1.5, %v642_v2  ;;  %v585_v26 = vadd.f32 1e-05, %v569_v3  ;;  %v584_v13 = vadd.f32 1e-05, %v568_v4 }
 0x152   : > { %v976_v27 = vpop.eup %975  ;;  %v654_v37 = vmul.f32 %v970_v48, %v653_v7  ;;  %v680_v14 = vmul.f32 %v974_v31, %v582_v49  ;;  %vm686_vm8 = vweird.f32 %v974_v31 }
 0x153   : > { %806 = vst.msk [vmem:[%s1296_s16 + $0x18] sm:$0xff] %vm405_vm0, %v790_v25  ;;  %v644_v15 = vmul.f32 %v972_v52, %v643_v12  ;;  %v670_v17 = vmul.f32 %v976_v27, %v581_v51  ;;  %977 = vrsqrt.f32 %v585_v26  ;;  %vm676_vm10 = vweird.f32 %v976_v27  ;;  %vm687_vm11 = vmor %vm685_vm7, %vm686_vm8 }
 0x154   : > { %v658_v60 = vsel %vm657_vm5, %v970_v48, %v654_v37  ;;  %v681_v19 = vmul.f32 %v974_v31, %v680_v14  ;;  %979 = vrsqrt.f32 %v584_v13  ;;  %vm677_vm12 = vmor %vm675_vm9, %vm676_vm10  ;;  %vm715_vm13 = vweird.f32 %v585_v26 }
 0x155   : > { %v755_v20 = vmul.f32 %v658_v60, %v1233_v38  ;;  %v648_v21 = vsel %vm647_vm6, %v972_v52, %v644_v15  ;;  %v671_v24 = vmul.f32 %v976_v27, %v670_v17  ;;  %vm705_vm15 = vweird.f32 %v584_v13 }
 0x156   : > { %v754_v29 = vmul.f32 %v648_v21, %v1236_v39  ;;  %v682_v32 = vmul.f32 0.5, %v681_v19 }
 0x157   : > { %v774_v34 = vmul.f32 %v1283_v22, %v755_v20  ;;  %v672_v33 = vmul.f32 0.5, %v671_v24 }
 0x158   : > { %v773_v1 = vmul.f32 %v1283_v22, %v754_v29  ;;  %v683_v35 = vsub.f32 1.5, %v682_v32 }
 0x159   : > { %v978_v36 = vpop.eup %977  ;;  %v793_v38 = vadd.f32 %v1289_v30, %v774_v34  ;;  %v673_v40 = vsub.f32 1.5, %v672_v33 }
 0x15a   : > { %v980_v41 = vpop.eup %979  ;;  %v792_v39 = vadd.f32 %v1289_v30, %v773_v1  ;;  %v684_v42 = vmul.f32 %v974_v31, %v683_v35  ;;  %v710_v50 = vmul.f32 %v978_v36, %v585_v26  ;;  %vm716_vm14 = vweird.f32 %v978_v36 }
 0x15b   : > { %809 = vst.msk [vmem:[%s1296_s16 + $0x30] sm:$0xff] %vm405_vm0, %v793_v38  ;;  %v674_v43 = vmul.f32 %v976_v27, %v673_v40  ;;  %v700_v44 = vmul.f32 %v980_v41, %v584_v13  ;;  %vm706_vm1 = vweird.f32 %v980_v41  ;;  %vm717_vm2 = vmor %vm715_vm13, %vm716_vm14 }
 0x15c   : > { %808 = vst.msk [vmem:[%s1296_s16 + $0x28] sm:$0xff] %vm405_vm0, %v792_v39  ;;  %v688_v9 = vsel %vm687_vm11, %v974_v31, %v684_v42  ;;  %v711_v47 = vmul.f32 %v978_v36, %v710_v50  ;;  %vm707_vm3 = vmor %vm705_vm15, %vm706_vm1 }
 0x15d   : > { %v758_v48 = vmul.f32 %v688_v9, %v1248_v10  ;;  %v678_v49 = vsel %vm677_vm12, %v976_v27, %v674_v43  ;;  %v701_v51 = vmul.f32 %v980_v41, %v700_v44 }
 0x15e   : > { %v757_v52 = vmul.f32 %v678_v49, %v1251_v45  ;;  %v712_v53 = vmul.f32 0.5, %v711_v47 }
 0x15f   : > { %v777_v54 = vmul.f32 %v1283_v22, %v758_v48  ;;  %v702_v16 = vmul.f32 0.5, %v701_v51 }
 0x160   : > { %v776_v55 = vmul.f32 %v1283_v22, %v757_v52  ;;  %v713_v57 = vsub.f32 1.5, %v712_v53 }
 0x161   : > { %v796_v58 = vadd.f32 %v1289_v30, %v777_v54  ;;  %v703_v10 = vsub.f32 1.5, %v702_v16 }
 0x162   : > { %v795_v45 = vadd.f32 %v1289_v30, %v776_v55  ;;  %v714_v61 = vmul.f32 %v978_v36, %v713_v57 }
 0x163   : > { %812 = vst.msk [vmem:[%s1296_s16 + $0x48] sm:$0xff] %vm405_vm0, %v796_v58  ;;  %v704_v63 = vmul.f32 %v980_v41, %v703_v10 }
 0x164   : > { %811 = vst.msk [vmem:[%s1296_s16 + $0x40] sm:$0xff] %vm405_vm0, %v795_v45  ;;  %v718_v62 = vsel %vm717_vm2, %v978_v36, %v714_v61 }
 0x165   : > { %v761_v28 = vmul.f32 %v718_v62, %v1262_v23  ;;  %v708_v0 = vsel %vm707_vm3, %v980_v41, %v704_v63 }
 0x166   : > { %v760_v2 = vmul.f32 %v708_v0, %v1265_v56 }
 0x167   : > { %v780_v3 = vmul.f32 %v1283_v22, %v761_v28 }
 0x168   : > { %v779_v4 = vmul.f32 %v1283_v22, %v760_v2 }
 0x169   : > { %v799_v7 = vadd.f32 %v1289_v30, %v780_v3 }
 0x16a   : > { %v798_v31 = vadd.f32 %v1289_v30, %v779_v4 }
 0x16b   : > { %815 = vst.msk [vmem:[%s1296_s16 + $0x60] sm:$0xff] %vm405_vm0, %v799_v7 }
 0x16c   : > { %814 = vst.msk [vmem:[%s1296_s16 + $0x58] sm:$0xff] %vm405_vm0, %v798_v31 }
 0x1a1   : > { %v511_v25 = vpop.xlane.xlu1 %510 }
 0x1a2   : > { %v557_v12 = vmul.f32 %v511_v25, %v1165_v46 }
 0x1a4   : > { %v573_v26 = vadd.f32 1e-05, %v557_v12 }
 0x1a6   : > { %981 = vrsqrt.f32 %v573_v26  ;;  %vm595_vm5 = vweird.f32 %v573_v26 }
 0x1a9   : > { %v514_v23 = vpop.xlane.xlu2 %513  ;;  %v517_v13 = vpop.xlane.xlu0 %516 }
 0x1aa   : > { %v558_v56 = vmul.f32 %v514_v23, %v1165_v46  ;;  %v559_v27 = vmul.f32 %v517_v13, %v1165_v46 }
 0x1ac   : > { %v982_v37 = vpop.eup %981  ;;  %v574_v14 = vadd.f32 1e-05, %v558_v56  ;;  %v575_v15 = vadd.f32 1e-05, %v559_v27 }
 0x1ad   : > { %v590_v17 = vmul.f32 %v982_v37, %v573_v26  ;;  %vm596_vm4 = vweird.f32 %v982_v37 }
 0x1ae   : > { %983 = vrsqrt.f32 %v574_v14  ;;  %vm597_vm6 = vmor %vm595_vm5, %vm596_vm4  ;;  %vm605_vm9 = vweird.f32 %v574_v14  ;;  %vm615_vm11 = vweird.f32 %v575_v15 }
 0x1af   : > { %v591_v60 = vmul.f32 %v982_v37, %v590_v17  ;;  %985 = vrsqrt.f32 %v575_v15 }
 0x1b1   : > { %v592_v19 = vmul.f32 0.5, %v591_v60  ;;  %v550_v20 = vpop.xlane.xlu2 %549  ;;  %v553_v21 = vpop.xlane.xlu0 %552 }
 0x1b2   : > { %v570_v24 = vmul.f32 %v550_v20, %v1165_v46  ;;  %v556_v29 = vpop.xlane.xlu1 %555  ;;  %v571_v32 = vmul.f32 %v553_v21, %v1165_v46 }
 0x1b3   : > { %v593_v34 = vsub.f32 1.5, %v592_v19  ;;  %v572_v33 = vmul.f32 %v556_v29, %v1165_v46 }
 0x1b4   : > { %v984_v1 = vpop.eup %983  ;;  %v586_v35 = vadd.f32 1e-05, %v570_v24  ;;  %v1405_v36 = vadd.f32 1e-05, %v571_v32 }
 0x1b5   : > { %v986_v38 = vpop.eup %985  ;;  %v594_v40 = vmul.f32 %v982_v37, %v593_v34  ;;  %v600_v41 = vmul.f32 %v984_v1, %v574_v14  ;;  %v588_v39 = vadd.f32 1e-05, %v572_v33  ;;  %vm606_vm7 = vweird.f32 %v984_v1 }
 0x1b6   : > { %v610_v42 = vmul.f32 %v986_v38, %v575_v15  ;;  %987 = vrsqrt.f32 %v586_v35  ;;  %vm616_vm8 = vweird.f32 %v986_v38  ;;  %vm607_vm10 = vmor %vm605_vm9, %vm606_vm7  ;;  %vm725_vm14 = vweird.f32 %v586_v35 }
 0x1b7   : > { %v598_v50 = vsel %vm597_vm6, %v982_v37, %v594_v40  ;;  %v601_v43 = vmul.f32 %v984_v1, %v600_v41  ;;  %989 = vrsqrt.f32 %v588_v39  ;;  %vm617_vm12 = vmor %vm615_vm11, %vm616_vm8  ;;  %vm745_vm3 = vweird.f32 %v588_v39 }
 0x1b8   : > { %v749_v44 = vmul.f32 %v598_v50, %v1313_v59  ;;  %v611_v9 = vmul.f32 %v986_v38, %v610_v42  ;;  %991 = vrsqrt.f32 %v1405_v36  ;;  %vm735_vm5 = vweird.f32 %v1405_v36 }
 0x1b9   : > { %v602_v46 = vmul.f32 0.5, %v601_v43 }
 0x1ba   : > { %v768_v47 = vmul.f32 %v1283_v22, %v749_v44  ;;  %v612_v48 = vmul.f32 0.5, %v611_v9 }
 0x1bb   : > { %v603_v49 = vsub.f32 1.5, %v602_v46 }
 0x1bc   : > { %v988_v51 = vpop.eup %987  ;;  %v787_v52 = vadd.f32 %v1289_v30, %v768_v47  ;;  %v613_v53 = vsub.f32 1.5, %v612_v48 }
 0x1bd   : > { %v990_v54 = vpop.eup %989  ;;  %v604_v16 = vmul.f32 %v984_v1, %v603_v49  ;;  %v720_v55 = vmul.f32 %v988_v51, %v586_v35  ;;  %vm726_vm13 = vweird.f32 %v988_v51 }
 0x1be   : > { %v992_v59 = vpop.eup %991  ;;  %803 = vst.msk [vmem:[%s1296_s16] sm:$0xff] %vm405_vm0, %v787_v52  ;;  %v614_v57 = vmul.f32 %v986_v38, %v613_v53  ;;  %v740_v58 = vmul.f32 %v990_v54, %v588_v39  ;;  %vm746_vm15 = vweird.f32 %v990_v54  ;;  %vm727_vm2 = vmor %vm725_vm14, %vm726_vm13 }
 0x1bf   : > { %v608_v10 = vsel %vm607_vm10, %v984_v1, %v604_v16  ;;  %v721_v45 = vmul.f32 %v988_v51, %v720_v55  ;;  %v730_v61 = vmul.f32 %v992_v59, %v1405_v36  ;;  %vm736_vm1 = vweird.f32 %v992_v59  ;;  %vm747_vm4 = vmor %vm745_vm3, %vm746_vm15 }
 0x1c0   : > { %v750_v63 = vmul.f32 %v608_v10, %v1327_v5  ;;  %v618_v62 = vsel %vm617_vm12, %v986_v38, %v614_v57  ;;  %v741_v28 = vmul.f32 %v990_v54, %v740_v58  ;;  %vm737_vm6 = vmor %vm735_vm5, %vm736_vm1 }
 0x1c1   : > { %v751_v0 = vmul.f32 %v618_v62, %v1324_v8  ;;  %v722_v2 = vmul.f32 0.5, %v721_v45  ;;  %v731_v3 = vmul.f32 %v992_v59, %v730_v61 }
 0x1c2   : > { %v769_v4 = vmul.f32 %v1283_v22, %v750_v63  ;;  %v742_v7 = vmul.f32 0.5, %v741_v28 }
 0x1c3   : > { %v770_v31 = vmul.f32 %v1283_v22, %v751_v0  ;;  %v723_v25 = vsub.f32 1.5, %v722_v2  ;;  %v732_v12 = vmul.f32 0.5, %v731_v3 }
 0x1c4   : > { %v788_v26 = vadd.f32 %v1289_v30, %v769_v4  ;;  %v743_v5 = vsub.f32 1.5, %v742_v7 }
 0x1c5   : > { %v789_v23 = vadd.f32 %v1289_v30, %v770_v31  ;;  %v724_v8 = vmul.f32 %v988_v51, %v723_v25  ;;  %v733_v13 = vsub.f32 1.5, %v732_v12 }
 0x1c6   : > { %804 = vst.msk [vmem:[%s1296_s16 + $0x8] sm:$0xff] %vm405_vm0, %v788_v26  ;;  %v744_v56 = vmul.f32 %v990_v54, %v743_v5 }
 0x1c7   : > { %805 = vst.msk [vmem:[%s1296_s16 + $0x10] sm:$0xff] %vm405_vm0, %v789_v23  ;;  %v728_v27 = vsel %vm727_vm2, %v988_v51, %v724_v8  ;;  %v734_v37 = vmul.f32 %v992_v59, %v733_v13 }
 0x1c8   : > { %v762_v14 = vmul.f32 %v728_v27, %v1337_v11  ;;  %v748_v15 = vsel %vm747_vm4, %v990_v54, %v744_v56 }
 0x1c9   : > { %v764_v17 = vmul.f32 %v748_v15, %v1346_v18  ;;  %v738_v60 = vsel %vm737_vm6, %v992_v59, %v734_v37 }
 0x1ca   : > { %v781_v19 = vmul.f32 %v1283_v22, %v762_v14  ;;  %v763_v20 = vmul.f32 %v738_v60, %v1330_v6 }
 0x1cb   : > { %v783_v21 = vmul.f32 %v1283_v22, %v764_v17 }
 0x1cc   : > { %v800_v24 = vadd.f32 %v1289_v30, %v781_v19  ;;  %v782_v29 = vmul.f32 %v1283_v22, %v763_v20 }
 0x1cd   : > { %v802_v32 = vadd.f32 %v1289_v30, %v783_v21 }
 0x1ce   : > { %816 = vst.msk [vmem:[%s1296_s16 + $0x68] sm:$0xff] %vm405_vm0, %v800_v24  ;;  %v801_v11 = vadd.f32 %v1289_v30, %v782_v29 }
 0x1cf   : > { %818 = vst.msk [vmem:[%s1296_s16 + $0x78] sm:$0xff] %vm405_vm0, %v802_v32 }
 0x1d0   : > { %817 = vst.msk [vmem:[%s1296_s16 + $0x70] sm:$0xff] %vm405_vm0, %v801_v11 }
 0x1d1 PF: > { %s15_s18 = sadd.s32 1, %s999_s18  }
 0x1d2   : > { %p12_p4 = scmp.ge.s32.totalorder %s15_s18, 4  }
 0x1d4   :  { %14 = sbr.rel (!%p12_p4) target bundleno = 1 (0x1), region = 70 }

// kernel: image_clip_forward.4
= control target key start
LH: loop header
LB: loop body
LE: loop exit
PB: predicated region body
PF: predicated region fallthrough
CT: control target
= control target key end

     0   :  { %s5058_s25 = smov 0   ;;  %s5060_s26 = smov 0   ;;  %s7324_s0 = inlined_call_operand.vmem [shape: f32[2,128,32], index: 0, kind: input, shape index: {}]   ;;  %s7325_s1 = inlined_call_operand.vmem [shape: f32[2,1,32], index: 1, kind: input, shape index: {}]   ;;  %s7326_s2 = inlined_call_operand.vmem [shape: f32[2,1,32], index: 2, kind: input, shape index: {}]   ;;  %s7327_s3 = inlined_call_operand.vmem [shape: bf16[2,32,96], index: 3, kind: input, shape index: {}]   ;;  %s7328_s4 = inlined_call_operand.vmem [shape: f32[2,1,96], index: 4, kind: input, shape index: {}]   ;;  %s7329_s5 = inlined_call_operand.vmem [shape: bf16[2,32,32], index: 5, kind: input, shape index: {}]   ;;  %s7330_s6 = inlined_call_operand.vmem [shape: f32[2,1,32], index: 6, kind: input, shape index: {}]   ;;  %s7331_s7 = inlined_call_operand.vmem [shape: f32[2,1,32], index: 7, kind: input, shape index: {}]   ;;  %s7332_s8 = inlined_call_operand.vmem [shape: f32[2,1,32], index: 8, kind: input, shape index: {}]   ;;  %s7333_s9 = inlined_call_operand.vmem [shape: bf16[2,32,128], index: 9, kind: input, shape index: {}]   ;;  %s7334_s10 = inlined_call_operand.vmem [shape: f32[2,1,128], index: 10, kind: input, shape index: {}]   ;;  %s7335_s11 = inlined_call_operand.vmem [shape: bf16[2,128,32], index: 11, kind: input, shape index: {}]   ;;  %s7336_s12 = inlined_call_operand.vmem [shape: f32[2,1,32], index: 12, kind: input, shape index: {}]   ;;  %s7337_s13 = inlined_call_operand.vmem [shape: f32[2,128,32], index: 13, kind: output, shape index: {}]  }
   0x1   :  { %7352 = sst [smem:[#allocation28_spill]] %s7324_s0  ;;  %s5062_s27 = smov 0  }
   0x2   :  { %7353 = sst [smem:[#allocation29_spill]] %s7326_s2  ;;  %s5064_s28 = smov 0  }
   0x3   :  { %7354 = sst [smem:[#allocation30_spill]] %s7327_s3  ;;  %s5066_s29 = smov 0  }
   0x4   :  { %7355 = sst [smem:[#allocation31_spill]] %s7329_s5 }
   0x5 LB: > { %7356 = sst [smem:[#allocation2_spill]] %s4954_s25  ;;  %s32_s30 = sadd.s32 1, %s4962_s27  ;;  %s4970_s29 = sphi %s5066_s29, %s23_s29   ;;  %s4966_s28 = sphi %s5064_s28, %s7432_s28   ;;  %s4962_s27 = sphi %s5062_s27, %s7431_s27   ;;  %s4958_s26 = sphi %s5060_s26, %s7430_s26   ;;  %s4954_s25 = sphi %s5058_s25, %s7429_s25  }
   0x6   : > { %7357 = sst [smem:[#allocation3_spill]] %s4962_s27  ;;  %s35_s14 = sadd.s32 1, %s4966_s28 }
   0x7   : > { %7358 = sst [smem:[#allocation4_spill]] %s4966_s28  ;;  %p33_p0 = scmp.ge.s32.totalorder %s32_s30, 2 }
   0x8   : > { %7359 = sst [smem:[#allocation5_spill]] %s4970_s29  ;;  %p4172_p1 = scmp.ge.s32.totalorder %s4970_s29, 1 }
   0x9   : > { %p503_p2 = scmp.lt.s32.totalorder %s4970_s29, 5  ;;  %s7434_s30 = smov (%p33_p0, %s32_s30), 0 }
   0xa   : > { %7360 = sst [smem:[#allocation6_spill]] %s7434_s30  ;;  %s7436_s14 = smov (!%p33_p0, %s35_s14), %s4966_s28 }
   0xb   : > { %p504_p3 = pnand %p4172_p1, %p503_p2  ;;  %p37_p4 = scmp.ge.s32.totalorder %s7436_s14, 2 }
   0xd   : > { %s7438_s14 = smov (%p37_p4, %s7436_s14), 0  ;;  %507 = sbr.rel (%p504_p3) target bundleno = 3263 (0xcbf), region = 72 }
   0xe   : > { %7361 = sst [smem:[#allocation7_spill]] %s7438_s14 }
  0x12   : > { %p591_p5 = scmp.lt.s32.totalorder %s4958_s26, 1  ;;  %p596_p6 = scmp.lt.s32.totalorder %s4954_s25, 1 }
  0x13   : > { %s7362_s0 = sld [smem:[#allocation28_spill]] }
  0x14   : > { %s7440_s26 = smov (!%p591_p5, %s4958_s26), 1  ;;  %s7365_s3 = sld [smem:[#allocation30_spill]] }
  0x15   : > { %s5092_s15 = scalar_select %p596_p6, %s4954_s25, 1 }
  0x16   : > { %s4316_s16 = sshll.u32 %s7440_s26, 7  ;;  %s7366_s5 = sld [smem:[#allocation31_spill]] }
  0x17   : > { %s4317_s30 = sshll.u32 %s5092_s15, 4  ;;  %s631_s17 = scalar_lea.vmem %s7334_s10, %s5092_s15 }
  0x18   : > { %s5137_s26 = scalar_lea.vmem %s7333_s9, %s4317_s30  ;;  %s639_s23 = scalar_lea.vmem %s7336_s12, %s5092_s15 }
  0x19   : > { %s5097_s19 = scalar_lea.vmem %s7362_s0, %s4316_s16  ;;  %s5156_s2 = scalar_lea.vmem %s7337_s13, %s4316_s16 }
  0x1a   : > { %7363 = sst [smem:[#allocation8_spill]] %s5097_s19  ;;  %s5111_s29 = scalar_lea.vmem %s7365_s3, %s4317_s30 }
  0x1b   : > { %s623_s3 = scalar_lea.vmem %s7332_s8, %s5092_s15 }
  0x1c   : > { %s5120_s19 = scalar_lea.vmem %s7366_s5, %s4317_s30  ;;  %s4320_s5 = sshll.u32 %s5092_s15, 6 }
  0x1d   : > { %s5151_s22 = scalar_lea.vmem %s7335_s11, %s4320_s5  ;;  %s7367_s30 = sld [smem:[#allocation2_spill]] }
  0x23   : > { %p4185_p7 = scmp.ne.s32.totalorder %s7367_s30, 0 }
  0x24   : > { %s7368_s25 = sld [smem:[#allocation8_spill]] (!%p4185_p7) }
  0x25   : > { %649 = sbr.rel (%p4185_p7) target bundleno = 59 (0x3b), region = 76 }
  0x2a   : > { %v650_v0 = vld [vmem:[%s7368_s25] sm:$0xff]  ;;  %vm666_vm0 = vcmask 261120   ;;  %v651_v1 = vld [vmem:[%s7368_s25 + $0x8] sm:$0xff]  ;;  %v652_v2 = vld [vmem:[%s7368_s25 + $0x10] sm:$0xff] }
  0x2b   : > { %667 = vst.msk [vmem:[%s5156_s2] sm:$0xff] %vm666_vm0, %v650_v0  ;;  %v653_v3 = vld [vmem:[%s7368_s25 + $0x18] sm:$0xff]  ;;  %v654_v4 = vld [vmem:[%s7368_s25 + $0x20] sm:$0xff]  ;;  %v655_v5 = vld [vmem:[%s7368_s25 + $0x28] sm:$0xff] }
  0x2c   : > { %668 = vst.msk [vmem:[%s5156_s2 + $0x8] sm:$0xff] %vm666_vm0, %v651_v1  ;;  %v656_v6 = vld [vmem:[%s7368_s25 + $0x30] sm:$0xff]  ;;  %v657_v7 = vld [vmem:[%s7368_s25 + $0x38] sm:$0xff]  ;;  %v658_v8 = vld [vmem:[%s7368_s25 + $0x40] sm:$0xff] }
  0x2d   : > { %669 = vst.msk [vmem:[%s5156_s2 + $0x10] sm:$0xff] %vm666_vm0, %v652_v2  ;;  %v659_v9 = vld [vmem:[%s7368_s25 + $0x48] sm:$0xff]  ;;  %v660_v10 = vld [vmem:[%s7368_s25 + $0x50] sm:$0xff]  ;;  %v661_v11 = vld [vmem:[%s7368_s25 + $0x58] sm:$0xff] }
  0x2e   : > { %670 = vst.msk [vmem:[%s5156_s2 + $0x18] sm:$0xff] %vm666_vm0, %v653_v3  ;;  %v662_v12 = vld [vmem:[%s7368_s25 + $0x60] sm:$0xff]  ;;  %v663_v13 = vld [vmem:[%s7368_s25 + $0x68] sm:$0xff]  ;;  %v664_v14 = vld [vmem:[%s7368_s25 + $0x70] sm:$0xff] }
  0x2f   : > { %671 = vst.msk [vmem:[%s5156_s2 + $0x20] sm:$0xff] %vm666_vm0, %v654_v4  ;;  %v665_v15 = vld [vmem:[%s7368_s25 + $0x78] sm:$0xff] }
  0x30   : > { %672 = vst.msk [vmem:[%s5156_s2 + $0x28] sm:$0xff] %vm666_vm0, %v655_v5 }
  0x31   : > { %673 = vst.msk [vmem:[%s5156_s2 + $0x30] sm:$0xff] %vm666_vm0, %v656_v6 }
  0x32   : > { %674 = vst.msk [vmem:[%s5156_s2 + $0x38] sm:$0xff] %vm666_vm0, %v657_v7 }
  0x33   : > { %675 = vst.msk [vmem:[%s5156_s2 + $0x40] sm:$0xff] %vm666_vm0, %v658_v8 }
  0x34   : > { %676 = vst.msk [vmem:[%s5156_s2 + $0x48] sm:$0xff] %vm666_vm0, %v659_v9 }
  0x35   : > { %677 = vst.msk [vmem:[%s5156_s2 + $0x50] sm:$0xff] %vm666_vm0, %v660_v10 }
  0x36   : > { %678 = vst.msk [vmem:[%s5156_s2 + $0x58] sm:$0xff] %vm666_vm0, %v661_v11 }
  0x37   : > { %679 = vst.msk [vmem:[%s5156_s2 + $0x60] sm:$0xff] %vm666_vm0, %v662_v12 }
  0x38   : > { %680 = vst.msk [vmem:[%s5156_s2 + $0x68] sm:$0xff] %vm666_vm0, %v663_v13 }
  0x39   : > { %681 = vst.msk [vmem:[%s5156_s2 + $0x70] sm:$0xff] %vm666_vm0, %v664_v14 }
  0x3a   : > { %682 = vst.msk [vmem:[%s5156_s2 + $0x78] sm:$0xff] %vm666_vm0, %v665_v15 }
  0x3b PF: > { %v685_v16 = vld [vmem:[%s5156_s2 + $0x10] sm:$0xff]  ;;  %vm701_vm1 = vcmask 261120   ;;  %v683_v17 = vld [vmem:[%s5156_s2] sm:$0xff]  ;;  %v686_v21 = vld [vmem:[%s5156_s2 + $0x18] sm:$0xff]  ;;  %v4972_v30 = vmov 32.0   ;;  %s7372_s16 = scalar_lea.vmem %s7325_s1, %s5092_s15  ;;  %s7373_s20 = sld [smem:[#allocation29_spill]] }
  0x3c   : > { %v708_v18 = vsel %vm701_vm1, %v685_v16, 0.0  ;;  %v702_v19 = vsel %vm701_vm1, %v683_v17, 0.0  ;;  %v687_v20 = vld [vmem:[%s5156_s2 + $0x20] sm:$0xff]  ;;  %v684_v23 = vld [vmem:[%s5156_s2 + $0x8] sm:$0xff]  ;;  %v711_v25 = vsel %vm701_vm1, %v686_v21, 0.0  ;;  %v689_v28 = vld [vmem:[%s5156_s2 + $0x30] sm:$0xff]  ;;  %4530 = vrcp.f32 %v4972_v30  ;;  %s7379_s27 = scalar_lea.vmem %s7328_s4, %s5092_s15 }
  0x3d   : > { %709 = vadd.xlane.f32.xlu1 %v708_v18  ;;  %703 = vadd.xlane.f32.xlu0 %v702_v19  ;;  %v714_v22 = vsel %vm701_vm1, %v687_v20, 0.0  ;;  %v688_v24 = vld [vmem:[%s5156_s2 + $0x28] sm:$0xff]  ;;  %v705_v26 = vsel %vm701_vm1, %v684_v23, 0.0  ;;  %v720_v29 = vsel %vm701_vm1, %v689_v28, 0.0  ;;  %v5234_v50 = vld [vmem:[%s5156_s2 + $0x38] sm:$0xff]  ;;  %v5256_v63 = vld [vmem:[%s5156_s2 + $0x40] sm:$0xff] }
  0x3e   : > { %715 = vadd.xlane.f32.xlu2 %v714_v22  ;;  %v717_v27 = vsel %vm701_vm1, %v688_v24, 0.0  ;;  %v723_v56 = vsel %vm701_vm1, %v5234_v50, 0.0  ;;  %v726_v3 = vsel %vm701_vm1, %v5256_v63, 0.0  ;;  %v5270_v8 = vld [vmem:[%s5156_s2 + $0x58] sm:$0xff]  ;;  %v5273_v9 = vld [vmem:[%s5156_s2 + $0x48] sm:$0xff]  ;;  %v5285_v15 = vld [vmem:[%s5156_s2 + $0x60] sm:$0xff] }
  0x3f   : > { %v735_v11 = vsel %vm701_vm1, %v5270_v8, 0.0  ;;  %v729_v13 = vsel %vm701_vm1, %v5273_v9, 0.0  ;;  %s4973_s28 = smov 96   ;;  %s4974_s30 = smov 88  }
  0x40   : > { %v5301_v22 = vld [vmem:[%s5156_s2 + $0x70] sm:$0xff]  ;;  %s4975_s25 = smov 64   ;;  %s4976_s5 = smov 120  }
  0x41   : > { %s7374_s21 = scalar_lea.vmem %s7373_s20, %s5092_s15  ;;  %s4979_s0 = smov 112  }
  0x42   : > { %v4531_v31 = vpop.eup %4530  ;;  %s4980_s18 = smov 104   ;;  %s4981_s20 = smov 56  }
  0x43   : > { %v751_v32 = vmul.f32 32.0, %v4531_v31  ;;  %vm755_vm2 = vweird.f32 %v4531_v31  ;;  %s4984_s14 = smov 48   ;;  %s4985_s24 = smov 8  }
  0x45   : > { %712 = vadd.xlane.f32.xlu1 %v711_v25  ;;  %706 = vadd.xlane.f32.xlu0 %v705_v26  ;;  %v752_v33 = vsub.f32 1.0, %v751_v32  ;;  %v4323_v25 = vld [vmem:[%s5111_s29 + $0x8] sm:$0xff] }
  0x46   : > { %718 = vadd.xlane.f32.xlu2 %v717_v27  ;;  %1157 = vmatpush.bf16.msra.mxu0 %v4323_v25 }
  0x47   : > { %v753_v34 = vmul.f32 %v4531_v31, %v752_v33 }
  0x49   : > { %v754_v35 = vadd.f32 %v4531_v31, %v753_v34 }
  0x4b   : > { %v5221_v36 = vsel %vm755_vm2, %v4531_v31, %v754_v35 }
  0x4c   : > { %7369 = vst [vmem:[#allocation9_spill] sm:$0xff] %v5221_v36 }
  0x4e   : > { %721 = vadd.xlane.f32.xlu2 %v720_v29 }
  0xb0   : > { %v710_v37 = vpop.xlane.xlu1 %709  ;;  %v704_v38 = vpop.xlane.xlu0 %703 }
  0xb1   : > { %v757_v39 = vmul.f32 %v5221_v36, %v704_v38  ;;  %v716_v40 = vpop.xlane.xlu2 %715  ;;  %v759_v49 = vmul.f32 %v5221_v36, %v710_v37 }
  0xb2   : > { %v761_v48 = vmul.f32 %v5221_v36, %v716_v40 }
  0xb3   : > { %v5224_v41 = vsub.f32 %v683_v17, %v757_v39  ;;  %v5248_v58 = vsub.f32 %v685_v16, %v759_v49  ;;  %v5288_v16 = vld [vmem:[%s5156_s2 + $0x50] sm:$0xff]  ;;  %v738_v17 = vsel %vm701_vm1, %v5285_v15, 0.0 }
  0xb4   : > { %v5240_v54 = vsub.f32 %v687_v20, %v761_v48  ;;  %v732_v19 = vsel %vm701_vm1, %v5288_v16, 0.0  ;;  %v5296_v20 = vld [vmem:[%s5156_s2 + $0x68] sm:$0xff] }
  0xb5   : > { %v789_v42 = vmul.f32 %v5224_v41, %v5224_v41  ;;  %v791_v0 = vmul.f32 %v5248_v58, %v5248_v58 }
  0xb6   : > { %v793_v62 = vmul.f32 %v5240_v54, %v5240_v54 }
  0xb7   : > { %v805_v43 = vsel %vm701_vm1, %v789_v42, 0.0  ;;  %v811_v4 = vsel %vm701_vm1, %v791_v0, 0.0 }
  0xb8   : > { %v713_v44 = vpop.xlane.xlu1 %712  ;;  %806 = vadd.xlane.f32.xlu0 %v805_v43  ;;  %v707_v45 = vpop.xlane.xlu0 %706  ;;  %v817_v2 = vsel %vm701_vm1, %v793_v62, 0.0 }
  0xb9   : > { %v760_v46 = vmul.f32 %v5221_v36, %v713_v44  ;;  %v758_v47 = vmul.f32 %v5221_v36, %v707_v45  ;;  %v719_v53 = vpop.xlane.xlu2 %718 }
  0xba   : > { %v762_v61 = vmul.f32 %v5221_v36, %v719_v53 }
  0xbb   : > { %v5236_v51 = vsub.f32 %v686_v21, %v760_v46  ;;  %v5238_v52 = vsub.f32 %v684_v23, %v758_v47  ;;  %v741_v21 = vsel %vm701_vm1, %v5296_v20, 0.0  ;;  %v744_v23 = vsel %vm701_vm1, %v5301_v22, 0.0 }
  0xbc   : > { %v5260_v1 = vsub.f32 %v688_v24, %v762_v61 }
  0xbd   : > { %v792_v55 = vmul.f32 %v5236_v51, %v5236_v51  ;;  %v790_v57 = vmul.f32 %v5238_v52, %v5238_v52 }
  0xbe   : > { %v794_v7 = vmul.f32 %v5260_v1, %v5260_v1 }
  0xbf   : > { %v814_v59 = vsel %vm701_vm1, %v792_v55, 0.0  ;;  %v808_v60 = vsel %vm701_vm1, %v790_v57, 0.0 }
  0xc0   : > { %815 = vadd.xlane.f32.xlu2 %v814_v59  ;;  %724 = vadd.xlane.f32.xlu0 %v723_v56  ;;  %v820_v12 = vsel %vm701_vm1, %v794_v7, 0.0 }
  0xc1   : > { %809 = vadd.xlane.f32.xlu1 %v808_v60  ;;  %v722_v5 = vpop.xlane.xlu2 %721 }
  0xc2   : > { %v763_v6 = vmul.f32 %v5221_v36, %v722_v5 }
  0xc4   : > { %v5275_v10 = vsub.f32 %v689_v28, %v763_v6  ;;  %v4322_v28 = vld [vmem:[%s5111_s29] sm:$0xff]  ;;  %s4977_s29 = smov 80  }
  0xc5   : > { %1158 = vmatpush.bf16.msra.mxu0 %v4322_v28 }
  0xc6   : > { %v795_v14 = vmul.f32 %v5275_v10, %v5275_v10 }
  0xc8   : > { %818 = vadd.xlane.f32.xlu2 %v817_v2  ;;  %727 = vadd.xlane.f32.xlu0 %v726_v3  ;;  %v823_v18 = vsel %vm701_vm1, %v795_v14, 0.0 }
  0xc9   : > { %812 = vadd.xlane.f32.xlu1 %v811_v4 }
  0xd0   : > { %736 = vadd.xlane.f32.xlu2 %v735_v11  ;;  %821 = vadd.xlane.f32.xlu0 %v820_v12 }
  0xd1   : > { %730 = vadd.xlane.f32.xlu1 %v729_v13 }
  0xd8   : > { %739 = vadd.xlane.f32.xlu2 %v738_v17  ;;  %824 = vadd.xlane.f32.xlu0 %v823_v18 }
  0xd9   : > { %733 = vadd.xlane.f32.xlu1 %v732_v19 }
  0xe0   : > { %742 = vadd.xlane.f32.xlu0 %v741_v21 }
  0xe8   : > { %745 = vadd.xlane.f32.xlu0 %v744_v23 }
 0x12b   : > { %v807_v24 = vpop.xlane.xlu0 %806 }
 0x12c   : > { %v853_v26 = vmul.f32 %v807_v24, %v5221_v36 }
 0x12e   : > { %v869_v27 = vadd.f32 1e-05, %v853_v26 }
 0x130   : > { %4532 = vrsqrt.f32 %v869_v27  ;;  %vm891_vm4 = vweird.f32 %v869_v27 }
 0x133   : > { %v816_v29 = vpop.xlane.xlu2 %815  ;;  %v725_v30 = vpop.xlane.xlu0 %724 }
 0x134   : > { %v856_v31 = vmul.f32 %v816_v29, %v5221_v36  ;;  %v810_v32 = vpop.xlane.xlu1 %809  ;;  %v764_v33 = vmul.f32 %v5221_v36, %v725_v30  ;;  %v5371_v30 = vld [vmem:[%s7372_s16] ss:$0 sm:$0xff]  ;;  %s4978_s16 = smov 72  }
 0x135   : > { %v854_v34 = vmul.f32 %v810_v32, %v5221_v36 }
 0x136   : > { %v4533_v35 = vpop.eup %4532  ;;  %v5311_v37 = vadd.f32 1e-05, %v856_v31  ;;  %v5314_v38 = vsub.f32 %v5234_v50, %v764_v33 }
 0x137   : > { %v886_v39 = vmul.f32 %v4533_v35, %v869_v27  ;;  %v870_v40 = vadd.f32 1e-05, %v854_v34  ;;  %vm892_vm3 = vweird.f32 %v4533_v35  ;;  %v5360_v27 = vld [vmem:[%s5156_s2 + $0x78] sm:$0xff] }
 0x138   : > { %4534 = vrsqrt.f32 %v5311_v37  ;;  %v796_v42 = vmul.f32 %v5314_v38, %v5314_v38  ;;  %vm5337_vm5 = vmor %vm891_vm4, %vm892_vm3  ;;  %vm921_vm9 = vweird.f32 %v5311_v37 }
 0x139   : > { %v887_v43 = vmul.f32 %v4533_v35, %v886_v39  ;;  %4536 = vrsqrt.f32 %v870_v40  ;;  %vm901_vm7 = vweird.f32 %v870_v40 }
 0x13a   : > { %v826_v44 = vsel %vm701_vm1, %v796_v42, 0.0 }
 0x13b   : > { %v888_v45 = vmul.f32 0.5, %v887_v43  ;;  %v819_v46 = vpop.xlane.xlu2 %818  ;;  %827 = vadd.xlane.f32.xlu1 %v826_v44  ;;  %v728_v47 = vpop.xlane.xlu0 %727 }
 0x13c   : > { %v813_v48 = vpop.xlane.xlu1 %812  ;;  %v765_v49 = vmul.f32 %v5221_v36, %v728_v47  ;;  %v857_v59 = vmul.f32 %v819_v46, %v5221_v36 }
 0x13d   : > { %v889_v50 = vsub.f32 1.5, %v888_v45  ;;  %v855_v53 = vmul.f32 %v813_v48, %v5221_v36  ;;  %v5392_v48 = vld [vmem:[%s7374_s21] ss:$0 sm:$0xff]  ;;  %s4983_s21 = smov 40  }
 0x13e   : > { %v5322_v55 = vpop.eup %4534  ;;  %v5325_v56 = vsub.f32 %v5256_v63, %v765_v49  ;;  %v5335_v63 = vadd.f32 1e-05, %v857_v59 }
 0x13f   : > { %v4537_v57 = vpop.eup %4536  ;;  %v5328_v60 = vadd.f32 1e-05, %v855_v53  ;;  %v890_v62 = vmul.f32 %v4533_v35, %v889_v50  ;;  %v916_v0 = vmul.f32 %v5322_v55, %v5311_v37  ;;  %vm922_vm10 = vweird.f32 %v5322_v55 }
 0x140   : > { %v896_v61 = vmul.f32 %v4537_v57, %v870_v40  ;;  %v797_v3 = vmul.f32 %v5325_v56, %v5325_v56  ;;  %vm902_vm6 = vweird.f32 %v4537_v57  ;;  %vm5416_vm13 = vmor %vm921_vm9, %vm922_vm10  ;;  %vm931_vm2 = vweird.f32 %v5335_v63 }
 0x141   : > { %4538 = vrsqrt.f32 %v5328_v60  ;;  %v894_v17 = vsel %vm5337_vm5, %v4533_v35, %v890_v62  ;;  %v917_v18 = vmul.f32 %v5322_v55, %v916_v0  ;;  %vm903_vm8 = vmor %vm901_vm7, %vm902_vm6  ;;  %vm911_vm12 = vweird.f32 %v5328_v60 }
 0x142   : > { %v897_v2 = vmul.f32 %v4537_v57, %v896_v61  ;;  %v829_v13 = vsel %vm701_vm1, %v797_v3, 0.0  ;;  %4540 = vrsqrt.f32 %v5335_v63 }
 0x143   : > { %v737_v4 = vpop.xlane.xlu2 %736  ;;  %v822_v5 = vpop.xlane.xlu0 %821  ;;  %830 = vadd.xlane.f32.xlu1 %v829_v13  ;;  %v918_v31 = vmul.f32 0.5, %v917_v18 }
 0x144   : > { %v898_v7 = vmul.f32 0.5, %v897_v2  ;;  %v768_v11 = vmul.f32 %v5221_v36, %v737_v4  ;;  %v731_v12 = vpop.xlane.xlu1 %730  ;;  %v858_v14 = vmul.f32 %v822_v5, %v5221_v36 }
 0x145   : > { %v766_v19 = vmul.f32 %v5221_v36, %v731_v12  ;;  %v919_v50 = vsub.f32 1.5, %v918_v31 }
 0x146   : > { %v899_v21 = vsub.f32 1.5, %v898_v7  ;;  %v5349_v23 = vsub.f32 %v5270_v8, %v768_v11  ;;  %v5351_v24 = vadd.f32 1e-05, %v858_v14  ;;  %v1045_v8 = vmul.f32 %v894_v17, %v5224_v41 }
 0x147   : > { %v5353_v25 = vpop.eup %4538  ;;  %v5357_v26 = vsub.f32 %v5273_v9, %v766_v19  ;;  %v747_v41 = vsel %vm701_vm1, %v5360_v27, 0.0  ;;  %v920_v4 = vmul.f32 %v5322_v55, %v919_v50 }
 0x148   : > { %v900_v28 = vmul.f32 %v4537_v57, %v899_v21  ;;  %v906_v29 = vmul.f32 %v5353_v25, %v5328_v60  ;;  %4542 = vrsqrt.f32 %v5351_v24  ;;  %v800_v9 = vmul.f32 %v5349_v23, %v5349_v23  ;;  %v5394_v49 = vpop.eup %4540 }
 0x149   : > { %v798_v34 = vmul.f32 %v5357_v26, %v5357_v26  ;;  %v1064_v47 = vmul.f32 %v5371_v30, %v1045_v8  ;;  %vm912_vm11 = vweird.f32 %v5353_v25  ;;  %v926_v5 = vmul.f32 %v5394_v49, %v5335_v63 }
 0x14a   : > { %v904_v32 = vsel %vm903_vm8, %v4537_v57, %v900_v28  ;;  %v907_v33 = vmul.f32 %v5353_v25, %v906_v29  ;;  %v838_v39 = vsel %vm701_vm1, %v800_v9, 0.0  ;;  %vm913_vm14 = vmor %vm911_vm12, %vm912_vm11  ;;  %v924_v18 = vsel %vm5416_vm13, %v5322_v55, %v920_v4 }
 0x14b   : > { %v740_v35 = vpop.xlane.xlu2 %739  ;;  %v5381_v40 = vpop.xlane.xlu0 %824  ;;  %v1046_v42 = vmul.f32 %v904_v32, %v5238_v52  ;;  %839 = vadd.xlane.f32.xlu0 %v838_v39  ;;  %v832_v45 = vsel %vm701_vm1, %v798_v34, 0.0  ;;  %748 = vadd.xlane.f32.xlu1 %v747_v41  ;;  %v1083_v37 = vadd.f32 %v5392_v48, %v1064_v47  ;;  %v927_v19 = vmul.f32 %v5394_v49, %v926_v5 }
 0x14c   : > { %v908_v43 = vmul.f32 0.5, %v907_v33  ;;  %v769_v44 = vmul.f32 %v5221_v36, %v740_v35  ;;  %v734_v46 = vpop.xlane.xlu1 %733  ;;  %833 = vadd.xlane.f32.xlu2 %v832_v45  ;;  %v1048_v8 = vmul.f32 %v924_v18, %v5236_v51  ;;  %vm941_vm15 = vweird.f32 %v5351_v24 }
 0x14d   : > { %v767_v52 = vmul.f32 %v5221_v36, %v734_v46  ;;  %v1065_v53 = vmul.f32 %v5371_v30, %v1046_v42  ;;  %v928_v31 = vmul.f32 0.5, %v927_v19  ;;  %vm932_vm3 = vweird.f32 %v5394_v49 }
 0x14e   : > { %v5398_v57 = vpop.eup %4542  ;;  %v909_v59 = vsub.f32 1.5, %v908_v43  ;;  %v5403_v61 = vsub.f32 %v5285_v15, %v769_v44  ;;  %vm933_vm5 = vmor %vm931_vm2, %vm932_vm3 }
 0x14f   : > { %v936_v62 = vmul.f32 %v5398_v57, %v5351_v24  ;;  %v5409_v0 = vsub.f32 %v5288_v16, %v767_v52  ;;  %v1084_v3 = vadd.f32 %v5392_v48, %v1065_v53  ;;  %v929_v41 = vsub.f32 1.5, %v928_v31 }
 0x150   : > { %v910_v2 = vmul.f32 %v5353_v25, %v909_v59  ;;  %v801_v6 = vmul.f32 %v5403_v61, %v5403_v61  ;;  %vm942_vm0 = vweird.f32 %v5398_v57 }
 0x151   : > { %v799_v16 = vmul.f32 %v5409_v0, %v5409_v0  ;;  %v1099_v60 = vpack.c.bf16 %v1084_v3, %v1083_v37  ;;  %v937_v11 = vmul.f32 %v5398_v57, %v936_v62  ;;  %vm943_vm4 = vmor %vm941_vm15, %vm942_vm0  ;;  %v930_v42 = vmul.f32 %v5394_v49, %v929_v41 }
 0x152   : > { %v914_v7 = vsel %vm913_vm14, %v5353_v25, %v910_v2  ;;  %v841_v13 = vsel %vm701_vm1, %v801_v6, 0.0 }
 0x153   : > { %v835_v12 = vsel %vm701_vm1, %v799_v16, 0.0  ;;  %v743_v14 = vpop.xlane.xlu0 %742  ;;  %4194 = vmatmul.msk.bf16.vlgmr.msra.gmra.mxu0 %vm701_vm1, %v1099_v60  ;;  %842 = vadd.xlane.f32.xlu1 %v841_v13  ;;  %v1047_v25 = vmul.f32 %v914_v7, %v5248_v58  ;;  %v938_v28 = vmul.f32 0.5, %v937_v11  ;;  %v934_v63 = vsel %vm933_vm5, %v5394_v49, %v930_v42 }
 0x154   : > { %v770_v17 = vmul.f32 %v5221_v36, %v743_v14  ;;  %836 = vadd.xlane.f32.xlu2 %v835_v12  ;;  %v1049_v46 = vmul.f32 %v934_v63, %v5240_v54 }
 0x155   : > { %v1066_v55 = vmul.f32 %v5371_v30, %v1047_v25  ;;  %v939_v32 = vsub.f32 1.5, %v938_v28 }
 0x156   : > { %v5437_v21 = vsub.f32 %v5296_v20, %v770_v17  ;;  %v1067_v20 = vmul.f32 %v5371_v30, %v1048_v8  ;;  %v1068_v50 = vmul.f32 %v5371_v30, %v1049_v46 }
 0x157   : > { %v1085_v51 = vadd.f32 %v5392_v48, %v1066_v55  ;;  %v940_v35 = vmul.f32 %v5398_v57, %v939_v32 }
 0x158   : > { %v802_v29 = vmul.f32 %v5437_v21, %v5437_v21  ;;  %v1086_v39 = vadd.f32 %v5392_v48, %v1067_v20  ;;  %v1087_v53 = vadd.f32 %v5392_v48, %v1068_v50 }
 0x159   : > { %v944_v44 = vsel %vm943_vm4, %v5398_v57, %v940_v35  ;;  %v859_v57 = vmul.f32 %v5381_v40, %v5221_v36 }
 0x15a   : > { %v844_v9 = vsel %vm701_vm1, %v802_v29, 0.0  ;;  %v1100_v43 = vpack.c.bf16 %v1086_v39, %v1085_v51  ;;  %v1050_v45 = vmul.f32 %v944_v44, %v5260_v1 }
 0x15b   : > { %v746_v33 = vpop.xlane.xlu0 %745  ;;  %v875_v62 = vadd.f32 1e-05, %v859_v57 }
 0x15c   : > { %v771_v34 = vmul.f32 %v5221_v36, %v746_v33  ;;  %845 = vadd.xlane.f32.xlu2 %v844_v9  ;;  %v1069_v47 = vmul.f32 %v5371_v30, %v1050_v45 }
 0x15d   : > { %4544 = vrsqrt.f32 %v875_v62  ;;  %vm951_vm6 = vweird.f32 %v875_v62 }
 0x15e   : > { %v5450_v58 = vsub.f32 %v5301_v22, %v771_v34  ;;  %v1088_v52 = vadd.f32 %v5392_v48, %v1069_v47 }
 0x160   : > { %v803_v24 = vmul.f32 %v5450_v58, %v5450_v58  ;;  %v1101_v59 = vpack.c.bf16 %v1088_v52, %v1087_v53 }
 0x162   : > { %v847_v22 = vsel %vm701_vm1, %v803_v24, 0.0 }
 0x163   : > { %848 = vadd.xlane.f32.xlu0 %v847_v22  ;;  %4195 = vmatmul.msk.bf16.gmra.mxu0 %vm701_vm1, %v1100_v43  ;;  %v4545_v49 = vpop.eup %4544 }
 0x164   : > { %v946_v1 = vmul.f32 %v4545_v49, %v875_v62  ;;  %vm952_vm7 = vweird.f32 %v4545_v49 }
 0x165   : > { %vm5475_vm8 = vmor %vm951_vm6, %vm952_vm7 }
 0x166   : > { %v947_v54 = vmul.f32 %v4545_v49, %v946_v1 }
 0x168   : > { %v948_v4 = vmul.f32 0.5, %v947_v54 }
 0x16a   : > { %v949_v15 = vsub.f32 1.5, %v948_v4 }
 0x16c   : > { %v950_v40 = vmul.f32 %v4545_v49, %v949_v15 }
 0x16e   : > { %v954_v14 = vsel %vm5475_vm8, %v4545_v49, %v950_v40 }
 0x16f   : > { %v1051_v55 = vmul.f32 %v954_v14, %v5275_v10 }
 0x171   : > { %v1070_v24 = vmul.f32 %v5371_v30, %v1051_v55 }
 0x173   : > { %4196 = vmatmul.msk.bf16.gmra.mxu0 %vm701_vm1, %v1101_v59  ;;  %v1089_v46 = vadd.f32 %v5392_v48, %v1070_v24 }
 0x1ae   : > { %v828_v2 = vpop.xlane.xlu1 %827 }
 0x1af   : > { %v860_v37 = vmul.f32 %v828_v2, %v5221_v36 }
 0x1b1   : > { %v876_v3 = vadd.f32 1e-05, %v860_v37 }
 0x1b3   : > { %4546 = vrsqrt.f32 %v876_v3  ;;  %vm961_vm10 = vweird.f32 %v876_v3 }
 0x1b6   : > { %v831_v5 = vpop.xlane.xlu1 %830 }
 0x1b7   : > { %v861_v6 = vmul.f32 %v831_v5, %v5221_v36 }
 0x1b9   : > { %v4547_v16 = vpop.eup %4546  ;;  %v877_v7 = vadd.f32 1e-05, %v861_v6 }
 0x1ba   : > { %v956_v60 = vmul.f32 %v4547_v16, %v876_v3  ;;  %vm962_vm9 = vweird.f32 %v4547_v16 }
 0x1bb   : > { %4548 = vrsqrt.f32 %v877_v7  ;;  %vm963_vm11 = vmor %vm961_vm10, %vm962_vm9  ;;  %vm971_vm12 = vweird.f32 %v877_v7 }
 0x1bc   : > { %v957_v12 = vmul.f32 %v4547_v16, %v956_v60 }
 0x1be   : > { %v958_v13 = vmul.f32 0.5, %v957_v12  ;;  %v840_v17 = vpop.xlane.xlu0 %839  ;;  %v749_v25 = vpop.xlane.xlu1 %748 }
 0x1bf   : > { %v834_v19 = vpop.xlane.xlu2 %833  ;;  %v864_v28 = vmul.f32 %v840_v17, %v5221_v36  ;;  %v772_v8 = vmul.f32 %v5221_v36, %v749_v25 }
 0x1c0   : > { %v959_v18 = vsub.f32 1.5, %v958_v13  ;;  %v862_v29 = vmul.f32 %v834_v19, %v5221_v36 }
 0x1c1   : > { %v5484_v9 = vadd.f32 1e-05, %v864_v28  ;;  %v4549_v32 = vpop.eup %4548  ;;  %v5488_v34 = vsub.f32 %v5360_v27, %v772_v8 }
 0x1c2   : > { %v960_v31 = vmul.f32 %v4547_v16, %v959_v18  ;;  %v878_v33 = vadd.f32 1e-05, %v862_v29  ;;  %v966_v41 = vmul.f32 %v4549_v32, %v877_v7  ;;  %vm972_vm13 = vweird.f32 %v4549_v32 }
 0x1c3   : > { %4550 = vrsqrt.f32 %v5484_v9  ;;  %v804_v51 = vmul.f32 %v5488_v34, %v5488_v34  ;;  %vm973_vm14 = vmor %vm971_vm12, %vm972_vm13  ;;  %vm1001_vm3 = vweird.f32 %v5484_v9 }
 0x1c4   : > { %v964_v20 = vsel %vm963_vm11, %v4547_v16, %v960_v31  ;;  %4552 = vrsqrt.f32 %v878_v33  ;;  %v967_v35 = vmul.f32 %v4549_v32, %v966_v41  ;;  %vm981_vm0 = vweird.f32 %v878_v33 }
 0x1c5   : > { %v1052_v39 = vmul.f32 %v964_v20, %v5314_v38  ;;  %v850_v10 = vsel %vm701_vm1, %v804_v51, 0.0 }
 0x1c6   : > { %v968_v42 = vmul.f32 0.5, %v967_v35  ;;  %851 = vadd.xlane.f32.xlu1 %v850_v10  ;;  %v843_v27 = vpop.xlane.xlu1 %842 }
 0x1c7   : > { %v837_v43 = vpop.xlane.xlu2 %836  ;;  %v1071_v22 = vmul.f32 %v5371_v30, %v1052_v39  ;;  %v865_v52 = vmul.f32 %v843_v27, %v5221_v36 }
 0x1c8   : > { %v863_v44 = vmul.f32 %v837_v43, %v5221_v36  ;;  %v969_v45 = vsub.f32 1.5, %v968_v42 }
 0x1c9   : > { %v5498_v63 = vpop.eup %4550  ;;  %v1090_v47 = vadd.f32 %v5392_v48, %v1071_v22  ;;  %v5506_v1 = vadd.f32 1e-05, %v865_v52 }
 0x1ca   : > { %v4553_v38 = vpop.eup %4552  ;;  %v879_v50 = vadd.f32 1e-05, %v863_v44  ;;  %v970_v53 = vmul.f32 %v4549_v32, %v969_v45  ;;  %v996_v57 = vmul.f32 %v5498_v63, %v5484_v9  ;;  %vm1002_vm4 = vweird.f32 %v5498_v63 }
 0x1cb   : > { %v976_v59 = vmul.f32 %v4553_v38, %v878_v33  ;;  %v1102_v62 = vpack.c.bf16 %v1090_v47, %v1089_v46  ;;  %vm982_vm15 = vweird.f32 %v4553_v38  ;;  %vm1003_vm7 = vmor %vm1001_vm3, %vm1002_vm4  ;;  %vm1011_vm11 = vweird.f32 %v5506_v1 }
 0x1cc   : > { %4554 = vrsqrt.f32 %v879_v50  ;;  %v974_v2 = vsel %vm973_vm14, %v4549_v32, %v970_v53  ;;  %v997_v37 = vmul.f32 %v5498_v63, %v996_v57  ;;  %vm983_vm2 = vmor %vm981_vm0, %vm982_vm15  ;;  %vm991_vm5 = vweird.f32 %v879_v50 }
 0x1cd   : > { %v977_v49 = vmul.f32 %v4553_v38, %v976_v59  ;;  %4197 = vmatmul.msk.bf16.gmra.mxu0 %vm701_vm1, %v1102_v62  ;;  %4556 = vrsqrt.f32 %v5506_v1  ;;  %v1053_v6 = vmul.f32 %v974_v2, %v5325_v56 }
 0x1ce   : > { %v998_v40 = vmul.f32 0.5, %v997_v37 }
 0x1cf   : > { %v978_v54 = vmul.f32 0.5, %v977_v49  ;;  %v846_v3 = vpop.xlane.xlu2 %845  ;;  %v1072_v14 = vmul.f32 %v5371_v30, %v1053_v6 }
 0x1d0   : > { %v866_v4 = vmul.f32 %v846_v3, %v5221_v36  ;;  %v999_v17 = vsub.f32 1.5, %v998_v40  ;;  %v5538_v49 = vpop.f32.mrf.mxu0 }
 0x1d1   : > { %v979_v15 = vsub.f32 1.5, %v978_v54  ;;  %v1091_v29 = vadd.f32 %v5392_v48, %v1072_v14 }
 0x1d2   : > { %v4555_v5 = vpop.eup %4554  ;;  %v882_v16 = vadd.f32 1e-05, %v866_v4 }
 0x1d3   : > { %v980_v60 = vmul.f32 %v4553_v38, %v979_v15  ;;  %v986_v7 = vmul.f32 %v4555_v5, %v879_v50  ;;  %v4557_v19 = vpop.eup %4556  ;;  %vm992_vm6 = vweird.f32 %v4555_v5 }
 0x1d4   : > { %4558 = vrsqrt.f32 %v882_v16  ;;  %v1006_v55 = vmul.f32 %v4557_v19, %v5506_v1  ;;  %vm993_vm8 = vmor %vm991_vm5, %vm992_vm6  ;;  %vm1021_vm9 = vweird.f32 %v882_v16  ;;  %vm1012_vm12 = vweird.f32 %v4557_v19 }
 0x1d5   : > { %v984_v11 = vsel %vm983_vm2, %v4553_v38, %v980_v60  ;;  %v987_v12 = vmul.f32 %v4555_v5, %v986_v7  ;;  %vm1013_vm14 = vmor %vm1011_vm11, %vm1012_vm12  ;;  %vm1236_vm6 = vcmask 64512  }
 0x1d6   : > { %v1054_v13 = vmul.f32 %v984_v11, %v5357_v26  ;;  %v1000_v26 = vmul.f32 %v5498_v63, %v999_v17  ;;  %v1007_v51 = vmul.f32 %v4557_v19, %v1006_v55  ;;  %v849_v2 = vpop.xlane.xlu0 %848 }
 0x1d7   : > { %v988_v18 = vmul.f32 0.5, %v987_v12 }
 0x1d8   : > { %v1073_v56 = vmul.f32 %v5371_v30, %v1054_v13  ;;  %v1004_v41 = vsel %vm1003_vm7, %v5498_v63, %v1000_v26  ;;  %v1008_v10 = vmul.f32 0.5, %v1007_v51  ;;  %v5540_v1 = vpop.f32.mrf.mxu0 }
 0x1d9   : > { %v989_v25 = vsub.f32 1.5, %v988_v18  ;;  %v1056_v24 = vmul.f32 %v1004_v41, %v5349_v23 }
 0x1da   : > { %v4559_v28 = vpop.eup %4558  ;;  %v1092_v8 = vadd.f32 %v5392_v48, %v1073_v56  ;;  %v1009_v22 = vsub.f32 1.5, %v1008_v10 }
 0x1db   : > { %v990_v31 = vmul.f32 %v4555_v5, %v989_v25  ;;  %v1016_v32 = vmul.f32 %v4559_v28, %v882_v16  ;;  %v1075_v27 = vmul.f32 %v5371_v30, %v1056_v24  ;;  %vm1022_vm10 = vweird.f32 %v4559_v28 }
 0x1dc   : > { %v1103_v9 = vpack.c.bf16 %v1092_v8, %v1091_v29  ;;  %vm1023_vm13 = vmor %vm1021_vm9, %vm1022_vm10  ;;  %v1010_v45 = vmul.f32 %v4557_v19, %v1009_v22  ;;  %vm2846_vm9 = vcmask 195584  }
 0x1dd   : > { %v994_v33 = vsel %vm993_vm8, %v4555_v5, %v990_v31  ;;  %v1017_v20 = vmul.f32 %v4559_v28, %v1016_v32  ;;  %vm2829_vm8 = vcmask 130048  }
 0x1de   : > { %4198 = vmatmul.msk.bf16.gmra.mxu0 %vm701_vm1, %v1103_v9  ;;  %v1055_v35 = vmul.f32 %v994_v33, %v5409_v0  ;;  %v1094_v0 = vadd.f32 %v5392_v48, %v1075_v27  ;;  %v1014_v47 = vsel %vm1013_vm14, %v4557_v19, %v1010_v45 }
 0x1df   : > { %v1018_v39 = vmul.f32 0.5, %v1017_v20  ;;  %v1057_v50 = vmul.f32 %v1014_v47, %v5403_v61  ;;  %v867_v61 = vmul.f32 %v849_v2, %v5221_v36 }
 0x1e0   : > { %v1074_v42 = vmul.f32 %v5371_v30, %v1055_v35  ;;  %v5542_v54 = vpop.f32.mrf.mxu0 }
 0x1e1   : > { %v1019_v43 = vsub.f32 1.5, %v1018_v39  ;;  %v1076_v53 = vmul.f32 %v5371_v30, %v1057_v50 }
 0x1e2   : > { %v1093_v44 = vadd.f32 %v5392_v48, %v1074_v42 }
 0x1e3   : > { %v1020_v63 = vmul.f32 %v4559_v28, %v1019_v43  ;;  %v1095_v57 = vadd.f32 %v5392_v48, %v1076_v53 }
 0x1e4   : > { %v1104_v23 = vpack.c.bf16 %v1094_v0, %v1093_v44 }
 0x1e5   : > { %v1024_v46 = vsel %vm1023_vm13, %v4559_v28, %v1020_v63 }
 0x1e6   : > { %v1058_v38 = vmul.f32 %v1024_v46, %v5437_v21  ;;  %v883_v21 = vadd.f32 1e-05, %v867_v61 }
 0x1e8   : > { %v1077_v52 = vmul.f32 %v5371_v30, %v1058_v38  ;;  %4560 = vrsqrt.f32 %v883_v21  ;;  %v1167_v37 = vpop.f32.mrf.mxu0  ;;  %vm1031_vm15 = vweird.f32 %v883_v21 }
 0x1ea   : > { %v1096_v59 = vadd.f32 %v5392_v48, %v1077_v52 }
 0x1ec   : > { %v1105_v62 = vpack.c.bf16 %v1096_v59, %v1095_v57 }
 0x1ee   : > { %4199 = vmatmul.msk.bf16.gmra.mxu0 %vm701_vm1, %v1104_v23  ;;  %v4561_v3 = vpop.eup %4560 }
 0x1ef   : > { %v1026_v4 = vmul.f32 %v4561_v3, %v883_v21  ;;  %vm1032_vm0 = vweird.f32 %v4561_v3 }
 0x1f0   : > { %v1170_v15 = vpop.f32.mrf.mxu0  ;;  %vm1033_vm2 = vmor %vm1031_vm15, %vm1032_vm0 }
 0x1f1   : > { %v1027_v5 = vmul.f32 %v4561_v3, %v1026_v4 }
 0x1f3   : > { %v1028_v40 = vmul.f32 0.5, %v1027_v5 }
 0x1f5   : > { %v1029_v7 = vsub.f32 1.5, %v1028_v40 }
 0x1f7   : > { %v1030_v13 = vmul.f32 %v4561_v3, %v1029_v7 }
 0x1f8   : > { %v1172_v11 = vpop.f32.mrf.mxu0 }
 0x1f9   : > { %v1034_v18 = vsel %vm1033_vm2, %v4561_v3, %v1030_v13 }
 0x1fa   : > { %v1059_v28 = vmul.f32 %v1034_v18, %v5450_v58  ;;  %v5558_v58 = vld [vmem:[%s7379_s27] ss:$0 sm:$0xff]  ;;  %s4986_s27 = smov 24  }
 0x1fb   : > { %v1171_v24 = vadd.f32 %v5558_v58, %v1170_v15  ;;  %v1168_v44 = vadd.f32 %v5558_v58, %v1167_v37  ;;  %v1166_v45 = vadd.f32 %v5558_v58, %v5542_v54  ;;  %v1163_v59 = vadd.f32 %v5558_v58, %v5540_v1 }
 0x1fc   : > { %v1078_v31 = vmul.f32 %v5371_v30, %v1059_v28  ;;  %v1161_v57 = vadd.f32 %v5558_v58, %v5538_v49 }
 0x1fd   : > { %v5585_v46 = vpack.c.bf16 %v1168_v44, %v1166_v45 }
 0x1fe   : > { %4200 = vmatmul.msk.bf16.gmra.mxu0 %vm701_vm1, %v1105_v62  ;;  %v1097_v9 = vadd.f32 %v5392_v48, %v1078_v31  ;;  %v5609_v62 = vpack.c.bf16 %v1163_v59, %v1161_v57 }
 0x1ff   : > { %7380 = vst [vmem:[#allocation10_spill] sm:$0xff] %v5585_v46 }
 0x200   : > { %7381 = vst [vmem:[#allocation11_spill] sm:$0xff] %v5609_v62 }
 0x239   : > { %v852_v16 = vpop.xlane.xlu1 %851 }
 0x23a   : > { %v868_v6 = vmul.f32 %v852_v16, %v5221_v36 }
 0x23c   : > { %v884_v60 = vadd.f32 1e-05, %v868_v6 }
 0x23e   : > { %4562 = vrsqrt.f32 %v884_v60  ;;  %vm1041_vm3 = vweird.f32 %v884_v60 }
 0x244   : > { %v4563_v12 = vpop.eup %4562 }
 0x245   : > { %v1036_v14 = vmul.f32 %v4563_v12, %v884_v60  ;;  %vm1042_vm4 = vweird.f32 %v4563_v12 }
 0x246   : > { %vm1043_vm5 = vmor %vm1041_vm3, %vm1042_vm4 }
 0x247   : > { %v1037_v17 = vmul.f32 %v4563_v12, %v1036_v14 }
 0x249   : > { %v1038_v19 = vmul.f32 0.5, %v1037_v17 }
 0x24a   : > { %v1175_v56 = vpop.f32.mrf.mxu0 }
 0x24b   : > { %v1039_v25 = vsub.f32 1.5, %v1038_v19  ;;  %v1176_v23 = vadd.f32 %v5558_v58, %v1175_v56 }
 0x24d   : > { %v1040_v29 = vmul.f32 %v4563_v12, %v1039_v25 }
 0x24f   : > { %v1044_v8 = vsel %vm1043_vm5, %v4563_v12, %v1040_v29 }
 0x250   : > { %v1060_v26 = vmul.f32 %v1044_v8, %v5488_v34 }
 0x252   : > { %v1177_v55 = vpop.f32.mrf.mxu0  ;;  %v1079_v32 = vmul.f32 %v5371_v30, %v1060_v26 }
 0x253   : > { %v1178_v63 = vadd.f32 %v5558_v58, %v1177_v55 }
 0x254   : > { %v1098_v33 = vadd.f32 %v5392_v48, %v1079_v32  ;;  %v1173_v48 = vadd.f32 %v5558_v58, %v1172_v11 }
 0x255   : > { %v5587_v47 = vpack.c.bf16 %v1178_v63, %v1176_v23 }
 0x256   : > { %v1106_v20 = vpack.c.bf16 %v1098_v33, %v1097_v9  ;;  %v5568_v10 = vpack.c.bf16 %v1173_v48, %v1171_v24 }
 0x258   : > { %4201 = vmatmul.msk.bf16.gmra.mxu0 %vm701_vm1, %v1106_v20 }
 0x25b   : > { %v1180_v41 = vpop.f32.mrf.mxu0 }
 0x25c   : > { %v1181_v51 = vadd.f32 %v5558_v58, %v1180_v41 }
 0x263   : > { %v1182_v34 = vpop.f32.mrf.mxu0 }
 0x264   : > { %v1183_v35 = vadd.f32 %v5558_v58, %v1182_v34 }
 0x266   : > { %v5562_v30 = vpack.c.bf16 %v1183_v35, %v1181_v51 }
 0x268   : > { %1228 = vrot.lane.b32.xlu2 %v5562_v30, %s4973_s28 }
 0x26b   : > { %v1185_v39 = vpop.f32.mrf.mxu0 }
 0x26c   : > { %v1186_v43 = vadd.f32 %v5558_v58, %v1185_v39 }
 0x270   : > { %1224 = vrot.lane.b32.xlu2 %v5568_v10, %s4973_s28 }
 0x273   : > { %v1187_v42 = vpop.f32.mrf.mxu0 }
 0x274   : > { %v1188_v27 = vadd.f32 %v5558_v58, %v1187_v42 }
 0x276   : > { %v5574_v22 = vpack.c.bf16 %v1188_v27, %v1186_v43 }
 0x278   : > { %1583 = vrot.lane.b32.xlu2 %v5562_v30, %s4974_s30  ;;  %1230 = vrot.lane.b32.xlu1 %v5574_v22, %s4973_s28 }
 0x27b   : > { %v1190_v0 = vpop.f32.mrf.mxu0 }
 0x27c   : > { %v1191_v50 = vadd.f32 %v5558_v58, %v1190_v0 }
 0x280   : > { %1581 = vrot.lane.b32.xlu2 %v5587_v47, %s4974_s30  ;;  %1222 = vrot.lane.b32.xlu1 %v5585_v46, %s4973_s28 }
 0x283   : > { %v1192_v38 = vpop.f32.mrf.mxu0 }
 0x284   : > { %v1193_v52 = vadd.f32 %v5558_v58, %v1192_v38 }
 0x286   : > { %v5595_v53 = vpack.c.bf16 %v1193_v52, %v1191_v50 }
 0x288   : > { %1232 = vrot.lane.b32.xlu0 %v5595_v53, %s4973_s28  ;;  %1585 = vrot.lane.b32.xlu1 %v5574_v22, %s4974_s30 }
 0x290   : > { %1226 = vrot.lane.b32.xlu0 %v5587_v47, %s4973_s28  ;;  %1492 = vrot.lane.b32.xlu1 %v5587_v47, %s4975_s25 }
 0x298   : > { %1220 = vrot.lane.b32.xlu0 %v5609_v62, %s4973_s28  ;;  %1577 = vrot.lane.b32.xlu1 %v5585_v46, %s4974_s30 }
 0x2a0   : > { %1587 = vrot.lane.b32.xlu0 %v5595_v53, %s4974_s30  ;;  %1559 = vrot.lane.b32.xlu1 %v5609_v62, %s4976_s5 }
 0x2a8   : > { %1579 = vrot.lane.b32.xlu0 %v5568_v10, %s4974_s30  ;;  %1563 = vrot.lane.b32.xlu1 %v5568_v10, %s4976_s5 }
 0x2b0   : > { %1488 = vrot.lane.b32.xlu0 %v5585_v46, %s4975_s25  ;;  %1941 = vrot.lane.b32.xlu1 %v5595_v53, %s4977_s29 }
 0x2b8   : > { %1575 = vrot.lane.b32.xlu0 %v5609_v62, %s4974_s30  ;;  %2293 = vrot.lane.b32.xlu1 %v5574_v22, %s4978_s16 }
 0x2c0   : > { %1565 = vrot.lane.b32.xlu0 %v5587_v47, %s4976_s5  ;;  %1937 = vrot.lane.b32.xlu1 %v5562_v30, %s4977_s29 }
 0x2c2   : > { %v1229_v15 = vpop.permute.xlu2 %1228 }
 0x2c3   : > { %v1274_v31 = vsel %vm1236_vm6, %v1229_v15, 0 }
 0x2c8   : > { %2291 = vrot.lane.b32.xlu0 %v5562_v30, %s4978_s16  ;;  %1935 = vrot.lane.b32.xlu1 %v5587_v47, %s4977_s29 }
 0x2ca   : > { %v1225_v16 = vpop.permute.xlu2 %1224 }
 0x2d0   : > { %1913 = vrot.lane.b32.xlu0 %v5609_v62, %s4979_s0  ;;  %1571 = vrot.lane.b32.xlu1 %v5595_v53, %s4976_s5 }
 0x2d2   : > { %v5709_v40 = vpop.permute.xlu2 %1583 }
 0x2d5   : > { %v1195_v49 = vpop.f32.mrf.mxu0 }
 0x2d6   : > { %v1196_v2 = vadd.f32 %v5558_v58, %v1195_v49 }
 0x2d8   : > { %1915 = vrot.lane.b32.xlu0 %v5585_v46, %s4979_s0  ;;  %2289 = vrot.lane.b32.xlu1 %v5587_v47, %s4978_s16 }
 0x2da   : > { %v5719_v11 = vpop.permute.xlu2 %1581 }
 0x2db   : > { %v1625_v15 = vsel %vm1236_vm6, %v5719_v11, 0 }
 0x2dd   : > { %v1197_v1 = vpop.f32.mrf.mxu0 }
 0x2de   : > { %v1198_v54 = vadd.f32 %v5558_v58, %v1197_v1  ;;  %v1268_v58 = vsel %vm1236_vm6, %v1225_v16, 0 }
 0x2e0   : > { %2271 = vrot.lane.b32.xlu0 %v5568_v10, %s4980_s18  ;;  %2285 = vrot.lane.b32.xlu1 %v5585_v46, %s4978_s16  ;;  %v5653_v61 = vpack.c.bf16 %v1198_v54, %v1196_v2 }
 0x2e2   : > { %1234 = vrot.lane.b32.xlu2 %v5653_v61, %s4973_s28  ;;  %s4987_s28 = smov 16  }
 0x2e8   : > { %2277 = vrot.lane.b32.xlu0 %v5574_v22, %s4980_s18  ;;  %2269 = vrot.lane.b32.xlu1 %v5585_v46, %s4980_s18 }
 0x2ea   : > { %1498 = vrot.lane.b32.xlu2 %v5595_v53, %s4975_s25  ;;  %v1231_v25 = vpop.permute.xlu1 %1230 }
 0x2eb   : > { %v1277_v29 = vsel %vm1236_vm6, %v1231_v25, 0 }
 0x2f0   : > { %1852 = vrot.lane.b32.xlu0 %v5595_v53, %s4981_s20  ;;  %1919 = vrot.lane.b32.xlu1 %v5587_v47, %s4979_s0 }
 0x2f2   : > { %1496 = vrot.lane.b32.xlu2 %v5574_v22, %s4975_s25  ;;  %v1223_v32 = vpop.permute.xlu1 %1222 }
 0x2f3   : > { %v1265_v48 = vsel %vm1236_vm6, %v1223_v32, 0 }
 0x2f8   : > { %1850 = vrot.lane.b32.xlu0 %v5574_v22, %s4981_s20  ;;  %1923 = vrot.lane.b32.xlu1 %v5574_v22, %s4979_s0 }
 0x2fa   : > { %v1233_v21 = vpop.permute.xlu0 %1232  ;;  %1494 = vrot.lane.b32.xlu2 %v5562_v30, %s4975_s25  ;;  %v1586_v34 = vpop.permute.xlu1 %1585 }
 0x2fb   : > { %v1280_v19 = vsel %vm1236_vm6, %v1233_v21, 0  ;;  %v1631_v54 = vsel %vm1236_vm6, %v1586_v34, 0 }
 0x300   : > { %1925 = vrot.lane.b32.xlu0 %v5595_v53, %s4979_s0  ;;  %1846 = vrot.lane.b32.xlu1 %v5587_v47, %s4981_s20 }
 0x302   : > { %v1227_v37 = vpop.permute.xlu0 %1226  ;;  %1490 = vrot.lane.b32.xlu2 %v5568_v10, %s4975_s25  ;;  %v1493_v39 = vpop.permute.xlu1 %1492 }
 0x303   : > { %v1271_v33 = vsel %vm1236_vm6, %v1227_v37, 0 }
 0x308   : > { %1848 = vrot.lane.b32.xlu0 %v5562_v30, %s4981_s20 }
 0x30a   : > { %v5683_v3 = vpop.permute.xlu0 %1220  ;;  %1486 = vrot.lane.b32.xlu2 %v5609_v62, %s4975_s25  ;;  %v1578_v44 = vpop.permute.xlu1 %1577 }
 0x30b   : > { %v1262_v43 = vsel %vm1236_vm6, %v5683_v3, 0  ;;  %v1628_v3 = vsel %vm1236_vm6, %v5709_v40, 0  ;;  %v1619_v25 = vsel %vm1236_vm6, %v1578_v44, 0 }
 0x310   : > { %1844 = vrot.lane.b32.xlu0 %v5568_v10, %s4981_s20 }
 0x312   : > { %v5689_v4 = vpop.permute.xlu0 %1587  ;;  %1561 = vrot.lane.b32.xlu2 %v5585_v46, %s4976_s5  ;;  %v1560_v45 = vpop.permute.xlu1 %1559 }
 0x313   : > { %v1634_v49 = vsel %vm1236_vm6, %v5689_v4, 0 }
 0x318   : > { %1589 = vrot.lane.b32.xlu0 %v5653_v61, %s4974_s30 }
 0x31a   : > { %v5695_v5 = vpop.permute.xlu0 %1579  ;;  %1567 = vrot.lane.b32.xlu2 %v5562_v30, %s4976_s5  ;;  %v5787_v59 = vpop.permute.xlu1 %1563 }
 0x31b   : > { %v1622_v40 = vsel %vm1236_vm6, %v5695_v5, 0 }
 0x320   : > { %1500 = vrot.lane.b32.xlu0 %v5653_v61, %s4975_s25  ;;  %s7413_s25 = scalar_lea.vmem %s7330_s6, %s5092_s15 }
 0x322   : > { %v5701_v6 = vpop.permute.xlu0 %1488  ;;  %2295 = vrot.lane.b32.xlu2 %v5595_v53, %s4978_s16  ;;  %v1942_v2 = vpop.permute.xlu1 %1941 }
 0x323   : > { %v1988_v11 = vsel %vm1236_vm6, %v1942_v2, 0  ;;  %v1200_v2 = vlaneseq }
 0x328   : > { %1943 = vrot.lane.b32.xlu0 %v5653_v61, %s4977_s29 }
 0x32a   : > { %v5707_v60 = vpop.permute.xlu0 %1575  ;;  %1939 = vrot.lane.b32.xlu2 %v5574_v22, %s4977_s29  ;;  %v2294_v37 = vpop.permute.xlu1 %2293 }
 0x330   : > { %2297 = vrot.lane.b32.xlu0 %v5653_v61, %s4978_s16 }
 0x332   : > { %v5715_v7 = vpop.permute.xlu0 %1565  ;;  %1569 = vrot.lane.b32.xlu2 %v5574_v22, %s4976_s5 }
 0x338   : > { %1573 = vrot.lane.b32.xlu0 %v5653_v61, %s4976_s5 }
 0x33a   : > { %v5723_v12 = vpop.permute.xlu0 %2291  ;;  %1933 = vrot.lane.b32.xlu2 %v5568_v10, %s4977_s29 }
 0x33c   : > { %v1235_v13 = vpop.permute.xlu2 %1234 }
 0x33d   : > { %v1283_v14 = vsel %vm1236_vm6, %v1235_v13, 0  ;;  %v1938_v13 = vpop.permute.xlu1 %1937 }
 0x33e   : > { %1285 = vmatpush.bf16.xpose.msra.mxu1 %v1283_v14 }
 0x342   : > { %v5728_v17 = vpop.permute.xlu0 %1913  ;;  %2287 = vrot.lane.b32.xlu2 %v5568_v10, %s4978_s16 }
 0x344   : > { %v1499_v18 = vpop.permute.xlu2 %1498 }
 0x346   : > { %1286 = vmatpush.bf16.xpose.msra.mxu1 %v1280_v19 }
 0x34a   : > { %v5733_v56 = vpop.permute.xlu0 %1915  ;;  %1931 = vrot.lane.b32.xlu2 %v5585_v46, %s4977_s29 }
 0x34c   : > { %v1497_v28 = vpop.permute.xlu2 %1496 }
 0x34e   : > { %1287 = vmatpush.bf16.xpose.msra.mxu1 %v1277_v29 }
 0x352   : > { %v5738_v8 = vpop.permute.xlu0 %2271  ;;  %1929 = vrot.lane.b32.xlu2 %v5609_v62, %s4977_s29  ;;  %s7421_s29 = scalar_lea.vmem %s7331_s7, %s5092_s15 }
 0x354   : > { %v1495_v26 = vpop.permute.xlu2 %1494 }
 0x356   : > { %1288 = vmatpush.bf16.xpose.msra.mxu1 %v1274_v31  ;;  %v1616_v31 = vsel %vm1236_vm6, %v5707_v60, 0 }
 0x35a   : > { %v5743_v55 = vpop.permute.xlu0 %2277  ;;  %2283 = vrot.lane.b32.xlu2 %v5609_v62, %s4978_s16 }
 0x35c   : > { %v1491_v9 = vpop.permute.xlu2 %1490 }
 0x35e   : > { %1289 = vmatpush.bf16.xpose.msra.mxu1 %v1271_v33  ;;  %v1982_v33 = vsel %vm1236_vm6, %v1938_v13, 0 }
 0x362   : > { %v5748_v20 = vpop.permute.xlu0 %1852  ;;  %2267 = vrot.lane.b32.xlu2 %v5609_v62, %s4980_s18 }
 0x364   : > { %v1487_v41 = vpop.permute.xlu2 %1486 }
 0x366   : > { %1290 = vmatpush.bf16.xpose.msra.mxu1 %v1268_v58 }
 0x36a   : > { %v5753_v51 = vpop.permute.xlu0 %1850  ;;  %1917 = vrot.lane.b32.xlu2 %v5568_v10, %s4979_s0 }
 0x36c   : > { %v5757_v35 = vpop.permute.xlu2 %1561 }
 0x36e   : > { %1291 = vmatpush.bf16.xpose.msra.mxu1 %v1265_v48  ;;  %v2339_v48 = vsel %vm1236_vm6, %v2294_v37, 0 }
 0x372   : > { %v5760_v24 = vpop.permute.xlu0 %1925  ;;  %2273 = vrot.lane.b32.xlu2 %v5587_v47, %s4980_s18 }
 0x374   : > { %v5764_v42 = vpop.permute.xlu2 %1567 }
 0x376   : > { %1292 = vmatpush.bf16.xpose.msra.mxu1 %v1262_v43 }
 0x37a   : > { %v5768_v27 = vpop.permute.xlu0 %1848  ;;  %1921 = vrot.lane.b32.xlu2 %v5562_v30, %s4979_s0 }
 0x37c   : > { %v5772_v63 = vpop.permute.xlu2 %2295 }
 0x37d   : > { %4202 = vmatmul.msk.bf16.vlgmr.msra.gmra.mxu1 %vm1236_vm6, %v5609_v62  ;;  %v2342_v58 = vsel %vm1236_vm6, %v5772_v63, 0  ;;  %v2336_v63 = vsel %vm1236_vm6, %v5723_v12, 0 }
 0x382   : > { %v5776_v0 = vpop.permute.xlu0 %1844  ;;  %2275 = vrot.lane.b32.xlu2 %v5562_v30, %s4980_s18 }
 0x384   : > { %v1940_v23 = vpop.permute.xlu2 %1939 }
 0x385   : > { %v1985_v29 = vsel %vm1236_vm6, %v1940_v23, 0 }
 0x38a   : > { %v1590_v38 = vpop.permute.xlu0 %1589  ;;  %2279 = vrot.lane.b32.xlu2 %v5595_v53, %s4980_s18 }
 0x38b   : > { %v1637_v50 = vsel %vm1236_vm6, %v1590_v38, 0 }
 0x38c   : > { %1639 = vmatpush.bf16.xpose.msra.mxu3 %v1637_v50  ;;  %v5783_v52 = vpop.permute.xlu2 %1569 }
 0x38d   : > { %4203 = vmatmul.msk.bf16.gmra.mxu1 %vm1236_vm6, %v5585_v46 }
 0x392   : > { %v1501_v57 = vpop.permute.xlu0 %1500  ;;  %1854 = vrot.lane.b32.xlu2 %v5653_v61, %s4981_s20 }
 0x393   : > { %1510 = vmatpush.bf16.msra.mxu2 %v1501_v57 }
 0x394   : > { %1640 = vmatpush.bf16.xpose.msra.mxu3 %v1634_v49  ;;  %v1934_v1 = vpop.permute.xlu2 %1933 }
 0x395   : > { %v1976_v44 = vsel %vm1236_vm6, %v1934_v1, 0 }
 0x397   : > { %1511 = vmatpush.bf16.msra.mxu2 %v1499_v18 }
 0x39a   : > { %v1944_v16 = vpop.permute.xlu0 %1943 }
 0x39b   : > { %1512 = vmatpush.bf16.msra.mxu2 %v1497_v28  ;;  %v1991_v18 = vsel %vm1236_vm6, %v1944_v16, 0 }
 0x39c   : > { %1641 = vmatpush.bf16.xpose.msra.mxu3 %v1631_v54  ;;  %v5794_v21 = vpop.permute.xlu2 %2287  ;;  %v1201_v54 = vand.u32 127, %v1200_v2 }
 0x39d   : > { %4204 = vmatmul.msk.bf16.gmra.mxu1 %vm1236_vm6, %v5568_v10  ;;  %v2330_v12 = vsel %vm1236_vm6, %v5794_v21, 0 }
 0x39e   : > { %vm1202_vm7 = vcmp.lt.s32.totalorder %v1201_v54, 17 }
 0x39f   : > { %1513 = vmatpush.bf16.msra.mxu2 %v1495_v26 }
 0x3a2   : > { %v2298_v5 = vpop.permute.xlu0 %2297 }
 0x3a3   : > { %1514 = vmatpush.bf16.msra.mxu2 %v1493_v39  ;;  %v2345_v32 = vsel %vm1236_vm6, %v2298_v5, 0 }
 0x3a4   : > { %1642 = vmatpush.bf16.xpose.msra.mxu3 %v1628_v3  ;;  %v1932_v4 = vpop.permute.xlu2 %1931 }
 0x3a5   : > { %v1973_v38 = vsel %vm1236_vm6, %v1932_v4, 0 }
 0x3a7   : > { %1515 = vmatpush.bf16.msra.mxu2 %v1491_v9 }
 0x3ab   : > { %1516 = vmatpush.bf16.msra.mxu2 %v5701_v6  ;;  %v1936_v6 = vpop.permute.xlu1 %1935 }
 0x3ac   : > { %1643 = vmatpush.bf16.xpose.msra.mxu3 %v1625_v15  ;;  %v1930_v14 = vpop.permute.xlu2 %1929  ;;  %v1979_v60 = vsel %vm1236_vm6, %v1936_v6, 0 }
 0x3ad   : > { %4205 = vmatmul.msk.bf16.gmra.mxu1 %vm1236_vm6, %v5587_v47 }
 0x3af   : > { %1517 = vmatpush.bf16.msra.mxu2 %v1487_v41 }
 0x3b3   : > { %1993 = vmatpush.bf16.xpose.msrb.mxu2 %v1991_v18  ;;  %v5817_v26 = vpop.permute.xlu1 %1571 }
 0x3b4   : > { %1644 = vmatpush.bf16.xpose.msra.mxu3 %v1622_v40  ;;  %v5808_v19 = vpop.permute.xlu2 %2283 }
 0x3b5   : > { %v2324_v15 = vsel %vm1236_vm6, %v5808_v19, 0  ;;  %v1574_v19 = vpop.permute.xlu0 %1573 }
 0x3bb   : > { %1994 = vmatpush.bf16.xpose.msrb.mxu2 %v1988_v11  ;;  %v2290_v41 = vpop.permute.xlu1 %2289 }
 0x3bc   : > { %1645 = vmatpush.bf16.xpose.msra.mxu3 %v1619_v25  ;;  %v5812_v28 = vpop.permute.xlu2 %2267  ;;  %v2333_v50 = vsel %vm1236_vm6, %v2290_v41, 0 }
 0x3bd   : > { %4206 = vmatmul.msk.bf16.gmra.mxu1 %vm1236_vm6, %v5562_v30 }
 0x3c3   : > { %1995 = vmatpush.bf16.xpose.msrb.mxu2 %v1985_v29  ;;  %v2286_v39 = vpop.permute.xlu1 %2285 }
 0x3c4   : > { %1646 = vmatpush.bf16.xpose.msra.mxu3 %v1616_v31  ;;  %v5822_v9 = vpop.permute.xlu2 %1917  ;;  %v2327_v3 = vsel %vm1236_vm6, %v2286_v39, 0 }
 0x3cb   : > { %1996 = vmatpush.bf16.xpose.msrb.mxu2 %v1982_v33  ;;  %4210 = vmatmul.msk.bf16.vlgmr.msra.gmra.mxu3 %vm1236_vm6, %v1560_v45  ;;  %v2270_v23 = vpop.permute.xlu1 %2269 }
 0x3cc   : > { %2347 = vmatpush.bf16.xpose.msrb.mxu3 %v2345_v32  ;;  %v5828_v34 = vpop.permute.xlu2 %2273 }
 0x3cd   : > { %4207 = vmatmul.msk.bf16.gmra.mxu1 %vm1236_vm6, %v5574_v22 }
 0x3d3   : > { %1997 = vmatpush.bf16.xpose.msrb.mxu2 %v1979_v60  ;;  %v5850_v49 = vpop.permute.xlu1 %1919 }
 0x3d4   : > { %2348 = vmatpush.bf16.xpose.msrb.mxu3 %v2342_v58  ;;  %v5834_v43 = vpop.permute.xlu2 %1921 }
 0x3db   : > { %1998 = vmatpush.bf16.xpose.msrb.mxu2 %v1976_v44  ;;  %4211 = vmatmul.msk.bf16.gmra.mxu3 %vm1236_vm6, %v5757_v35  ;;  %v1970_v35 = vsel %vm1236_vm6, %v1930_v14, 0  ;;  %v5859_v37 = vpop.permute.xlu1 %1923 }
 0x3dc   : > { %2349 = vmatpush.bf16.xpose.msrb.mxu3 %v2339_v48  ;;  %v5841_v45 = vpop.permute.xlu2 %2275 }
 0x3dd   : > { %4208 = vmatmul.msk.bf16.gmra.mxu1 %vm1236_vm6, %v5595_v53 }
 0x3e3   : > { %1999 = vmatpush.bf16.xpose.msrb.mxu2 %v1973_v38  ;;  %v1847_v16 = vpop.permute.xlu1 %1846 }
 0x3e4   : > { %2350 = vmatpush.bf16.xpose.msrb.mxu3 %v2336_v63  ;;  %v5847_v57 = vpop.permute.xlu2 %2279 }
 0x3eb   : > { %2000 = vmatpush.bf16.xpose.msrb.mxu2 %v1970_v35  ;;  %4212 = vmatmul.msk.bf16.gmra.mxu3 %vm1236_vm6, %v5787_v59  ;;  %v4982_v59 = vmov -1e+30  }
 0x3ec   : > { %2351 = vmatpush.bf16.xpose.msrb.mxu3 %v2333_v50  ;;  %v1855_v1 = vpop.permute.xlu2 %1854  ;;  %v5863_v21 = vsel %vm1202_vm7, 0.0, %v4982_v59 }
 0x3ed   : > { %4209 = vmatmul.msk.bf16.gmra.mxu1 %vm1236_vm6, %v5653_v61  ;;  %1864 = vmatpush.bf16.msrb.mxu0 %v1855_v1 }
 0x3f1   : > { %1865 = vmatpush.bf16.msrb.mxu0 %v5748_v20 }
 0x3f4   : > { %2352 = vmatpush.bf16.xpose.msrb.mxu3 %v2330_v12 }
 0x3f5   : > { %1866 = vmatpush.bf16.msrb.mxu0 %v5753_v51 }
 0x3f9   : > { %1867 = vmatpush.bf16.msrb.mxu0 %v5768_v27 }
 0x3fa   : > { %v1294_v4 = vpop.f32.mrf.mxu1 }
 0x3fb   : > { %4213 = vmatmul.msk.bf16.gmra.mxu3 %vm1236_vm6, %v5715_v7  ;;  %v5869_v20 = vadd.f32 %v1294_v4, %v5863_v21 }
 0x3fc   : > { %2353 = vmatpush.bf16.xpose.msrb.mxu3 %v2327_v3 }
 0x3fd   : > { %1334 = vmax.xlane.f32.xlu2 %v5869_v20  ;;  %1868 = vmatpush.bf16.msrb.mxu0 %v1847_v16 }
 0x401   : > { %1869 = vmatpush.bf16.msrb.mxu0 %v5776_v0 }
 0x402   : > { %v1296_v51 = vpop.f32.mrf.mxu1 }
 0x403   : > { %v5876_v27 = vadd.f32 %v1296_v51, %v5863_v21 }
 0x404   : > { %2354 = vmatpush.bf16.xpose.msrb.mxu3 %v2324_v15 }
 0x405   : > { %1336 = vmax.xlane.f32.xlu1 %v5876_v27 }
 0x40a   : > { %v1299_v7 = vpop.f32.mrf.mxu1 }
 0x40b   : > { %4214 = vmatmul.msk.bf16.gmra.mxu3 %vm1236_vm6, %v5764_v42  ;;  %v5897_v5 = vadd.f32 %v1299_v7, %v5863_v21 }
 0x412   : > { %v1301_v13 = vpop.f32.mrf.mxu1 }
 0x413   : > { %v5914_v60 = vadd.f32 %v1301_v13, %v5863_v21 }
 0x41a   : > { %v1304_v14 = vpop.f32.mrf.mxu1 }
 0x41b   : > { %4215 = vmatmul.msk.bf16.gmra.mxu3 %vm1236_vm6, %v5783_v52  ;;  %v5926_v63 = vadd.f32 %v1304_v14, %v5863_v21 }
 0x422   : > { %v1306_v18 = vpop.f32.mrf.mxu1 }
 0x423   : > { %v5909_v41 = vadd.f32 %v1306_v18, %v5863_v21 }
 0x42a   : > { %v1309_v40 = vpop.f32.mrf.mxu1 }
 0x42b   : > { %4216 = vmatmul.msk.bf16.gmra.mxu3 %vm1236_vm6, %v5817_v26  ;;  %v5934_v35 = vadd.f32 %v1309_v40, %v5863_v21 }
 0x432   : > { %v1311_v0 = vpop.f32.mrf.mxu1 }
 0x433   : > { %v5952_v59 = vadd.f32 %v1311_v0, %v5863_v21 }
 0x43a   : > { %v1314_v6 = vpop.f32.mrf.mxu1 }
 0x43b   : > { %4217 = vmatmul.msk.bf16.gmra.mxu3 %vm1236_vm6, %v1574_v19 }
 0x442   : > { %v5886_v11 = vpop.f32.mrf.mxu1 }
 0x44a   : > { %v5888_v25 = vpop.f32.mrf.mxu1 }
 0x44b   : > { %4226 = vmatmul.msk.bf16.vlgmr.msrb.gmra.mxu3 %vm1236_vm6, %v5812_v28 }
 0x44e   : > { %v1648_v42 = vpop.f32.mrf.mxu3 }
 0x44f   : > { %v5893_v52 = vadd.f32 %v1648_v42, %v5863_v21 }
 0x451   : > { %1688 = vmax.xlane.f32.xlu0 %v5893_v52 }
 0x452   : > { %v1321_v29 = vpop.f32.mrf.mxu1 }
 0x453   : > { %v5966_v15 = vadd.f32 %v1321_v29, %v5863_v21  ;;  %v5998_v29 = vadd.f32 %v5888_v25, %v5863_v21 }
 0x456   : > { %v1650_v26 = vpop.f32.mrf.mxu3 }
 0x457   : > { %v5900_v31 = vadd.f32 %v1650_v26, %v5863_v21 }
 0x459   : > { %1690 = vmax.xlane.f32.xlu1 %v5900_v31  ;;  %1338 = vmax.xlane.f32.xlu0 %v5897_v5 }
 0x45a   : > { %v1324_v28 = vpop.f32.mrf.mxu1 }
 0x45b   : > { %4227 = vmatmul.msk.bf16.gmra.mxu3 %vm1236_vm6, %v2270_v23  ;;  %v5972_v16 = vadd.f32 %v1324_v28, %v5863_v21 }
 0x45e   : > { %v1653_v32 = vpop.f32.mrf.mxu3 }
 0x45f   : > { %v5906_v33 = vadd.f32 %v1653_v32, %v5863_v21 }
 0x461   : > { %1692 = vmax.xlane.f32.xlu2 %v5906_v33  ;;  %1344 = vmax.xlane.f32.xlu1 %v5909_v41 }
 0x462   : > { %v5919_v39 = vpop.f32.mrf.mxu1 }
 0x463   : > { %v6011_v25 = vadd.f32 %v5919_v39, %v5863_v21 }
 0x466   : > { %v1655_v58 = vpop.f32.mrf.mxu3 }
 0x467   : > { %v5917_v48 = vadd.f32 %v1655_v58, %v5863_v21 }
 0x469   : > { %1340 = vmax.xlane.f32.xlu2 %v5914_v60  ;;  %1694 = vmax.xlane.f32.xlu0 %v5917_v48 }
 0x46a   : > { %v1329_v38 = vpop.f32.mrf.mxu1 }
 0x46b   : > { %4228 = vmatmul.msk.bf16.gmra.mxu3 %vm1236_vm6, %v5738_v8  ;;  %v5979_v13 = vadd.f32 %v1329_v38, %v5863_v21 }
 0x46e   : > { %v1658_v44 = vpop.f32.mrf.mxu3 }
 0x46f   : > { %v5929_v23 = vadd.f32 %v1658_v44, %v5863_v21 }
 0x470   : > { %v1335_v51 = vpop.xlane.xlu2 %1334 }
 0x471   : > { %1696 = vmax.xlane.f32.xlu2 %v5929_v23  ;;  %1342 = vmax.xlane.f32.xlu0 %v5926_v63 }
 0x472   : > { %v1331_v8 = vpop.f32.mrf.mxu1 }
 0x473   : > { %v5947_v54 = vadd.f32 %v1331_v8, %v5863_v21 }
 0x476   : > { %v1660_v50 = vpop.f32.mrf.mxu3 }
 0x477   : > { %v5937_v12 = vadd.f32 %v1660_v50, %v5863_v21 }
 0x478   : > { %v1337_v40 = vpop.xlane.xlu1 %1336 }
 0x479   : > { %1698 = vmax.xlane.f32.xlu1 %v5937_v12  ;;  %1346 = vmax.xlane.f32.xlu0 %v5934_v35  ;;  %v1367_v19 = vsub.f32 %v5876_v27, %v1337_v40 }
 0x47b   : > { %4229 = vmatmul.msk.bf16.gmra.mxu3 %vm1236_vm6, %v5828_v34  ;;  %v5962_v34 = vadd.f32 %v1314_v6, %v5863_v21  ;;  %v1384_v6 = vmul.f32 1.442695, %v1367_v19 }
 0x47e   : > { %v1663_v1 = vpop.f32.mrf.mxu3 }
 0x47f   : > { %v5944_v2 = vadd.f32 %v1663_v1, %v5863_v21 }
 0x481   : > { %1700 = vmax.xlane.f32.xlu2 %v5944_v2  ;;  %1364 = vmax.xlane.f32.xlu1 %v5947_v54 }
 0x486   : > { %v1665_v3 = vpop.f32.mrf.mxu3 }
 0x487   : > { %v5955_v4 = vadd.f32 %v1665_v3, %v5863_v21 }
 0x489   : > { %1348 = vmax.xlane.f32.xlu2 %v5952_v59  ;;  %1702 = vmax.xlane.f32.xlu0 %v5955_v4 }
 0x48b   : > { %4230 = vmatmul.msk.bf16.gmra.mxu3 %vm1236_vm6, %v5841_v45  ;;  %v1366_v45 = vsub.f32 %v5869_v20, %v1335_v51  ;;  %v5990_v20 = vadd.f32 %v5886_v11, %v5863_v21 }
 0x48d   : > { %v1382_v7 = vmul.f32 1.442695, %v1366_v45 }
 0x48f   : > { %4564 = vpow2.f32 %v1382_v7 }
 0x491   : > { %1350 = vmax.xlane.f32.xlu0 %v5962_v34 }
 0x499   : > { %1356 = vmax.xlane.f32.xlu0 %v5966_v15 }
 0x49b   : > { %4231 = vmatmul.msk.bf16.gmra.mxu3 %vm1236_vm6, %v5743_v55  ;;  %v5984_v55 = vpop.eup %4564 }
 0x4a1   : > { %1842 = vrot.lane.b32.xlu2 %v5585_v46, %s4981_s20  ;;  %1358 = vmax.xlane.f32.xlu0 %v5972_v16 }
 0x4a9   : > { %1362 = vmax.xlane.f32.xlu0 %v5979_v13 }
 0x4ab   : > { %4232 = vmatmul.msk.bf16.gmra.mxu3 %vm1236_vm6, %v5847_v57 }
 0x4b1   : > { %1414 = vadd.xlane.f32.xlu0 %v5984_v55 }
 0x4c4   : > { %v1689_v14 = vpop.xlane.xlu0 %1688 }
 0x4c5   : > { %v1720_v18 = vsub.f32 %v5893_v52, %v1689_v14 }
 0x4c7   : > { %v1736_v0 = vmul.f32 1.442695, %v1720_v18 }
 0x4c9   : > { %4566 = vpow2.f32 %v1736_v0 }
 0x4ca   : > { %1352 = vmax.xlane.f32.xlu2 %v5990_v20  ;;  %4568 = vpow2.f32 %v1384_v6 }
 0x4cc   : > { %v1339_v57 = vpop.xlane.xlu0 %1338  ;;  %v1691_v52 = vpop.xlane.xlu1 %1690 }
 0x4cd   : > { %v1368_v11 = vsub.f32 %v5897_v5, %v1339_v57  ;;  %v1721_v27 = vsub.f32 %v5900_v31, %v1691_v52 }
 0x4cf   : > { %v5994_v42 = vpop.eup %4566  ;;  %v1386_v28 = vmul.f32 1.442695, %v1368_v11  ;;  %v1738_v58 = vmul.f32 1.442695, %v1721_v27 }
 0x4d0   : > { %1768 = vadd.xlane.f32.xlu1 %v5994_v42  ;;  %v6006_v32 = vpop.eup %4568 }
 0x4d1   : > { %4570 = vpow2.f32 %v1386_v28 }
 0x4d2   : > { %1354 = vmax.xlane.f32.xlu2 %v5998_v29  ;;  %4572 = vpow2.f32 %v1738_v58 }
 0x4d4   : > { %v6004_v26 = vpop.xlane.xlu2 %1692  ;;  %v1345_v51 = vpop.xlane.xlu1 %1344 }
 0x4d7   : > { %v6015_v38 = vpop.eup %4570 }
 0x4d8   : > { %1416 = vadd.xlane.f32.xlu1 %v6006_v32  ;;  %v6018_v8 = vpop.eup %4572 }
 0x4da   : > { %1360 = vmax.xlane.f32.xlu2 %v6011_v25 }
 0x4dc   : > { %v1341_v5 = vpop.xlane.xlu2 %1340  ;;  %v1695_v44 = vpop.xlane.xlu0 %1694 }
 0x4dd   : > { %v1369_v31 = vsub.f32 %v5914_v60, %v1341_v5  ;;  %v1371_v60 = vsub.f32 %v5909_v41, %v1345_v51 }
 0x4df   : > { %v1388_v50 = vmul.f32 1.442695, %v1369_v31  ;;  %v1392_v14 = vmul.f32 1.442695, %v1371_v60 }
 0x4e0   : > { %1418 = vadd.xlane.f32.xlu1 %v6015_v38 }
 0x4e1   : > { %4574 = vpow2.f32 %v1388_v50 }
 0x4e2   : > { %1770 = vadd.xlane.f32.xlu2 %v6018_v8 }
 0x4e4   : > { %v1343_v39 = vpop.xlane.xlu0 %1342  ;;  %v1697_v7 = vpop.xlane.xlu2 %1696 }
 0x4e5   : > { %v1370_v1 = vsub.f32 %v5926_v63, %v1343_v39  ;;  %v1668_v63 = vpop.f32.mrf.mxu3 }
 0x4e7   : > { %v6022_v3 = vpop.eup %4574  ;;  %v1390_v45 = vmul.f32 1.442695, %v1370_v1 }
 0x4e8   : > { %1420 = vadd.xlane.f32.xlu0 %v6022_v3 }
 0x4e9   : > { %4576 = vpow2.f32 %v1390_v45 }
 0x4ea   : > { %4578 = vpow2.f32 %v1392_v14 }
 0x4ec   : > { %v1347_v18 = vpop.xlane.xlu0 %1346 }
 0x4ed   : > { %v1372_v0 = vsub.f32 %v5934_v35, %v1347_v18  ;;  %v6037_v11 = vpop.f32.mrf.mxu3 }
 0x4ef   : > { %v6026_v40 = vpop.eup %4576  ;;  %v1394_v6 = vmul.f32 1.442695, %v1372_v0 }
 0x4f0   : > { %1422 = vadd.xlane.f32.xlu0 %v6026_v40  ;;  %v6032_v57 = vpop.eup %4578 }
 0x4f1   : > { %4580 = vpow2.f32 %v1394_v6 }
 0x4f4   : > { %v6030_v19 = vpop.xlane.xlu2 %1700 }
 0x4f5   : > { %v1673_v39 = vpop.f32.mrf.mxu3 }
 0x4f7   : > { %v6040_v58 = vpop.eup %4580 }
 0x4f8   : > { %1424 = vadd.xlane.f32.xlu0 %v6032_v57 }
 0x4fc   : > { %v1349_v41 = vpop.xlane.xlu2 %1348  ;;  %v6035_v52 = vpop.xlane.xlu0 %1702 }
 0x4fd   : > { %v1373_v27 = vsub.f32 %v5952_v59, %v1349_v41  ;;  %v1675_v14 = vpop.f32.mrf.mxu3  ;;  %v6058_v41 = vadd.f32 %v1668_v63, %v5863_v21 }
 0x4ff   : > { %v1396_v28 = vmul.f32 1.442695, %v1373_v27 }
 0x500   : > { %1426 = vadd.xlane.f32.xlu0 %v6040_v58 }
 0x501   : > { %4582 = vpow2.f32 %v1396_v28  ;;  %v6067_v28 = vadd.f32 %v1673_v39, %v5863_v21 }
 0x504   : > { %v1843_v35 = vpop.permute.xlu2 %1842  ;;  %v1351_v5 = vpop.xlane.xlu0 %1350 }
 0x505   : > { %v1374_v31 = vsub.f32 %v5962_v34, %v1351_v5  ;;  %1870 = vmatpush.bf16.msrb.mxu0 %v1843_v35  ;;  %v1723_v34 = vsub.f32 %v5917_v48, %v1695_v44  ;;  %v6055_v0 = vpop.f32.mrf.mxu3  ;;  %v1724_v48 = vsub.f32 %v5929_v23, %v1697_v7  ;;  %v1699_v44 = vpop.xlane.xlu1 %1698 }
 0x507   : > { %v6044_v50 = vpop.eup %4582  ;;  %v1398_v1 = vmul.f32 1.442695, %v1374_v31  ;;  %v1742_v6 = vmul.f32 1.442695, %v1723_v34  ;;  %v1744_v5 = vmul.f32 1.442695, %v1724_v48  ;;  %v6074_v31 = vadd.f32 %v1675_v14, %v5863_v21 }
 0x508   : > { %1428 = vadd.xlane.f32.xlu0 %v6044_v50  ;;  %v1726_v14 = vsub.f32 %v5944_v2, %v6030_v19 }
 0x509   : > { %4584 = vpow2.f32 %v1398_v1 }
 0x50c   : > { %v1357_v51 = vpop.xlane.xlu0 %1356 }
 0x50d   : > { %v1377_v59 = vsub.f32 %v5966_v15, %v1357_v51  ;;  %v6061_v15 = vpop.f32.mrf.mxu3  ;;  %v1725_v51 = vsub.f32 %v5937_v12, %v1699_v44  ;;  %v6078_v39 = vpop.xlane.xlu1 %1364  ;;  %v1748_v44 = vmul.f32 1.442695, %v1726_v14 }
 0x50f   : > { %v6048_v45 = vpop.eup %4584  ;;  %v1404_v60 = vmul.f32 1.442695, %v1377_v59 }
 0x510   : > { %1430 = vadd.xlane.f32.xlu2 %v6048_v45 }
 0x511   : > { %4586 = vpow2.f32 %v1404_v60  ;;  %v1746_v60 = vmul.f32 1.442695, %v1725_v51 }
 0x512   : > { %4588 = vpow2.f32 %v1742_v6 }
 0x513   : > { %4590 = vpow2.f32 %v1744_v5 }
 0x514   : > { %v1359_v63 = vpop.xlane.xlu0 %1358  ;;  %4592 = vpow2.f32 %v1746_v60 }
 0x515   : > { %v6069_v35 = vpop.f32.mrf.mxu3  ;;  %v1378_v6 = vsub.f32 %v5972_v16, %v1359_v63 }
 0x517   : > { %v6051_v18 = vpop.eup %4586  ;;  %v1406_v51 = vmul.f32 1.442695, %v1378_v6 }
 0x518   : > { %1436 = vadd.xlane.f32.xlu1 %v6051_v18  ;;  %v6063_v27 = vpop.eup %4588 }
 0x519   : > { %v6083_v7 = vpop.eup %4590 }
 0x51a   : > { %v6094_v46 = vpop.eup %4592 }
 0x51c   : > { %v6080_v59 = vpop.xlane.xlu0 %1362 }
 0x51d   : > { %v1685_v1 = vpop.f32.mrf.mxu3 }
 0x520   : > { %1704 = vmax.xlane.f32.xlu1 %v6058_v41 }
 0x525   : > { %v6089_v12 = vpop.f32.mrf.mxu3 }
 0x528   : > { %1774 = vadd.xlane.f32.xlu1 %v6063_v27 }
 0x52d   : > { %v2358_v60 = vpop.f32.mrf.mxu3 }
 0x530   : > { %1708 = vmax.xlane.f32.xlu1 %v6067_v28 }
 0x538   : > { %1710 = vmax.xlane.f32.xlu1 %v6074_v31 }
 0x53d   : > { %v1353_v34 = vpop.xlane.xlu2 %1352 }
 0x53e   : > { %v1375_v23 = vsub.f32 %v5990_v20, %v1353_v34  ;;  %v1415_v20 = vpop.xlane.xlu0 %1414 }
 0x540   : > { %v1400_v48 = vmul.f32 1.442695, %v1375_v23  ;;  %1776 = vadd.xlane.f32.xlu1 %v6083_v7 }
 0x542   : > { %4594 = vpow2.f32 %v1400_v48 }
 0x543   : > { %v6091_v5 = vpop.xlane.xlu1 %1768  ;;  %4596 = vpow2.f32 %v1748_v44 }
 0x544   : > { %4598 = vpow2.f32 %v1406_v51 }
 0x545   : > { %v1355_v36 = vpop.xlane.xlu2 %1354  ;;  %4600 = vrcp.f32 %v1415_v20 }
 0x546   : > { %v1376_v34 = vsub.f32 %v5998_v29, %v1355_v36 }
 0x548   : > { %v6096_v2 = vpop.eup %4594  ;;  %v1402_v16 = vmul.f32 1.442695, %v1376_v34  ;;  %1778 = vadd.xlane.f32.xlu1 %v6094_v46 }
 0x549   : > { %1432 = vadd.xlane.f32.xlu2 %v6096_v2  ;;  %v6100_v63 = vpop.eup %4596 }
 0x54a   : > { %4602 = vpow2.f32 %v1402_v16  ;;  %v6102_v36 = vpop.eup %4598  ;;  %v6113_v16 = vadd.f32 %v1685_v1, %v5863_v21 }
 0x54b   : > { %v1417_v19 = vpop.xlane.xlu1 %1416  ;;  %v4601_v14 = vpop.eup %4600 }
 0x54c   : > { %4604 = vrcp.f32 %v1417_v19  ;;  %v1462_v51 = vmul.f32 %v4601_v14, %v5984_v55  ;;  %v6122_v55 = vadd.f32 %v2358_v60, %v5863_v21  ;;  %v1381_v60 = vsub.f32 %v5947_v54, %v6078_v39 }
 0x54d   : > { %v1361_v23 = vpop.xlane.xlu2 %1360 }
 0x54e   : > { %v1379_v29 = vsub.f32 %v6011_v25, %v1361_v23  ;;  %v6115_v25 = vpop.f32.mrf.mxu3  ;;  %7382 = vst [vmem:[#allocation12_spill] sm:$0xff] %v6122_v55 }
 0x550   : > { %v6105_v6 = vpop.eup %4602  ;;  %v1408_v48 = vmul.f32 1.442695, %v1379_v29  ;;  %1780 = vadd.xlane.f32.xlu1 %v6100_v63 }
 0x551   : > { %1434 = vadd.xlane.f32.xlu0 %v6105_v6  ;;  %1438 = vadd.xlane.f32.xlu2 %v6102_v36 }
 0x552   : > { %v4605_v44 = vpop.eup %4604  ;;  %4606 = vpow2.f32 %v1408_v48 }
 0x553   : > { %v1463_v20 = vmul.f32 %v4605_v44, %v6006_v32  ;;  %v1419_v19 = vpop.xlane.xlu1 %1418 }
 0x554   : > { %4608 = vrcp.f32 %v1419_v19 }
 0x555   : > { %v1478_v34 = vpack.c.bf16 %v1463_v20, %v1462_v51 }
 0x556   : > { %v2363_v1 = vpop.f32.mrf.mxu3 }
 0x557   : > { %1518 = vmatmul.bf16.vlgmr.msra.gmra.mxu2 %v1478_v34  ;;  %v6128_v34 = vadd.f32 %v2363_v1, %v5863_v21 }
 0x558   : > { %v6117_v23 = vpop.eup %4606  ;;  %1718 = vmax.xlane.f32.xlu1 %v6113_v16 }
 0x559   : > { %1440 = vadd.xlane.f32.xlu0 %v6117_v23  ;;  %7383 = vst [vmem:[#allocation13_spill] sm:$0xff] %v6128_v34 }
 0x55a   : > { %v4609_v32 = vpop.eup %4608 }
 0x55b   : > { %v1421_v29 = vpop.xlane.xlu0 %1420  ;;  %v1464_v48 = vmul.f32 %v4609_v32, %v6015_v38  ;;  %v1412_v38 = vmul.f32 1.442695, %v1381_v60 }
 0x55c   : > { %4610 = vrcp.f32 %v1421_v29 }
 0x55e   : > { %v2366_v19 = vpop.f32.mrf.mxu3 }
 0x560   : > { %2398 = vmax.xlane.f32.xlu1 %v6122_v55 }
 0x562   : > { %v4611_v14 = vpop.eup %4610 }
 0x563   : > { %v1465_v44 = vmul.f32 %v4611_v14, %v6022_v3  ;;  %v1423_v51 = vpop.xlane.xlu0 %1422  ;;  %v6138_v3 = vadd.f32 %v2366_v19, %v5863_v21  ;;  %v1722_v19 = vsub.f32 %v5906_v33, %v6004_v26 }
 0x564   : > { %4612 = vrcp.f32 %v1423_v51 }
 0x565   : > { %v1479_v20 = vpack.c.bf16 %v1465_v44, %v1464_v48  ;;  %7384 = vst [vmem:[#allocation14_spill] sm:$0xff] %v6138_v3 }
 0x567   : > { %1523 = vmatmul.bf16.gmra.mxu2 %v1479_v20 }
 0x568   : > { %2402 = vmax.xlane.f32.xlu1 %v6128_v34 }
 0x569   : > { %1840 = vrot.lane.b32.xlu2 %v5609_v62, %s4981_s20 }
 0x56a   : > { %v4613_v32 = vpop.eup %4612 }
 0x56b   : > { %v1425_v29 = vpop.xlane.xlu0 %1424  ;;  %v1466_v39 = vmul.f32 %v4613_v32, %v6026_v40  ;;  %v1380_v32 = vsub.f32 %v5979_v13, %v6080_v59  ;;  %v6164_v13 = vadd.f32 %v6061_v15, %v5863_v21 }
 0x56c   : > { %4614 = vrcp.f32 %v1425_v29 }
 0x56d   : > { %1927 = vrot.lane.b32.xlu0 %v5653_v61, %s4979_s0  ;;  %4616 = vpow2.f32 %v1412_v38 }
 0x570   : > { %2404 = vmax.xlane.f32.xlu1 %v6138_v3 }
 0x572   : > { %v4615_v1 = vpop.eup %4614 }
 0x573   : > { %v1427_v54 = vpop.xlane.xlu0 %1426  ;;  %v1467_v14 = vmul.f32 %v4615_v1, %v6032_v57  ;;  %v6143_v44 = vpop.eup %4616  ;;  %v1740_v57 = vmul.f32 1.442695, %v1722_v19 }
 0x574   : > { %4618 = vrcp.f32 %v1427_v54  ;;  %v1410_v54 = vmul.f32 1.442695, %v1380_v32 }
 0x575   : > { %v1480_v48 = vpack.c.bf16 %v1467_v14, %v1466_v39  ;;  %v1771_v14 = vpop.xlane.xlu2 %1770 }
 0x577   : > { %1528 = vmatmul.bf16.gmra.mxu2 %v1480_v48 }
 0x578   : > { %1444 = vadd.xlane.f32.xlu1 %v6143_v44 }
 0x57a   : > { %v4619_v20 = vpop.eup %4618 }
 0x57b   : > { %v1429_v51 = vpop.xlane.xlu0 %1428  ;;  %v1468_v29 = vmul.f32 %v4619_v20, %v6040_v58 }
 0x57c   : > { %4620 = vrcp.f32 %v1429_v51 }
 0x57d   : > { %4622 = vpow2.f32 %v1740_v57 }
 0x57e   : > { %4624 = vpow2.f32 %v1410_v54 }
 0x582   : > { %v4621_v60 = vpop.eup %4620 }
 0x583   : > { %v1469_v40 = vmul.f32 %v4621_v60, %v6044_v50  ;;  %v6152_v39 = vpop.eup %4622  ;;  %v6173_v50 = vadd.f32 %v6069_v35, %v5863_v21  ;;  %v1431_v48 = vpop.xlane.xlu2 %1430 }
 0x584   : > { %v6159_v26 = vpop.eup %4624  ;;  %4626 = vrcp.f32 %v1431_v48 }
 0x585   : > { %v1481_v38 = vpack.c.bf16 %v1469_v40, %v1468_v29  ;;  %v6191_v29 = vpop.f32.mrf.mxu3 }
 0x587   : > { %1533 = vmatmul.bf16.gmra.mxu2 %v1481_v38 }
 0x58a   : > { %v4627_v60 = vpop.eup %4626 }
 0x58b   : > { %v1437_v1 = vpop.xlane.xlu1 %1436  ;;  %v1470_v38 = vmul.f32 %v4627_v60, %v6048_v45 }
 0x58d   : > { %v2371_v62 = vpop.f32.mrf.mxu3 }
 0x58e   : > { %v6200_v60 = vadd.f32 %v2371_v62, %v5863_v21 }
 0x591   : > { %2562 = vrot.lane.b32.xlu1 %v5653_v61, %s4983_s21 }
 0x592   : > { %1772 = vadd.xlane.f32.xlu2 %v6152_v39 }
 0x593   : > { %v6157_v33 = vpop.xlane.xlu1 %1704 }
 0x597   : > { %1442 = vadd.xlane.f32.xlu0 %v6159_v26 }
 0x599   : > { %2558 = vrot.lane.b32.xlu1 %v5574_v22, %s4983_s21 }
 0x59a   : > { %1714 = vmax.xlane.f32.xlu2 %v6164_v13 }
 0x59b   : > { %v6169_v58 = vpop.xlane.xlu1 %1774 }
 0x5a1   : > { %2556 = vrot.lane.b32.xlu1 %v5562_v30, %s4983_s21 }
 0x5a2   : > { %1716 = vmax.xlane.f32.xlu2 %v6173_v50 }
 0x5a3   : > { %v6178_v59 = vpop.xlane.xlu1 %1708 }
 0x5a9   : > { %2200 = vrot.lane.b32.xlu1 %v5587_v47, %s4984_s14 }
 0x5ab   : > { %v6182_v15 = vpop.xlane.xlu1 %1710  ;;  %2281 = vrot.lane.b32.xlu0 %v5653_v61, %s4980_s18 }
 0x5b3   : > { %v6186_v35 = vpop.xlane.xlu1 %1776 }
 0x5bb   : > { %v6188_v20 = vpop.xlane.xlu1 %1778 }
 0x5bc   : > { %v1433_v51 = vpop.xlane.xlu2 %1432 }
 0x5bd   : > { %4628 = vrcp.f32 %v1433_v51 }
 0x5be   : > { %4630 = vrcp.f32 %v1771_v14 }
 0x5bf   : > { %4632 = vrcp.f32 %v6091_v5 }
 0x5c3   : > { %v4629_v19 = vpop.eup %4628  ;;  %v6195_v51 = vpop.xlane.xlu1 %1780 }
 0x5c4   : > { %v1439_v40 = vpop.xlane.xlu2 %1438  ;;  %v1471_v57 = vmul.f32 %v4629_v19, %v6096_v2  ;;  %v1435_v32 = vpop.xlane.xlu0 %1434 }
 0x5c5   : > { %v4631_v3 = vpop.eup %4630  ;;  %4634 = vrcp.f32 %v1435_v32 }
 0x5c6   : > { %v1482_v54 = vpack.c.bf16 %v1471_v57, %v1470_v38  ;;  %v4633_v48 = vpop.eup %4632  ;;  %v1817_v14 = vmul.f32 %v4631_v3, %v6018_v8  ;;  %4636 = vrcp.f32 %v1437_v1  ;;  %v6205_v38 = vadd.f32 %v6037_v11, %v5863_v21 }
 0x5c7   : > { %v1816_v5 = vmul.f32 %v4633_v48, %v5994_v42  ;;  %v6216_v11 = vadd.f32 %v6055_v0, %v5863_v21  ;;  %v1730_v0 = vsub.f32 %v6067_v28, %v6178_v59 }
 0x5c8   : > { %1538 = vmatmul.bf16.gmra.mxu2 %v1482_v54 }
 0x5c9   : > { %v1832_v55 = vpack.c.bf16 %v1817_v14, %v1816_v5 }
 0x5cb   : > { %v4635_v45 = vpop.eup %4634  ;;  %v6207_v8 = vpop.xlane.xlu1 %1718 }
 0x5cc   : > { %v1841_v34 = vpop.permute.xlu2 %1840  ;;  %v4637_v2 = vpop.eup %4636  ;;  %v1472_v19 = vmul.f32 %v4635_v45, %v6105_v6 }
 0x5cd   : > { %1871 = vmatpush.bf16.msrb.mxu0 %v1841_v34  ;;  %v1473_v42 = vmul.f32 %v4637_v2, %v6051_v18  ;;  %v1441_v34 = vpop.xlane.xlu0 %1440  ;;  %v1728_v18 = vsub.f32 %v6058_v41, %v6157_v33  ;;  %v1756_v41 = vmul.f32 1.442695, %v1730_v0 }
 0x5ce   : > { %4638 = vrcp.f32 %v1441_v34 }
 0x5cf   : > { %v1483_v62 = vpack.c.bf16 %v1473_v42, %v1472_v19  ;;  %4640 = vrcp.f32 %v1439_v40 }
 0x5d0   : > { %1872 = vmatmul.bf16.vlgmr.msrb.gmra.mxu0 %v1832_v55  ;;  %v1727_v55 = vsub.f32 %v5955_v4, %v6035_v52  ;;  %v1752_v52 = vmul.f32 1.442695, %v1728_v18 }
 0x5d2   : > { %v1750_v6 = vmul.f32 1.442695, %v1727_v55 }
 0x5d3   : > { %2408 = vmax.xlane.f32.xlu1 %v6200_v60  ;;  %v6218_v3 = vpop.xlane.xlu1 %2398 }
 0x5d4   : > { %4642 = vpow2.f32 %v1750_v6  ;;  %v4639_v1 = vpop.eup %4638 }
 0x5d5   : > { %1706 = vmax.xlane.f32.xlu0 %v6205_v38  ;;  %v4641_v4 = vpop.eup %4640  ;;  %v1475_v57 = vmul.f32 %v4639_v1, %v6117_v23  ;;  %4644 = vpow2.f32 %v1752_v52 }
 0x5d6   : > { %v1474_v54 = vmul.f32 %v4641_v4, %v6102_v36  ;;  %4646 = vpow2.f32 %v1756_v41 }
 0x5d7   : > { %4648 = vrcp.f32 %v6169_v58 }
 0x5d8   : > { %1543 = vmatmul.bf16.gmra.mxu2 %v1483_v62  ;;  %v1484_v40 = vpack.c.bf16 %v1475_v57, %v1474_v54 }
 0x5da   : > { %v6224_v32 = vpop.eup %4642  ;;  %v6247_v18 = vpop.f32.mrf.mxu2 }
 0x5db   : > { %v6230_v48 = vpop.xlane.xlu1 %2402  ;;  %v6232_v33 = vpop.eup %4644 }
 0x5dc   : > { %v6239_v23 = vpop.eup %4646 }
 0x5dd   : > { %1712 = vmax.xlane.f32.xlu0 %v6216_v11  ;;  %v4649_v45 = vpop.eup %4648 }
 0x5de   : > { %v1819_v55 = vmul.f32 %v4649_v45, %v6063_v27 }
 0x5df   : > { %v6242_v59 = vpop.permute.xlu0 %1927 }
 0x5e2   : > { %v6253_v57 = vpop.f32.mrf.mxu2 }
 0x5e3   : > { %v6237_v36 = vpop.xlane.xlu1 %2404 }
 0x5e5   : > { %1782 = vadd.xlane.f32.xlu0 %v6224_v32 }
 0x5e8   : > { %1548 = vmatmul.bf16.gmra.mxu2 %v1484_v40 }
 0x5eb   : > { %v1445_v28 = vpop.xlane.xlu1 %1444 }
 0x5ec   : > { %2552 = vrot.lane.b32.xlu1 %v5568_v10, %s4983_s21 }
 0x5ed   : > { %1784 = vadd.xlane.f32.xlu0 %v6232_v33 }
 0x5f5   : > { %1788 = vadd.xlane.f32.xlu0 %v6239_v23 }
 0x603   : > { %v2563_v14 = vpop.permute.xlu1 %2562 }
 0x604   : > { %2572 = vmatpush.bf16.msra.mxu0 %v2563_v14 }
 0x605   : > { %v1773_v5 = vpop.xlane.xlu2 %1772 }
 0x606   : > { %4650 = vrcp.f32 %v1773_v5 }
 0x607   : > { %4652 = vrcp.f32 %v1445_v28 }
 0x60a   : > { %v1443_v2 = vpop.xlane.xlu0 %1442 }
 0x60b   : > { %4654 = vrcp.f32 %v1443_v2  ;;  %v1731_v2 = vsub.f32 %v6074_v31, %v6182_v15 }
 0x60c   : > { %v4651_v19 = vpop.eup %4650  ;;  %4656 = vrcp.f32 %v6188_v20 }
 0x60d   : > { %v1818_v42 = vmul.f32 %v4651_v19, %v6152_v39  ;;  %v4653_v34 = vpop.eup %4652  ;;  %4658 = vrcp.f32 %v6186_v35  ;;  %v1758_v19 = vmul.f32 1.442695, %v1731_v2 }
 0x60e   : > { %v1477_v1 = vmul.f32 %v4653_v34, %v6143_v44 }
 0x60f   : > { %v1833_v62 = vpack.c.bf16 %v1819_v55, %v1818_v42 }
 0x611   : > { %v4655_v6 = vpop.eup %4654  ;;  %1877 = vmatmul.bf16.gmra.mxu0 %v1833_v62 }
 0x612   : > { %v1476_v58 = vmul.f32 %v4655_v6, %v6159_v26  ;;  %v4657_v52 = vpop.eup %4656  ;;  %v6258_v26 = vpop.f32.mrf.mxu2  ;;  %v6301_v6 = vadd.f32 %v6191_v29, %v5863_v21  ;;  %v6314_v29 = vadd.f32 %v6115_v25, %v5863_v21 }
 0x613   : > { %v4659_v39 = vpop.eup %4658  ;;  %v1821_v27 = vmul.f32 %v4657_v52, %v6094_v46  ;;  %7385 = vst [vmem:[#allocation15_spill] sm:$0xff] %v6258_v26 }
 0x614   : > { %v1485_v4 = vpack.c.bf16 %v1477_v1, %v1476_v58  ;;  %v1820_v0 = vmul.f32 %v4659_v39, %v6083_v7 }
 0x616   : > { %1553 = vmatmul.bf16.gmra.mxu2 %v1485_v4  ;;  %v1834_v20 = vpack.c.bf16 %v1821_v27, %v1820_v0 }
 0x61a   : > { %v6262_v44 = vpop.f32.mrf.mxu2 }
 0x61d   : > { %v2282_v54 = vpop.permute.xlu0 %2281 }
 0x61e   : > { %4233 = vmatmul.msk.bf16.gmra.mxu3 %vm1236_vm6, %v2282_v54 }
 0x621   : > { %1882 = vmatmul.bf16.gmra.mxu0 %v1834_v20 }
 0x622   : > { %v6266_v35 = vpop.f32.mrf.mxu2 }
 0x623   : > { %7386 = vst [vmem:[#allocation16_spill] sm:$0xff] %v6266_v35 }
 0x626   : > { %4218 = vmatmul.msk.bf16.vlgmr.msrb.gmra.mxu2 %vm1236_vm6, %v5728_v17  ;;  %v1715_v17 = vpop.xlane.xlu2 %1714 }
 0x62a   : > { %v6268_v46 = vpop.f32.mrf.mxu2 }
 0x62b   : > { %7387 = vst [vmem:[#allocation17_spill] sm:$0xff] %v6268_v46 }
 0x62e   : > { %v1717_v42 = vpop.xlane.xlu2 %1716 }
 0x632   : > { %v6273_v28 = vpop.f32.mrf.mxu2 }
 0x633   : > { %7388 = vst [vmem:[#allocation18_spill] sm:$0xff] %v6273_v28 }
 0x636   : > { %4219 = vmatmul.msk.bf16.gmra.mxu2 %vm1236_vm6, %v5733_v56 }
 0x646   : > { %4220 = vmatmul.msk.bf16.gmra.mxu2 %vm1236_vm6, %v5822_v9  ;;  %v6284_v9 = vpop.f32.mrf.mxu2 }
 0x647   : > { %7389 = vst [vmem:[#allocation19_spill] sm:$0xff] %v6284_v9 }
 0x648   : > { %v1707_v7 = vpop.xlane.xlu0 %1706 }
 0x649   : > { %v1729_v40 = vsub.f32 %v6205_v38, %v1707_v7  ;;  %v2373_v7 = vpop.f32.mrf.mxu3 }
 0x64b   : > { %v1754_v41 = vmul.f32 1.442695, %v1729_v40 }
 0x64d   : > { %4660 = vpow2.f32 %v1754_v41 }
 0x650   : > { %v1713_v14 = vpop.xlane.xlu0 %1712 }
 0x651   : > { %v1732_v5 = vsub.f32 %v6216_v11, %v1713_v14  ;;  %v6288_v11 = vadd.f32 %v6089_v12, %v5863_v21 }
 0x653   : > { %v6276_v45 = vpop.eup %4660  ;;  %v1760_v56 = vmul.f32 1.442695, %v1732_v5  ;;  %v6374_v5 = vadd.f32 %v2373_v7, %v5863_v21 }
 0x654   : > { %1786 = vadd.xlane.f32.xlu2 %v6276_v45 }
 0x655   : > { %4662 = vpow2.f32 %v1760_v56 }
 0x656   : > { %4221 = vmatmul.msk.bf16.gmra.mxu2 %vm1236_vm6, %v5850_v49  ;;  %4664 = vrcp.f32 %v6195_v51  ;;  %v1734_v49 = vsub.f32 %v6173_v50, %v1717_v42  ;;  %v6295_v51 = vpop.f32.mrf.mxu2  ;;  %v1733_v50 = vsub.f32 %v6164_v13, %v1715_v17 }
 0x657   : > { %7390 = vst [vmem:[#allocation20_spill] sm:$0xff] %v6295_v51 }
 0x658   : > { %v1783_v38 = vpop.xlane.xlu0 %1782  ;;  %v1764_v12 = vmul.f32 1.442695, %v1734_v49 }
 0x659   : > { %4666 = vrcp.f32 %v1783_v38 }
 0x65a   : > { %4668 = vpow2.f32 %v1758_v19 }
 0x65b   : > { %v6290_v55 = vpop.eup %4662  ;;  %4670 = vpow2.f32 %v1764_v12 }
 0x65c   : > { %2396 = vmax.xlane.f32.xlu2 %v6288_v11  ;;  %1792 = vadd.xlane.f32.xlu0 %v6290_v55  ;;  %v4665_v31 = vpop.eup %4664 }
 0x65d   : > { %v1822_v34 = vmul.f32 %v4665_v31, %v6100_v63  ;;  %v1762_v63 = vmul.f32 1.442695, %v1733_v50 }
 0x65f   : > { %v4667_v15 = vpop.eup %4666  ;;  %4672 = vpow2.f32 %v1762_v63 }
 0x660   : > { %v1823_v62 = vmul.f32 %v4667_v15, %v6224_v32  ;;  %v6303_v1 = vpop.eup %4668  ;;  %v6310_v32 = vpop.f32.mrf.mxu2 }
 0x661   : > { %7391 = vst [vmem:[#allocation21_spill] sm:$0xff] %v6310_v32  ;;  %v6316_v4 = vpop.eup %4670  ;;  %v1785_v40 = vpop.xlane.xlu0 %1784 }
 0x662   : > { %v1835_v58 = vpack.c.bf16 %v1823_v62, %v1822_v34 }
 0x664   : > { %1790 = vadd.xlane.f32.xlu2 %v6303_v1  ;;  %2406 = vmax.xlane.f32.xlu0 %v6301_v6 }
 0x665   : > { %1887 = vmatmul.bf16.gmra.mxu0 %v1835_v58  ;;  %v6320_v13 = vpop.eup %4672 }
 0x666   : > { %4222 = vmatmul.msk.bf16.gmra.mxu2 %vm1236_vm6, %v5834_v43 }
 0x668   : > { %v6322_v52 = vpop.f32.mrf.mxu2 }
 0x669   : > { %7392 = vst [vmem:[#allocation22_spill] sm:$0xff] %v6322_v52  ;;  %v1789_v19 = vpop.xlane.xlu0 %1788 }
 0x66c   : > { %2400 = vmax.xlane.f32.xlu2 %v6314_v29  ;;  %1796 = vadd.xlane.f32.xlu0 %v6316_v4 }
 0x670   : > { %v6327_v43 = vpop.f32.mrf.mxu2 }
 0x671   : > { %7393 = vst [vmem:[#allocation23_spill] sm:$0xff] %v6327_v43 }
 0x674   : > { %1794 = vadd.xlane.f32.xlu2 %v6320_v13 }
 0x676   : > { %4223 = vmatmul.msk.bf16.gmra.mxu2 %vm1236_vm6, %v5859_v37 }
 0x678   : > { %v6333_v25 = vpop.f32.mrf.mxu2 }
 0x679   : > { %7394 = vst [vmem:[#allocation24_spill] sm:$0xff] %v6333_v25 }
 0x680   : > { %2560 = vrot.lane.b32.xlu0 %v5595_v53, %s4983_s21  ;;  %v6339_v39 = vpop.f32.mrf.mxu2 }
 0x681   : > { %7395 = vst [vmem:[#allocation25_spill] sm:$0xff] %v6339_v39 }
 0x686   : > { %4224 = vmatmul.msk.bf16.gmra.mxu2 %vm1236_vm6, %v5760_v24 }
 0x688   : > { %2554 = vrot.lane.b32.xlu0 %v5587_v47, %s4983_s21  ;;  %v1735_v47 = vsub.f32 %v6113_v16, %v6207_v8 }
 0x68c   : > { %2208 = vrot.lane.b32.xlu2 %v5653_v61, %s4984_s14  ;;  %v1766_v61 = vmul.f32 1.442695, %v1735_v47 }
 0x68e   : > { %4674 = vpow2.f32 %v1766_v61 }
 0x694   : > { %2206 = vrot.lane.b32.xlu2 %v5595_v53, %s4984_s14  ;;  %v7398_v53 = vld [vmem:[#allocation12_spill] sm:$0xff]  ;;  %v6357_v0 = vpop.eup %4674 }
 0x695   : > { %v2429_v54 = vsub.f32 %v7398_v53, %v6218_v3  ;;  %v2376_v3 = vpop.f32.mrf.mxu3  ;;  %v2559_v53 = vpop.permute.xlu1 %2558 }
 0x696   : > { %4225 = vmatmul.msk.bf16.gmra.mxu2 %vm1236_vm6, %v6242_v59  ;;  %v6368_v17 = vadd.f32 %v2376_v3, %v5863_v21 }
 0x697   : > { %v2446_v59 = vmul.f32 1.442695, %v2429_v54 }
 0x699   : > { %v6345_v37 = vpop.f32.mrf.mxu2  ;;  %4676 = vpow2.f32 %v2446_v59 }
 0x69a   : > { %7396 = vst [vmem:[#allocation26_spill] sm:$0xff] %v6345_v37  ;;  %4678 = vrcp.f32 %v1785_v40 }
 0x69c   : > { %2204 = vrot.lane.b32.xlu2 %v5574_v22, %s4984_s14 }
 0x69d   : > { %v2378_v2 = vpop.f32.mrf.mxu3 }
 0x69e   : > { %v6380_v15 = vadd.f32 %v2378_v2, %v5863_v21 }
 0x69f   : > { %v6360_v22 = vpop.eup %4676 }
 0x6a0   : > { %v4679_v56 = vpop.eup %4678 }
 0x6a1   : > { %v6349_v24 = vpop.f32.mrf.mxu2  ;;  %v1824_v31 = vmul.f32 %v4679_v56, %v6232_v33 }
 0x6a2   : > { %7397 = vst [vmem:[#allocation27_spill] sm:$0xff] %v6349_v24 }
 0x6a4   : > { %2202 = vrot.lane.b32.xlu2 %v5562_v30, %s4984_s14 }
 0x6a9   : > { %v2002_v27 = vpop.f32.mrf.mxu2 }
 0x6aa   : > { %v6399_v3 = vadd.f32 %v2002_v27, %v5863_v21 }
 0x6b1   : > { %v2004_v20 = vpop.f32.mrf.mxu2 }
 0x6b2   : > { %1798 = vadd.xlane.f32.xlu0 %v6357_v0  ;;  %v6364_v30 = vadd.f32 %v2004_v20, %v5863_v21 }
 0x6b9   : > { %v2007_v16 = vpop.f32.mrf.mxu2 }
 0x6ba   : > { %2478 = vadd.xlane.f32.xlu0 %v6360_v22  ;;  %v6405_v2 = vadd.f32 %v2007_v16, %v5863_v21 }
 0x6c1   : > { %v2009_v8 = vpop.f32.mrf.mxu2 }
 0x6c2   : > { %2044 = vmax.xlane.f32.xlu0 %v6364_v30  ;;  %v6385_v47 = vadd.f32 %v2009_v8, %v5863_v21 }
 0x6c7   : > { %v1787_v41 = vpop.xlane.xlu2 %1786 }
 0x6c8   : > { %4680 = vrcp.f32 %v1787_v41 }
 0x6c9   : > { %v6370_v14 = vpop.f32.mrf.mxu2 }
 0x6ca   : > { %2412 = vmax.xlane.f32.xlu0 %v6368_v17 }
 0x6cd   : > { %2410 = vmax.xlane.f32.xlu2 %v6374_v5 }
 0x6ce   : > { %v4681_v38 = vpop.eup %4680 }
 0x6cf   : > { %v2397_v42 = vpop.xlane.xlu2 %2396  ;;  %v1825_v49 = vmul.f32 %v4681_v38, %v6276_v45  ;;  %v1793_v50 = vpop.xlane.xlu0 %1792 }
 0x6d0   : > { %v2428_v34 = vsub.f32 %v6288_v11, %v2397_v42  ;;  %v7399_v42 = vld [vmem:[#allocation10_spill] sm:$0xff] }
 0x6d1   : > { %v2014_v62 = vpop.f32.mrf.mxu2  ;;  %v1836_v12 = vpack.c.bf16 %v1825_v49, %v1824_v31 }
 0x6d2   : > { %v2444_v58 = vmul.f32 1.442695, %v2428_v34  ;;  %2414 = vmax.xlane.f32.xlu0 %v6380_v15  ;;  %v6418_v34 = vadd.f32 %v2014_v62, %v5863_v21 }
 0x6d3   : > { %1892 = vmatmul.bf16.gmra.mxu0 %v1836_v12 }
 0x6d4   : > { %4682 = vpow2.f32 %v2444_v58 }
 0x6d5   : > { %4684 = vrcp.f32 %v1789_v19 }
 0x6d7   : > { %v1791_v63 = vpop.xlane.xlu2 %1790  ;;  %v6395_v7 = vpop.xlane.xlu0 %2406 }
 0x6d8   : > { %4686 = vrcp.f32 %v1791_v63 }
 0x6d9   : > { %v6387_v33 = vpop.f32.mrf.mxu2 }
 0x6da   : > { %v6389_v45 = vpop.eup %4682  ;;  %2048 = vmax.xlane.f32.xlu0 %v6385_v47 }
 0x6db   : > { %2476 = vadd.xlane.f32.xlu1 %v6389_v45  ;;  %v4685_v11 = vpop.eup %4684 }
 0x6dc   : > { %v1826_v59 = vmul.f32 %v4685_v11, %v6239_v23 }
 0x6de   : > { %v4687_v61 = vpop.eup %4686 }
 0x6df   : > { %v2401_v54 = vpop.xlane.xlu2 %2400  ;;  %v1827_v20 = vmul.f32 %v4687_v61, %v6303_v1  ;;  %v2557_v1 = vpop.permute.xlu1 %2556  ;;  %v7400_v61 = vld [vmem:[#allocation11_spill] sm:$0xff] }
 0x6e0   : > { %v2430_v8 = vsub.f32 %v6314_v29, %v2401_v54  ;;  %v1797_v38 = vpop.xlane.xlu0 %1796 }
 0x6e1   : > { %v2019_v40 = vpop.f32.mrf.mxu2  ;;  %v1837_v41 = vpack.c.bf16 %v1827_v20, %v1826_v59 }
 0x6e2   : > { %v2448_v56 = vmul.f32 1.442695, %v2430_v8 }
 0x6e3   : > { %2042 = vmax.xlane.f32.xlu1 %v6399_v3  ;;  %1897 = vmatmul.bf16.gmra.mxu0 %v1837_v41 }
 0x6e4   : > { %4688 = vpow2.f32 %v2448_v56 }
 0x6e5   : > { %2198 = vrot.lane.b32.xlu2 %v5568_v10, %s4984_s14  ;;  %4690 = vrcp.f32 %v1793_v50 }
 0x6e7   : > { %v1795_v23 = vpop.xlane.xlu2 %1794  ;;  %v2201_v63 = vpop.permute.xlu1 %2200 }
 0x6e8   : > { %4692 = vrcp.f32 %v1795_v23 }
 0x6e9   : > { %v6407_v29 = vpop.f32.mrf.mxu2  ;;  %4694 = vrcp.f32 %v1797_v38 }
 0x6ea   : > { %v6409_v27 = vpop.eup %4688 }
 0x6eb   : > { %2046 = vmax.xlane.f32.xlu1 %v6405_v2  ;;  %2480 = vadd.xlane.f32.xlu0 %v6409_v27  ;;  %v4691_v19 = vpop.eup %4690 }
 0x6ec   : > { %v1828_v49 = vmul.f32 %v4691_v19, %v6290_v55  ;;  %v6424_v55 = vadd.f32 %v2019_v40, %v5863_v21  ;;  %v6439_v40 = vpop.f32.mrf.mxu0  ;;  %v6449_v19 = vadd.f32 %v6387_v33, %v5863_v21 }
 0x6ed   : > { %2196 = vrot.lane.b32.xlu2 %v7399_v42, %s4984_s14 }
 0x6ee   : > { %v4693_v10 = vpop.eup %4692 }
 0x6ef   : > { %v2209_v31 = vpop.permute.xlu2 %2208  ;;  %v1829_v16 = vmul.f32 %v4693_v10, %v6320_v13  ;;  %v6428_v62 = vpop.xlane.xlu1 %2408 }
 0x6f0   : > { %2218 = vmatpush.bf16.msrb.mxu1 %v2209_v31  ;;  %v4695_v10 = vpop.eup %4694 }
 0x6f1   : > { %v2024_v12 = vpop.f32.mrf.mxu2  ;;  %v1838_v58 = vpack.c.bf16 %v1829_v16, %v1828_v49  ;;  %v6456_v16 = vadd.f32 %v6370_v14, %v5863_v21  ;;  %v1830_v33 = vmul.f32 %v4695_v10, %v6316_v4 }
 0x6f2   : > { %v2561_v50 = vpop.permute.xlu0 %2560 }
 0x6f3   : > { %2052 = vmax.xlane.f32.xlu0 %v6418_v34  ;;  %1902 = vmatmul.bf16.gmra.mxu0 %v1838_v58  ;;  %v6459_v58 = vadd.f32 %v2024_v12, %v5863_v21 }
 0x6f4   : > { %2573 = vmatpush.bf16.msra.mxu0 %v2561_v50  ;;  %v6441_v56 = vpop.f32.mrf.mxu0 }
 0x6f5   : > { %2550 = vrot.lane.b32.xlu2 %v7399_v42, %s4983_s21 }
 0x6f7   : > { %v2207_v11 = vpop.permute.xlu2 %2206  ;;  %v2553_v8 = vpop.permute.xlu1 %2552 }
 0x6f8   : > { %2574 = vmatpush.bf16.msra.mxu0 %v2559_v53  ;;  %2219 = vmatpush.bf16.msrb.mxu1 %v2207_v11  ;;  %v6467_v11 = vadd.f32 %v6407_v29, %v5863_v21 }
 0x6f9   : > { %v6426_v13 = vpop.f32.mrf.mxu2 }
 0x6fa   : > { %v2555_v54 = vpop.permute.xlu0 %2554 }
 0x6fb   : > { %2056 = vmax.xlane.f32.xlu0 %v6424_v55 }
 0x6fc   : > { %2575 = vmatpush.bf16.msra.mxu0 %v2557_v1  ;;  %v6443_v23 = vpop.f32.mrf.mxu0 }
 0x6fd   : > { %2548 = vrot.lane.b32.xlu2 %v7400_v61, %s4983_s21 }
 0x6ff   : > { %v2205_v59 = vpop.permute.xlu2 %2204 }
 0x700   : > { %2576 = vmatpush.bf16.msra.mxu0 %v2555_v54  ;;  %2220 = vmatpush.bf16.msrb.mxu1 %v2205_v59 }
 0x701   : > { %v2029_v20 = vpop.f32.mrf.mxu2 }
 0x702   : > { %v6434_v53 = vadd.f32 %v2029_v20, %v5863_v21 }
 0x704   : > { %2577 = vmatpush.bf16.msra.mxu0 %v2553_v8  ;;  %2194 = vrot.lane.b32.xlu1 %v7400_v61, %s4984_s14  ;;  %v6445_v1 = vpop.f32.mrf.mxu0 }
 0x705   : > { %2064 = vmax.xlane.f32.xlu0 %v6434_v53 }
 0x707   : > { %v2203_v41 = vpop.permute.xlu2 %2202 }
 0x708   : > { %2221 = vmatpush.bf16.msrb.mxu1 %v2203_v41 }
 0x70c   : > { %2222 = vmatpush.bf16.msrb.mxu1 %v2201_v63  ;;  %v6452_v49 = vpop.f32.mrf.mxu0 }
 0x714   : > { %v6469_v61 = vpop.f32.mrf.mxu0 }
 0x71c   : > { %v6475_v20 = vpop.f32.mrf.mxu0 }
 0x725   : > { %v1799_v42 = vpop.xlane.xlu0 %1798 }
 0x726   : > { %4696 = vrcp.f32 %v1799_v42  ;;  %2054 = vmax.xlane.f32.xlu2 %v6449_v19  ;;  %v6486_v42 = vpop.f32.mrf.mxu0 }
 0x72c   : > { %v4697_v31 = vpop.eup %4696 }
 0x72d   : > { %v2479_v50 = vpop.xlane.xlu0 %2478  ;;  %v1831_v38 = vmul.f32 %v4697_v31, %v6357_v0  ;;  %v7401_v0 = vld [vmem:[#allocation13_spill] sm:$0xff] }
 0x72e   : > { %2060 = vmax.xlane.f32.xlu2 %v6459_v58  ;;  %2050 = vmax.xlane.f32.xlu1 %v6456_v16  ;;  %v2431_v54 = vsub.f32 %v7401_v0, %v6230_v48  ;;  %v2381_v48 = vpop.f32.mrf.mxu3 }
 0x72f   : > { %v1839_v63 = vpack.c.bf16 %v1831_v38, %v1830_v33  ;;  %v6492_v38 = vadd.f32 %v2381_v48, %v5863_v21 }
 0x730   : > { %v2450_v59 = vmul.f32 1.442695, %v2431_v54 }
 0x731   : > { %1907 = vmatmul.bf16.gmra.mxu0 %v1839_v63 }
 0x735   : > { %v2045_v14 = vpop.xlane.xlu0 %2044 }
 0x736   : > { %v2075_v12 = vsub.f32 %v6364_v30, %v2045_v14  ;;  %2058 = vmax.xlane.f32.xlu1 %v6467_v11 }
 0x738   : > { %v2092_v4 = vmul.f32 1.442695, %v2075_v12  ;;  %v2032_v12 = vpop.f32.mrf.mxu2 }
 0x739   : > { %v6498_v54 = vadd.f32 %v2032_v12, %v5863_v21 }
 0x73a   : > { %4698 = vpow2.f32 %v2092_v4 }
 0x73b   : > { %4700 = vpow2.f32 %v2450_v59 }
 0x73d   : > { %v6482_v29 = vpop.xlane.xlu0 %2412 }
 0x740   : > { %v6477_v8 = vpop.eup %4698  ;;  %v6479_v41 = vpop.xlane.xlu2 %2410 }
 0x741   : > { %2124 = vadd.xlane.f32.xlu1 %v6477_v8  ;;  %v6484_v30 = vpop.eup %4700 }
 0x745   : > { %v6489_v31 = vpop.xlane.xlu0 %2414 }
 0x748   : > { %v2199_v10 = vpop.permute.xlu2 %2198 }
 0x749   : > { %2223 = vmatpush.bf16.msrb.mxu1 %v2199_v10  ;;  %2482 = vadd.xlane.f32.xlu1 %v6484_v30 }
 0x74d   : > { %v2049_v4 = vpop.xlane.xlu0 %2048 }
 0x74e   : > { %v2477_v33 = vpop.xlane.xlu1 %2476 }
 0x74f   : > { %4702 = vrcp.f32 %v2477_v33 }
 0x750   : > { %v2197_v63 = vpop.permute.xlu2 %2196  ;;  %v6494_v14 = vpop.f32.mrf.mxu0  ;;  %4704 = vrcp.f32 %v2479_v50 }
 0x751   : > { %2224 = vmatpush.bf16.msrb.mxu1 %v2197_v63  ;;  %2416 = vmax.xlane.f32.xlu1 %v6492_v38 }
 0x755   : > { %v4703_v63 = vpop.eup %4702 }
 0x756   : > { %v2043_v0 = vpop.xlane.xlu1 %2042  ;;  %v4705_v24 = vpop.eup %4704  ;;  %v2524_v33 = vmul.f32 %v4703_v63, %v6389_v45 }
 0x757   : > { %v2074_v59 = vsub.f32 %v6399_v3, %v2043_v0  ;;  %v2525_v50 = vmul.f32 %v4705_v24, %v6360_v22  ;;  %v6518_v24 = vadd.f32 %v6426_v13, %v5863_v21 }
 0x758   : > { %v2551_v10 = vpop.permute.xlu2 %2550  ;;  %v6501_v37 = vpop.f32.mrf.mxu0 }
 0x759   : > { %v2090_v48 = vmul.f32 1.442695, %v2074_v59  ;;  %2578 = vmatpush.bf16.msra.mxu0 %v2551_v10  ;;  %2066 = vmax.xlane.f32.xlu1 %v6498_v54  ;;  %v2383_v10 = vpop.f32.mrf.mxu3  ;;  %v2540_v43 = vpack.c.bf16 %v2525_v50, %v2524_v33 }
 0x75b   : > { %4706 = vpow2.f32 %v2090_v48  ;;  %v2077_v48 = vsub.f32 %v6385_v47, %v2049_v4  ;;  %v7402_v4 = vld [vmem:[#allocation14_spill] sm:$0xff] }
 0x75c   : > { %v2432_v33 = vsub.f32 %v7402_v4, %v6237_v36 }
 0x75d   : > { %v2096_v45 = vmul.f32 1.442695, %v2077_v48 }
 0x75e   : > { %v2047_v25 = vpop.xlane.xlu1 %2046  ;;  %v6505_v39 = vpop.xlane.xlu0 %2480  ;;  %v2452_v13 = vmul.f32 1.442695, %v2432_v33 }
 0x75f   : > { %v2076_v12 = vsub.f32 %v6405_v2, %v2047_v25 }
 0x760   : > { %v2549_v3 = vpop.permute.xlu2 %2548  ;;  %v6509_v0 = vpop.f32.mrf.mxu0 }
 0x761   : > { %v6511_v52 = vpop.eup %4706  ;;  %v2094_v59 = vmul.f32 1.442695, %v2076_v12  ;;  %2579 = vmatpush.bf16.msra.mxu0 %v2549_v3 }
 0x762   : > { %2122 = vadd.xlane.f32.xlu2 %v6511_v52 }
 0x763   : > { %4708 = vpow2.f32 %v2094_v59  ;;  %v6537_v59 = vadd.f32 %v2383_v10, %v5863_v21 }
 0x764   : > { %2580 = vmatmul.bf16.vlgmr.msra.gmra.mxu0 %v2540_v43  ;;  %4710 = vpow2.f32 %v2096_v45  ;;  %v2433_v43 = vsub.f32 %v6301_v6, %v6395_v7  ;;  %v2034_v45 = vpop.f32.mrf.mxu2  ;;  %v2434_v6 = vsub.f32 %v6200_v60, %v6428_v62  ;;  %v2435_v60 = vsub.f32 %v6374_v5, %v6479_v41 }
 0x766   : > { %v2053_v63 = vpop.xlane.xlu0 %2052  ;;  %v2454_v50 = vmul.f32 1.442695, %v2433_v43 }
 0x767   : > { %v2079_v25 = vsub.f32 %v6418_v34, %v2053_v63  ;;  %v6532_v34 = vpop.f32.mrf.mxu3 }
 0x768   : > { %v6520_v22 = vpop.f32.mrf.mxu0 }
 0x769   : > { %v6522_v2 = vpop.eup %4708  ;;  %v2100_v12 = vmul.f32 1.442695, %v2079_v25  ;;  %v2456_v25 = vmul.f32 1.442695, %v2434_v6 }
 0x76a   : > { %2062 = vmax.xlane.f32.xlu2 %v6518_v24  ;;  %2126 = vadd.xlane.f32.xlu0 %v6522_v2  ;;  %v6534_v3 = vpop.eup %4710 }
 0x76b   : > { %4712 = vpow2.f32 %v2100_v12 }
 0x76c   : > { %4714 = vpow2.f32 %v2452_v13  ;;  %v2037_v62 = vpop.f32.mrf.mxu2  ;;  %v2458_v13 = vmul.f32 1.442695, %v2435_v60 }
 0x76d   : > { %4716 = vpow2.f32 %v2454_v50  ;;  %v6565_v50 = vadd.f32 %v2034_v45, %v5863_v21 }
 0x76e   : > { %4718 = vpow2.f32 %v2456_v25 }
 0x76f   : > { %v2388_v7 = vpop.f32.mrf.mxu3  ;;  %4720 = vpow2.f32 %v2458_v13 }
 0x770   : > { %v6539_v48 = vpop.f32.mrf.mxu0  ;;  %v6555_v33 = vadd.f32 %v2388_v7, %v5863_v21 }
 0x771   : > { %v6541_v36 = vpop.eup %4712 }
 0x772   : > { %2418 = vmax.xlane.f32.xlu2 %v6537_v59  ;;  %2128 = vadd.xlane.f32.xlu0 %v6534_v3  ;;  %v6548_v10 = vpop.eup %4714 }
 0x773   : > { %2132 = vadd.xlane.f32.xlu1 %v6541_v36  ;;  %v6552_v4 = vpop.eup %4716 }
 0x774   : > { %v6567_v6 = vpop.eup %4718  ;;  %v2039_v7 = vpop.f32.mrf.mxu2 }
 0x775   : > { %v6574_v5 = vadd.f32 %v2039_v7, %v5863_v21 }
 0x776   : > { %v2195_v63 = vpop.permute.xlu1 %2194 }
 0x777   : > { %2225 = vmatpush.bf16.msrb.mxu1 %v2195_v63  ;;  %v6571_v63 = vpop.eup %4720  ;;  %v2391_v7 = vpop.f32.mrf.mxu3 }
 0x778   : > { %v6550_v12 = vpop.f32.mrf.mxu0 }
 0x77a   : > { %2484 = vadd.xlane.f32.xlu2 %v6548_v10  ;;  %2486 = vadd.xlane.f32.xlu0 %v6552_v4 }
 0x77b   : > { %2422 = vmax.xlane.f32.xlu1 %v6555_v33 }
 0x782   : > { %2068 = vmax.xlane.f32.xlu2 %v6565_v50 }
 0x783   : > { %2488 = vadd.xlane.f32.xlu1 %v6567_v6 }
 0x78a   : > { %2490 = vadd.xlane.f32.xlu2 %v6571_v63 }
 0x78b   : > { %2072 = vmax.xlane.f32.xlu1 %v6574_v5 }
 0x799   : > { %v2055_v41 = vpop.xlane.xlu2 %2054 }
 0x79a   : > { %v2080_v45 = vsub.f32 %v6449_v19, %v2055_v41  ;;  %v6586_v19 = vadd.f32 %v2391_v7, %v5863_v21  ;;  %v2057_v41 = vpop.xlane.xlu0 %2056 }
 0x79c   : > { %v2102_v25 = vmul.f32 1.442695, %v2080_v45 }
 0x79e   : > { %4722 = vpow2.f32 %v2102_v25 }
 0x7a1   : > { %v2051_v60 = vpop.xlane.xlu1 %2050  ;;  %v2061_v43 = vpop.xlane.xlu2 %2060 }
 0x7a2   : > { %v2078_v13 = vsub.f32 %v6456_v16, %v2051_v60  ;;  %v2083_v32 = vsub.f32 %v6459_v58, %v2061_v43  ;;  %v2081_v58 = vsub.f32 %v6424_v55, %v2057_v41  ;;  %v6601_v43 = vadd.f32 %v6532_v34, %v5863_v21 }
 0x7a3   : > { %v6620_v41 = vadd.f32 %v2037_v62, %v5863_v21  ;;  %v2065_v62 = vpop.xlane.xlu0 %2064 }
 0x7a4   : > { %v6580_v47 = vpop.eup %4722  ;;  %v2098_v51 = vmul.f32 1.442695, %v2078_v13  ;;  %v2108_v28 = vmul.f32 1.442695, %v2083_v32  ;;  %v2104_v32 = vmul.f32 1.442695, %v2081_v58 }
 0x7a5   : > { %2134 = vadd.xlane.f32.xlu2 %v6580_v47 }
 0x7a6   : > { %4724 = vpow2.f32 %v2098_v51 }
 0x7a7   : > { %4726 = vpow2.f32 %v2108_v28 }
 0x7a9   : > { %v2059_v9 = vpop.xlane.xlu1 %2058 }
 0x7aa   : > { %v2082_v35 = vsub.f32 %v6467_v11, %v2059_v9  ;;  %v2437_v9 = vsub.f32 %v6380_v15, %v6489_v31  ;;  %v2393_v15 = vpop.f32.mrf.mxu3 }
 0x7ab   : > { %v6629_v26 = vadd.f32 %v2393_v15, %v5863_v21 }
 0x7ac   : > { %v6588_v45 = vpop.eup %4724  ;;  %v2106_v16 = vmul.f32 1.442695, %v2082_v35  ;;  %v2462_v35 = vmul.f32 1.442695, %v2437_v9 }
 0x7ad   : > { %2424 = vmax.xlane.f32.xlu2 %v6586_v19  ;;  %2130 = vadd.xlane.f32.xlu0 %v6588_v45  ;;  %v6597_v11 = vpop.eup %4726 }
 0x7ae   : > { %4728 = vpow2.f32 %v2106_v16  ;;  %v6593_v51 = vpop.f32.mrf.mxu0 }
 0x7af   : > { %4730 = vpow2.f32 %v2104_v32  ;;  %v2436_v32 = vsub.f32 %v6368_v17, %v6482_v29 }
 0x7b0   : > { %4732 = vpow2.f32 %v2462_v35 }
 0x7b1   : > { %4734 = vrcp.f32 %v6505_v39  ;;  %v2460_v46 = vmul.f32 1.442695, %v2436_v32 }
 0x7b4   : > { %v6603_v28 = vpop.eup %4728  ;;  %v2125_v25 = vpop.xlane.xlu1 %2124 }
 0x7b5   : > { %2140 = vadd.xlane.f32.xlu2 %v6597_v11  ;;  %2420 = vmax.xlane.f32.xlu0 %v6601_v43  ;;  %v6613_v31 = vpop.eup %4730 }
 0x7b6   : > { %2138 = vadd.xlane.f32.xlu1 %v6603_v28  ;;  %v6608_v55 = vpop.f32.mrf.mxu0  ;;  %v6615_v60 = vpop.eup %4732 }
 0x7b7   : > { %v4735_v13 = vpop.eup %4734 }
 0x7b8   : > { %v2526_v58 = vmul.f32 %v4735_v13, %v6409_v27  ;;  %v2085_v27 = vsub.f32 %v6434_v53, %v2065_v62 }
 0x7ba   : > { %v2112_v17 = vmul.f32 1.442695, %v2085_v27 }
 0x7bc   : > { %v2483_v34 = vpop.xlane.xlu1 %2482 }
 0x7bd   : > { %4736 = vrcp.f32 %v2483_v34  ;;  %2136 = vadd.xlane.f32.xlu0 %v6613_v31 }
 0x7be   : > { %2494 = vadd.xlane.f32.xlu1 %v6615_v60 }
 0x7c3   : > { %v4737_v7 = vpop.eup %4736 }
 0x7c4   : > { %v2417_v16 = vpop.xlane.xlu1 %2416  ;;  %v2527_v39 = vmul.f32 %v4737_v7, %v6484_v30 }
 0x7c5   : > { %v2438_v9 = vsub.f32 %v6492_v38, %v2417_v16  ;;  %2070 = vmax.xlane.f32.xlu0 %v6620_v41 }
 0x7c6   : > { %v2541_v35 = vpack.c.bf16 %v2527_v39, %v2526_v58 }
 0x7c7   : > { %v2464_v34 = vmul.f32 1.442695, %v2438_v9 }
 0x7c8   : > { %2585 = vmatmul.bf16.gmra.mxu0 %v2541_v35 }
 0x7c9   : > { %4738 = vpow2.f32 %v2464_v34 }
 0x7ca   : > { %4740 = vpow2.f32 %v2460_v46 }
 0x7cb   : > { %4742 = vrcp.f32 %v2125_v25 }
 0x7cc   : > { %v2067_v29 = vpop.xlane.xlu1 %2066  ;;  %4744 = vpow2.f32 %v2112_v17 }
 0x7cd   : > { %2426 = vmax.xlane.f32.xlu0 %v6629_v26  ;;  %v2086_v21 = vsub.f32 %v6498_v54, %v2067_v29 }
 0x7cf   : > { %v6633_v30 = vpop.eup %4738  ;;  %v2114_v15 = vmul.f32 1.442695, %v2086_v21 }
 0x7d0   : > { %2496 = vadd.xlane.f32.xlu1 %v6633_v30  ;;  %v6636_v38 = vpop.eup %4740 }
 0x7d1   : > { %v4743_v53 = vpop.eup %4742 }
 0x7d2   : > { %v6640_v7 = vpop.eup %4744  ;;  %v2171_v25 = vmul.f32 %v4743_v53, %v6477_v8 }
 0x7d5   : > { %v2123_v13 = vpop.xlane.xlu2 %2122  ;;  %2492 = vadd.xlane.f32.xlu0 %v6636_v38 }
 0x7d6   : > { %4746 = vrcp.f32 %v2123_v13 }
 0x7d7   : > { %4748 = vpow2.f32 %v2114_v15 }
 0x7dc   : > { %v4747_v46 = vpop.eup %4746 }
 0x7dd   : > { %v2063_v16 = vpop.xlane.xlu2 %2062  ;;  %2144 = vadd.xlane.f32.xlu0 %v6640_v7  ;;  %v2127_v58 = vpop.xlane.xlu0 %2126  ;;  %v2170_v39 = vmul.f32 %v4747_v46, %v6511_v52 }
 0x7de   : > { %v2084_v9 = vsub.f32 %v6518_v24, %v2063_v16  ;;  %v6646_v54 = vpop.eup %4748 }
 0x7df   : > { %v2186_v32 = vpack.c.bf16 %v2171_v25, %v2170_v39 }
 0x7e0   : > { %v2110_v35 = vmul.f32 1.442695, %v2084_v9 }
 0x7e1   : > { %2226 = vmatmul.bf16.vlgmr.msrb.gmra.mxu1 %v2186_v32 }
 0x7e2   : > { %4750 = vpow2.f32 %v2110_v35 }
 0x7e3   : > { %4752 = vrcp.f32 %v2127_v58 }
 0x7e5   : > { %v2419_v34 = vpop.xlane.xlu2 %2418  ;;  %2146 = vadd.xlane.f32.xlu0 %v6646_v54  ;;  %v2129_v62 = vpop.xlane.xlu0 %2128 }
 0x7e6   : > { %v2439_v27 = vsub.f32 %v6537_v59, %v2419_v34  ;;  %v2133_v17 = vpop.xlane.xlu1 %2132  ;;  %4754 = vrcp.f32 %v2129_v62 }
 0x7e8   : > { %v6650_v52 = vpop.eup %4750  ;;  %v2466_v8 = vmul.f32 1.442695, %v2439_v27 }
 0x7e9   : > { %2142 = vadd.xlane.f32.xlu2 %v6650_v52  ;;  %v4753_v24 = vpop.eup %4752 }
 0x7ea   : > { %4756 = vpow2.f32 %v2466_v8  ;;  %v2172_v53 = vmul.f32 %v4753_v24, %v6522_v2 }
 0x7ec   : > { %v4755_v29 = vpop.eup %4754 }
 0x7ed   : > { %v2485_v13 = vpop.xlane.xlu2 %2484  ;;  %v2487_v21 = vpop.xlane.xlu0 %2486  ;;  %v2173_v15 = vmul.f32 %v4755_v29, %v6534_v3 }
 0x7ee   : > { %4758 = vrcp.f32 %v2485_v13  ;;  %v2423_v46 = vpop.xlane.xlu1 %2422 }
 0x7ef   : > { %v2441_v59 = vsub.f32 %v6555_v33, %v2423_v46  ;;  %4760 = vrcp.f32 %v2487_v21  ;;  %v2187_v16 = vpack.c.bf16 %v2173_v15, %v2172_v53 }
 0x7f0   : > { %v6656_v58 = vpop.eup %4756 }
 0x7f1   : > { %v2470_v39 = vmul.f32 1.442695, %v2441_v59  ;;  %2498 = vadd.xlane.f32.xlu2 %v6656_v58  ;;  %2231 = vmatmul.bf16.gmra.mxu1 %v2187_v16 }
 0x7f3   : > { %4762 = vpow2.f32 %v2470_v39 }
 0x7f4   : > { %v4759_v25 = vpop.eup %4758 }
 0x7f5   : > { %v4761_v9 = vpop.eup %4760  ;;  %v2069_v32 = vpop.xlane.xlu2 %2068  ;;  %v2528_v2 = vmul.f32 %v4759_v25, %v6548_v10 }
 0x7f6   : > { %v2087_v3 = vsub.f32 %v6565_v50, %v2069_v32  ;;  %v2529_v35 = vmul.f32 %v4761_v9, %v6552_v4  ;;  %v2489_v27 = vpop.xlane.xlu1 %2488 }
 0x7f8   : > { %v2116_v34 = vmul.f32 1.442695, %v2087_v3  ;;  %v2542_v33 = vpack.c.bf16 %v2529_v35, %v2528_v2 }
 0x7f9   : > { %v6662_v62 = vpop.eup %4762 }
 0x7fa   : > { %4764 = vpow2.f32 %v2116_v34  ;;  %2502 = vadd.xlane.f32.xlu0 %v6662_v62  ;;  %2590 = vmatmul.bf16.gmra.mxu0 %v2542_v33 }
 0x7fb   : > { %4766 = vrcp.f32 %v2489_v27 }
 0x7fd   : > { %v2491_v8 = vpop.xlane.xlu2 %2490 }
 0x7fe   : > { %4768 = vrcp.f32 %v2491_v8  ;;  %v2073_v32 = vpop.xlane.xlu1 %2072 }
 0x7ff   : > { %4770 = vrcp.f32 %v2133_v17 }
 0x800   : > { %v6665_v24 = vpop.eup %4764 }
 0x801   : > { %2148 = vadd.xlane.f32.xlu1 %v6665_v24  ;;  %v4767_v10 = vpop.eup %4766 }
 0x802   : > { %v2530_v4 = vmul.f32 %v4767_v10, %v6567_v6 }
 0x804   : > { %v4769_v50 = vpop.eup %4768 }
 0x805   : > { %v2531_v29 = vmul.f32 %v4769_v50, %v6571_v63  ;;  %v4771_v16 = vpop.eup %4770 }
 0x806   : > { %v2175_v6 = vmul.f32 %v4771_v16, %v6541_v36 }
 0x807   : > { %v2543_v13 = vpack.c.bf16 %v2531_v29, %v2530_v4 }
 0x80a   : > { %2595 = vmatmul.bf16.gmra.mxu0 %v2543_v13 }
 0x818   : > { %v2135_v21 = vpop.xlane.xlu2 %2134 }
 0x820   : > { %v2425_v53 = vpop.xlane.xlu2 %2424  ;;  %v2131_v15 = vpop.xlane.xlu0 %2130 }
 0x821   : > { %v2442_v46 = vsub.f32 %v6586_v19, %v2425_v53  ;;  %4772 = vrcp.f32 %v2131_v15  ;;  %v2089_v19 = vsub.f32 %v6574_v5, %v2073_v32 }
 0x823   : > { %v2472_v59 = vmul.f32 1.442695, %v2442_v46  ;;  %v2120_v34 = vmul.f32 1.442695, %v2089_v19 }
 0x825   : > { %4774 = vpow2.f32 %v2472_v59 }
 0x827   : > { %v4773_v39 = vpop.eup %4772 }
 0x828   : > { %v2421_v25 = vpop.xlane.xlu0 %2420  ;;  %v2174_v9 = vmul.f32 %v4773_v39, %v6588_v45  ;;  %v2141_v33 = vpop.xlane.xlu2 %2140 }
 0x829   : > { %v2440_v63 = vsub.f32 %v6601_v43, %v2421_v25  ;;  %v2139_v5 = vpop.xlane.xlu1 %2138 }
 0x82a   : > { %v2188_v2 = vpack.c.bf16 %v2175_v6, %v2174_v9 }
 0x82b   : > { %v6674_v3 = vpop.eup %4774  ;;  %v2468_v17 = vmul.f32 1.442695, %v2440_v63 }
 0x82c   : > { %2504 = vadd.xlane.f32.xlu0 %v6674_v3  ;;  %2236 = vmatmul.bf16.gmra.mxu1 %v2188_v2 }
 0x82d   : > { %4776 = vpow2.f32 %v2468_v17 }
 0x82e   : > { %4778 = vrcp.f32 %v2135_v21  ;;  %v4325_v21 = vld [vmem:[%s5120_s19 + $0x8] sm:$0xff] }
 0x82f   : > { %2917 = vmatpush.bf16.msra.mxu2 %v4325_v21  ;;  %v4432_v21 = vpack.i.bf16 %v6469_v61, %v6452_v49 }
 0x830   : > { %v2137_v35 = vpop.xlane.xlu0 %2136 }
 0x831   : > { %4780 = vrcp.f32 %v2137_v35  ;;  %v2495_v59 = vpop.xlane.xlu1 %2494 }
 0x832   : > { %4782 = vpow2.f32 %v2120_v34 }
 0x833   : > { %v6678_v45 = vpop.eup %4776  ;;  %4784 = vrcp.f32 %v2141_v33 }
 0x834   : > { %2500 = vadd.xlane.f32.xlu2 %v6678_v45  ;;  %v4779_v36 = vpop.eup %4778  ;;  %4786 = vrcp.f32 %v2139_v5 }
 0x835   : > { %v2176_v8 = vmul.f32 %v4779_v36, %v6580_v47 }
 0x837   : > { %v4781_v43 = vpop.eup %4780 }
 0x838   : > { %v2071_v27 = vpop.xlane.xlu0 %2070  ;;  %v2177_v10 = vmul.f32 %v4781_v43, %v6613_v31  ;;  %v6684_v29 = vpop.eup %4782 }
 0x839   : > { %v2088_v50 = vsub.f32 %v6620_v41, %v2071_v27  ;;  %v4785_v15 = vpop.eup %4784 }
 0x83a   : > { %v2189_v4 = vpack.c.bf16 %v2177_v10, %v2176_v8  ;;  %v4787_v31 = vpop.eup %4786  ;;  %v2179_v39 = vmul.f32 %v4785_v15, %v6597_v11  ;;  %v2581_v11 = vpop.f32.mrf.mxu0 }
 0x83b   : > { %v2118_v13 = vmul.f32 1.442695, %v2088_v50  ;;  %v2178_v16 = vmul.f32 %v4787_v31, %v6603_v28  ;;  %v4402_v28 = vpack.i.bf16 %v6441_v56, %v6439_v40 }
 0x83c   : > { %2152 = vadd.xlane.f32.xlu2 %v6684_v29  ;;  %2241 = vmatmul.bf16.gmra.mxu1 %v2189_v4 }
 0x83d   : > { %4788 = vpow2.f32 %v2118_v13  ;;  %v2190_v9 = vpack.c.bf16 %v2179_v39, %v2178_v16 }
 0x840   : > { %v2427_v53 = vpop.xlane.xlu0 %2426 }
 0x841   : > { %v2443_v47 = vsub.f32 %v6629_v26, %v2427_v53 }
 0x842   : > { %v2583_v34 = vpop.f32.mrf.mxu0 }
 0x843   : > { %v6689_v46 = vpop.eup %4788  ;;  %v2474_v41 = vmul.f32 1.442695, %v2443_v47  ;;  %v2497_v43 = vpop.xlane.xlu1 %2496  ;;  %v4412_v27 = vpack.i.bf16 %v2583_v34, %v2581_v11  ;;  %v4417_v47 = vpack.i.bf16 %v6445_v1, %v6443_v23  ;;  %v4462_v1 = vpack.i.bf16 %v6501_v37, %v6494_v14 }
 0x844   : > { %2150 = vadd.xlane.f32.xlu1 %v6689_v46  ;;  %v7404_v14 = vpack.i.bf16 %v6550_v12, %v6539_v48 }
 0x845   : > { %4790 = vpow2.f32 %v2474_v41 }
 0x846   : > { %4792 = vrcp.f32 %v2495_v59  ;;  %v4447_v59 = vpack.i.bf16 %v6486_v42, %v6475_v20 }
 0x848   : > { %v2493_v25 = vpop.xlane.xlu0 %2492 }
 0x849   : > { %4794 = vrcp.f32 %v2493_v25 }
 0x84a   : > { %v2586_v8 = vpop.f32.mrf.mxu0 }
 0x84b   : > { %v6694_v6 = vpop.eup %4790 }
 0x84c   : > { %2246 = vmatmul.bf16.gmra.mxu1 %v2190_v9  ;;  %2506 = vadd.xlane.f32.xlu1 %v6694_v6  ;;  %v4793_v26 = vpop.eup %4792 }
 0x84d   : > { %v2533_v2 = vmul.f32 %v4793_v26, %v6615_v60 }
 0x84f   : > { %v4795_v63 = vpop.eup %4794 }
 0x850   : > { %v2532_v32 = vmul.f32 %v4795_v63, %v6636_v38  ;;  %v2145_v19 = vpop.xlane.xlu0 %2144  ;;  %v4324_v63 = vld [vmem:[%s5120_s19] sm:$0xff] }
 0x851   : > { %4796 = vrcp.f32 %v2145_v19  ;;  %2918 = vmatpush.bf16.msra.mxu2 %v4324_v63 }
 0x852   : > { %v2544_v17 = vpack.c.bf16 %v2533_v2, %v2532_v32  ;;  %v2588_v31 = vpop.f32.mrf.mxu0  ;;  %v7403_v32 = vpack.i.bf16 %v6520_v22, %v6509_v0  ;;  %v7405_v2 = vpack.i.bf16 %v6608_v55, %v6593_v51 }
 0x854   : > { %4403 = vrot.lane.b32.xlu2 %v4402_v28, %s4985_s24  ;;  %2600 = vmatmul.bf16.gmra.mxu0 %v2544_v17 }
 0x857   : > { %v4797_v33 = vpop.eup %4796 }
 0x858   : > { %v2181_v56 = vmul.f32 %v4797_v33, %v6640_v7  ;;  %v2147_v41 = vpop.xlane.xlu0 %2146 }
 0x85c   : > { %v2143_v35 = vpop.xlane.xlu2 %2142 }
 0x85d   : > { %4798 = vrcp.f32 %v2143_v35 }
 0x85e   : > { %v2227_v36 = vpop.f32.mrf.mxu1  ;;  %4800 = vrcp.f32 %v2497_v43 }
 0x863   : > { %v4799_v38 = vpop.eup %4798 }
 0x864   : > { %v2499_v60 = vpop.xlane.xlu2 %2498  ;;  %v2180_v40 = vmul.f32 %v4799_v38, %v6650_v52  ;;  %v4801_v4 = vpop.eup %4800 }
 0x865   : > { %4802 = vrcp.f32 %v2499_v60  ;;  %4413 = vrot.lane.b32.xlu1 %v4412_v27, %s4986_s27  ;;  %v2534_v52 = vmul.f32 %v4801_v4, %v6633_v30  ;;  %v4427_v30 = vpack.i.bf16 %v2588_v31, %v2586_v8 }
 0x866   : > { %v2229_v10 = vpop.f32.mrf.mxu1  ;;  %v2191_v5 = vpack.c.bf16 %v2181_v56, %v2180_v40  ;;  %4804 = vrcp.f32 %v2147_v41 }
 0x867   : > { %v4407_v50 = vpack.i.bf16 %v2229_v10, %v2227_v36 }
 0x868   : > { %2251 = vmatmul.bf16.gmra.mxu1 %v2191_v5 }
 0x869   : > { %4408 = vrot.lane.b32.xlu0 %v4407_v50, %s4987_s28 }
 0x86b   : > { %v4803_v13 = vpop.eup %4802 }
 0x86c   : > { %v2535_v7 = vmul.f32 %v4803_v13, %v6656_v58  ;;  %v4805_v39 = vpop.eup %4804 }
 0x86d   : > { %4433 = vrot.lane.b32.xlu1 %v4432_v21, %s4985_s24  ;;  %v2182_v20 = vmul.f32 %v4805_v39, %v6646_v54  ;;  %v2503_v28 = vpop.xlane.xlu0 %2502 }
 0x86e   : > { %v2232_v53 = vpop.f32.mrf.mxu1  ;;  %v2545_v15 = vpack.c.bf16 %v2535_v7, %v2534_v52 }
 0x870   : > { %2605 = vmatmul.bf16.gmra.mxu0 %v2545_v15 }
 0x871   : > { %4418 = vrot.lane.b32.xlu0 %v4417_v47, %s4985_s24 }
 0x874   : > { %v2149_v49 = vpop.xlane.xlu1 %2148 }
 0x875   : > { %4806 = vrcp.f32 %v2149_v49  ;;  %4448 = vrot.lane.b32.xlu1 %v4447_v59, %s4985_s24 }
 0x876   : > { %v2234_v61 = vpop.f32.mrf.mxu1  ;;  %4808 = vrcp.f32 %v2503_v28 }
 0x877   : > { %v4422_v58 = vpack.i.bf16 %v2234_v61, %v2232_v53  ;;  %v2591_v16 = vpop.f32.mrf.mxu0 }
 0x879   : > { %4428 = vrot.lane.b32.xlu0 %v4427_v30, %s4986_s27  ;;  %4423 = vrot.lane.b32.xlu2 %v4422_v58, %s4987_s28 }
 0x87b   : > { %v4807_v23 = vpop.eup %4806 }
 0x87c   : > { %v2183_v42 = vmul.f32 %v4807_v23, %v6665_v24  ;;  %v4809_v22 = vpop.eup %4808 }
 0x87d   : > { %4463 = vrot.lane.b32.xlu1 %v4462_v1, %s4985_s24  ;;  %v2537_v48 = vmul.f32 %v4809_v22, %v6662_v62 }
 0x87e   : > { %v2192_v25 = vpack.c.bf16 %v2183_v42, %v2182_v20 }
 0x87f   : > { %v2593_v9 = vpop.f32.mrf.mxu0 }
 0x880   : > { %v4442_v26 = vpack.i.bf16 %v2593_v9, %v2591_v16  ;;  %2256 = vmatmul.bf16.gmra.mxu1 %v2192_v25 }
 0x882   : > { %4443 = vrot.lane.b32.xlu0 %v4442_v26, %s4986_s27  ;;  %v7406_v26 = vld [vmem:[#allocation15_spill] sm:$0xff] }
 0x885   : > { %4478 = vrot.lane.b32.xlu1 %v7403_v32, %s4985_s24 }
 0x887   : > { %v2596_v37 = vpop.f32.mrf.mxu0 }
 0x88d   : > { %4493 = vrot.lane.b32.xlu1 %v7404_v14, %s4985_s24 }
 0x88f   : > { %v2598_v54 = vpop.f32.mrf.mxu0 }
 0x890   : > { %v4457_v24 = vpack.i.bf16 %v2598_v54, %v2596_v37 }
 0x892   : > { %4458 = vrot.lane.b32.xlu0 %v4457_v24, %s4986_s27 }
 0x895   : > { %4508 = vrot.lane.b32.xlu1 %v7405_v2, %s4985_s24 }
 0x89f   : > { %v2505_v43 = vpop.xlane.xlu0 %2504 }
 0x8a7   : > { %v2501_v17 = vpop.xlane.xlu2 %2500 }
 0x8a8   : > { %4810 = vrcp.f32 %v2501_v17 }
 0x8a9   : > { %v2237_v0 = vpop.f32.mrf.mxu1 }
 0x8ae   : > { %v4811_v11 = vpop.eup %4810 }
 0x8af   : > { %v2536_v19 = vmul.f32 %v4811_v11, %v6678_v45  ;;  %v2153_v36 = vpop.xlane.xlu2 %2152 }
 0x8b0   : > { %4812 = vrcp.f32 %v2153_v36 }
 0x8b1   : > { %v2239_v12 = vpop.f32.mrf.mxu1  ;;  %v2546_v35 = vpack.c.bf16 %v2537_v48, %v2536_v19 }
 0x8b2   : > { %v4437_v34 = vpack.i.bf16 %v2239_v12, %v2237_v0 }
 0x8b3   : > { %2610 = vmatmul.bf16.gmra.mxu0 %v2546_v35 }
 0x8b4   : > { %4438 = vrot.lane.b32.xlu2 %v4437_v34, %s4987_s28 }
 0x8b6   : > { %v4813_v33 = vpop.eup %4812 }
 0x8b7   : > { %v2151_v51 = vpop.xlane.xlu1 %2150  ;;  %v2185_v62 = vmul.f32 %v4813_v33, %v6684_v29  ;;  %v4404_v29 = vpop.permute.xlu2 %4403 }
 0x8b8   : > { %4814 = vrcp.f32 %v2151_v51  ;;  %v4406_v7 = vunpack.i.h.bf16 %v4404_v29  ;;  %v4405_v53 = vunpack.i.l.bf16 %v4404_v29 }
 0x8b9   : > { %v2242_v55 = vpop.f32.mrf.mxu1  ;;  %4816 = vrcp.f32 %v2505_v43 }
 0x8ba   : > { %v2813_v49 = vsel %vm1236_vm6, %v6247_v18, %v4405_v53 }
 0x8be   : > { %v4815_v38 = vpop.eup %4814 }
 0x8bf   : > { %v2507_v27 = vpop.xlane.xlu1 %2506  ;;  %v2184_v45 = vmul.f32 %v4815_v38, %v6689_v46  ;;  %v4817_v8 = vpop.eup %4816 }
 0x8c0   : > { %4818 = vrcp.f32 %v2507_v27  ;;  %v2538_v5 = vmul.f32 %v4817_v8, %v6674_v3 }
 0x8c1   : > { %v2244_v60 = vpop.f32.mrf.mxu1  ;;  %v2193_v40 = vpack.c.bf16 %v2185_v62, %v2184_v45  ;;  %v7407_v62 = vld [vmem:[#allocation17_spill] sm:$0xff] }
 0x8c2   : > { %v4452_v56 = vpack.i.bf16 %v2244_v60, %v2242_v55 }
 0x8c3   : > { %2261 = vmatmul.bf16.gmra.mxu1 %v2193_v40  ;;  %v7408_v40 = vld [vmem:[#allocation16_spill] sm:$0xff] }
 0x8c4   : > { %4453 = vrot.lane.b32.xlu2 %v4452_v56, %s4987_s28 }
 0x8c6   : > { %v4819_v10 = vpop.eup %4818 }
 0x8c7   : > { %v2539_v50 = vmul.f32 %v4819_v10, %v6694_v6  ;;  %v2814_v6 = vsel %vm1236_vm6, %v6253_v57, %v4406_v7 }
 0x8c9   : > { %v2247_v4 = vpop.f32.mrf.mxu1  ;;  %v2547_v13 = vpack.c.bf16 %v2539_v50, %v2538_v5 }
 0x8cb   : > { %2615 = vmatmul.bf16.gmra.mxu0 %v2547_v13 }
 0x8d1   : > { %v2249_v21 = vpop.f32.mrf.mxu1  ;;  %v2601_v46 = vpop.f32.mrf.mxu0 }
 0x8d2   : > { %v4467_v52 = vpack.i.bf16 %v2249_v21, %v2247_v4 }
 0x8d3   : > { %v4424_v9 = vpop.permute.xlu2 %4423 }
 0x8d4   : > { %4468 = vrot.lane.b32.xlu2 %v4467_v52, %s4987_s28  ;;  %v4426_v32 = vunpack.i.h.bf16 %v4424_v9  ;;  %v4425_v37 = vunpack.i.l.bf16 %v4424_v9 }
 0x8d7   : > { %v4414_v47 = vpop.permute.xlu1 %4413 }
 0x8d8   : > { %v4416_v61 = vunpack.i.h.bf16 %v4414_v47  ;;  %v4415_v30 = vunpack.i.l.bf16 %v4414_v47 }
 0x8d9   : > { %v2603_v15 = vpop.f32.mrf.mxu0 }
 0x8da   : > { %v4472_v31 = vpack.i.bf16 %v2603_v15, %v2601_v46 }
 0x8db   : > { %v4409_v41 = vpop.permute.xlu0 %4408 }
 0x8dc   : > { %v4411_v3 = vunpack.i.h.bf16 %v4409_v41  ;;  %v4410_v59 = vunpack.i.l.bf16 %v4409_v41  ;;  %4473 = vrot.lane.b32.xlu0 %v4472_v31, %s4986_s27  ;;  %v7409_v31 = vld [vmem:[#allocation19_spill] sm:$0xff] }
 0x8de   : > { %v2831_v58 = vsel %vm2829_vm8, %v2814_v6, %v4411_v3  ;;  %v2830_v16 = vsel %vm2829_vm8, %v2813_v49, %v4410_v59  ;;  %v7410_v3 = vld [vmem:[#allocation18_spill] sm:$0xff] }
 0x8df   : > { %v2848_v39 = vsel %vm2846_vm9, %v2831_v58, %v4416_v61  ;;  %v2847_v23 = vsel %vm2846_vm9, %v2830_v16, %v4415_v30  ;;  %v4434_v51 = vpop.permute.xlu1 %4433 }
 0x8e0   : > { %v2863_v1 = vpack.c.bf16 %v2848_v39, %v2847_v23  ;;  %v4436_v55 = vunpack.i.h.bf16 %v4434_v51  ;;  %v4435_v43 = vunpack.i.l.bf16 %v4434_v51  ;;  %v6805_v51 = vld [vmem:[%s7413_s25] ss:$0 sm:$0xff] }
 0x8e2   : > { %4242 = vmatmul.msk.bf16.vlgmr.msra.gmra.mxu2 %vm701_vm1, %v2863_v1  ;;  %v2818_v60 = vsel %vm1236_vm6, %v7407_v62, %v4436_v55  ;;  %v2817_v56 = vsel %vm1236_vm6, %v7408_v40, %v4435_v43 }
 0x8e3   : > { %v4419_v20 = vpop.permute.xlu0 %4418 }
 0x8e4   : > { %v4421_v25 = vunpack.i.h.bf16 %v4419_v20  ;;  %v4420_v57 = vunpack.i.l.bf16 %v4419_v20 }
 0x8e5   : > { %v2252_v42 = vpop.f32.mrf.mxu1 }
 0x8e6   : > { %v2816_v18 = vsel %vm1236_vm6, %v6262_v44, %v4421_v25  ;;  %v2815_v63 = vsel %vm1236_vm6, %v7406_v26, %v4420_v57 }
 0x8e7   : > { %v2832_v2 = vsel %vm2829_vm8, %v2815_v63, %v4425_v37  ;;  %v2833_v28 = vsel %vm2829_vm8, %v2816_v18, %v4426_v32  ;;  %v4449_v46 = vpop.permute.xlu1 %4448 }
 0x8e8   : > { %v4451_v52 = vunpack.i.h.bf16 %v4449_v46  ;;  %v4450_v29 = vunpack.i.l.bf16 %v4449_v46 }
 0x8ea   : > { %v2820_v41 = vsel %vm1236_vm6, %v7409_v31, %v4451_v52  ;;  %v2819_v59 = vsel %vm1236_vm6, %v7410_v3, %v4450_v29 }
 0x8eb   : > { %v4429_v14 = vpop.permute.xlu0 %4428 }
 0x8ec   : > { %v4431_v54 = vunpack.i.h.bf16 %v4429_v14  ;;  %v4430_v24 = vunpack.i.l.bf16 %v4429_v14 }
 0x8ed   : > { %v2254_v17 = vpop.f32.mrf.mxu1  ;;  %v2606_v0 = vpop.f32.mrf.mxu0 }
 0x8ee   : > { %v2849_v22 = vsel %vm2846_vm9, %v2832_v2, %v4430_v24  ;;  %v2850_v11 = vsel %vm2846_vm9, %v2833_v28, %v4431_v54  ;;  %v4482_v19 = vpack.i.bf16 %v2254_v17, %v2252_v42  ;;  %v7411_v24 = vld [vmem:[#allocation21_spill] sm:$0xff]  ;;  %v7412_v28 = vld [vmem:[#allocation20_spill] sm:$0xff] }
 0x8ef   : > { %v2864_v44 = vpack.c.bf16 %v2850_v11, %v2849_v22  ;;  %v4464_v25 = vpop.permute.xlu1 %4463 }
 0x8f0   : > { %4483 = vrot.lane.b32.xlu2 %v4482_v19, %s4987_s28  ;;  %v4466_v63 = vunpack.i.h.bf16 %v4464_v25  ;;  %v4465_v32 = vunpack.i.l.bf16 %v4464_v25 }
 0x8f2   : > { %4243 = vmatmul.msk.bf16.gmra.mxu2 %vm701_vm1, %v2864_v44  ;;  %v2822_v2 = vsel %vm1236_vm6, %v7411_v24, %v4466_v63  ;;  %v2821_v17 = vsel %vm1236_vm6, %v7412_v28, %v4465_v32 }
 0x8f4   : > { %v4444_v33 = vpop.permute.xlu0 %4443 }
 0x8f5   : > { %v2608_v48 = vpop.f32.mrf.mxu0  ;;  %v4446_v8 = vunpack.i.h.bf16 %v4444_v33  ;;  %v4445_v10 = vunpack.i.l.bf16 %v4444_v33  ;;  %v4916_v33 = vld [vmem:[%s5156_s2] sm:$0xff] }
 0x8f6   : > { %v4487_v12 = vpack.i.bf16 %v2608_v48, %v2606_v0 }
 0x8f8   : > { %4488 = vrot.lane.b32.xlu0 %v4487_v12, %s4986_s27 }
 0x8fd   : > { %v2257_v35 = vpop.f32.mrf.mxu1 }
 0x904   : > { %v4459_v7 = vpop.permute.xlu0 %4458 }
 0x905   : > { %v2259_v34 = vpop.f32.mrf.mxu1  ;;  %v4461_v6 = vunpack.i.h.bf16 %v4459_v7  ;;  %v4460_v49 = vunpack.i.l.bf16 %v4459_v7 }
 0x906   : > { %v4497_v36 = vpack.i.bf16 %v2259_v34, %v2257_v35 }
 0x908   : > { %4498 = vrot.lane.b32.xlu2 %v4497_v36, %s4987_s28  ;;  %v4479_v36 = vpop.permute.xlu1 %4478 }
 0x90e   : > { %v4439_v38 = vpop.permute.xlu2 %4438 }
 0x90f   : > { %v4441_v27 = vunpack.i.h.bf16 %v4439_v38  ;;  %v4440_v45 = vunpack.i.l.bf16 %v4439_v38 }
 0x911   : > { %v2834_v5 = vsel %vm2829_vm8, %v2817_v56, %v4440_v45  ;;  %v2835_v50 = vsel %vm2829_vm8, %v2818_v60, %v4441_v27  ;;  %v4481_v27 = vunpack.i.h.bf16 %v4479_v36  ;;  %v4480_v45 = vunpack.i.l.bf16 %v4479_v36 }
 0x912   : > { %v2851_v4 = vsel %vm2846_vm9, %v2834_v5, %v4445_v10  ;;  %v2852_v13 = vsel %vm2846_vm9, %v2835_v50, %v4446_v8  ;;  %v7414_v10 = vld [vmem:[#allocation23_spill] sm:$0xff]  ;;  %v7415_v50 = vld [vmem:[#allocation22_spill] sm:$0xff] }
 0x913   : > { %v2865_v21 = vpack.c.bf16 %v2852_v13, %v2851_v4  ;;  %v2824_v5 = vsel %vm1236_vm6, %v7414_v10, %v4481_v27  ;;  %v2823_v4 = vsel %vm1236_vm6, %v7415_v50, %v4480_v45 }
 0x915   : > { %4244 = vmatmul.msk.bf16.gmra.mxu2 %vm701_vm1, %v2865_v21 }
 0x91e   : > { %v4454_v53 = vpop.permute.xlu2 %4453 }
 0x91f   : > { %v4456_v15 = vunpack.i.h.bf16 %v4454_v53  ;;  %v4455_v47 = vunpack.i.l.bf16 %v4454_v53 }
 0x921   : > { %v2836_v61 = vsel %vm2829_vm8, %v2819_v59, %v4455_v47  ;;  %v2837_v30 = vsel %vm2829_vm8, %v2820_v41, %v4456_v15  ;;  %v4917_v47 = vld [vmem:[%s5156_s2 + $0x8] sm:$0xff] }
 0x922   : > { %v2853_v58 = vsel %vm2846_vm9, %v2836_v61, %v4460_v49  ;;  %v2854_v16 = vsel %vm2846_vm9, %v2837_v30, %v4461_v6  ;;  %v4918_v6 = vld [vmem:[%s5156_s2 + $0x10] sm:$0xff] }
 0x923   : > { %v2866_v39 = vpack.c.bf16 %v2854_v16, %v2853_v58  ;;  %v4919_v16 = vld [vmem:[%s5156_s2 + $0x18] sm:$0xff] }
 0x925   : > { %4245 = vmatmul.msk.bf16.gmra.mxu2 %vm701_vm1, %v2866_v39 }
 0x92e   : > { %v4469_v18 = vpop.permute.xlu2 %4468 }
 0x92f   : > { %v4471_v37 = vunpack.i.h.bf16 %v4469_v18  ;;  %v4470_v14 = vunpack.i.l.bf16 %v4469_v18 }
 0x930   : > { %v2611_v23 = vpop.f32.mrf.mxu0 }
 0x931   : > { %v2838_v11 = vsel %vm2829_vm8, %v2821_v17, %v4470_v14  ;;  %v2839_v19 = vsel %vm2829_vm8, %v2822_v2, %v4471_v37  ;;  %v4494_v14 = vpop.permute.xlu1 %4493  ;;  %v4922_v2 = vld [vmem:[%s5156_s2 + $0x30] sm:$0xff] }
 0x932   : > { %v4496_v17 = vunpack.i.h.bf16 %v4494_v14 }
 0x938   : > { %v2613_v1 = vpop.f32.mrf.mxu0 }
 0x939   : > { %v4502_v20 = vpack.i.bf16 %v2613_v1, %v2611_v23 }
 0x93b   : > { %4503 = vrot.lane.b32.xlu0 %v4502_v20, %s4986_s27 }
 0x940   : > { %v2262_v42 = vpop.f32.mrf.mxu1 }
 0x948   : > { %v2264_v57 = vpop.f32.mrf.mxu1  ;;  %v2616_v9 = vpop.f32.mrf.mxu0 }
 0x949   : > { %v4512_v26 = vpack.i.bf16 %v2264_v57, %v2262_v42  ;;  %v4920_v42 = vld [vmem:[%s5156_s2 + $0x20] sm:$0xff] }
 0x94a   : > { %v4484_v55 = vpop.permute.xlu2 %4483 }
 0x94b   : > { %4513 = vrot.lane.b32.xlu2 %v4512_v26, %s4987_s28  ;;  %v4486_v62 = vunpack.i.h.bf16 %v4484_v55  ;;  %v4485_v60 = vunpack.i.l.bf16 %v4484_v55  ;;  %v4921_v26 = vld [vmem:[%s5156_s2 + $0x28] sm:$0xff] }
 0x94d   : > { %v2841_v46 = vsel %vm2829_vm8, %v2824_v5, %v4486_v62  ;;  %v2840_v52 = vsel %vm2829_vm8, %v2823_v4, %v4485_v60  ;;  %v4509_v60 = vpop.permute.xlu1 %4508 }
 0x94e   : > { %v4474_v54 = vpop.permute.xlu0 %4473  ;;  %v4510_v10 = vunpack.i.l.bf16 %v4509_v60 }
 0x94f   : > { %v4476_v0 = vunpack.i.h.bf16 %v4474_v54  ;;  %v4475_v22 = vunpack.i.l.bf16 %v4474_v54 }
 0x950   : > { %v2618_v44 = vpop.f32.mrf.mxu0 }
 0x951   : > { %v2856_v48 = vsel %vm2846_vm9, %v2839_v19, %v4476_v0  ;;  %v2855_v12 = vsel %vm2846_vm9, %v2838_v11, %v4475_v22  ;;  %v4517_v35 = vpack.i.bf16 %v2618_v44, %v2616_v9  ;;  %v4495_v0 = vunpack.i.l.bf16 %v4494_v14 }
 0x952   : > { %v2867_v34 = vpack.c.bf16 %v2856_v48, %v2855_v12  ;;  %v7416_v12 = vld [vmem:[#allocation25_spill] sm:$0xff] }
 0x953   : > { %4518 = vrot.lane.b32.xlu0 %v4517_v35, %s4986_s27  ;;  %v2826_v35 = vsel %vm1236_vm6, %v7416_v12, %v4496_v17  ;;  %v4925_v12 = vld [vmem:[%s5156_s2 + $0x48] sm:$0xff] }
 0x954   : > { %4246 = vmatmul.msk.bf16.gmra.mxu2 %vm701_vm1, %v2867_v34  ;;  %v7417_v34 = vld [vmem:[#allocation24_spill] sm:$0xff] }
 0x955   : > { %v2825_v36 = vsel %vm1236_vm6, %v7417_v34, %v4495_v0 }
 0x962   : > { %v4499_v54 = vpop.permute.xlu2 %4498 }
 0x963   : > { %v4501_v22 = vunpack.i.h.bf16 %v4499_v54  ;;  %v4500_v11 = vunpack.i.l.bf16 %v4499_v54 }
 0x965   : > { %v2920_v43 = vpop.f32.mrf.mxu2 }
 0x966   : > { %v2960_v38 = vadd.f32 %v4916_v33, %v2920_v43  ;;  %v2843_v33 = vsel %vm2829_vm8, %v2826_v35, %v4501_v22 }
 0x968   : > { %v6809_v40 = vadd.f32 %v6805_v51, %v2960_v38  ;;  %v2842_v38 = vsel %vm2829_vm8, %v2825_v36, %v4500_v11 }
 0x96a   : > { %v4489_v56 = vpop.permute.xlu0 %4488  ;;  %v2998_v8 = vsel %vm701_vm1, %v6809_v40, 0.0 }
 0x96b   : > { %v4491_v13 = vunpack.i.h.bf16 %v4489_v56  ;;  %v4490_v21 = vunpack.i.l.bf16 %v4489_v56  ;;  %2999 = vadd.xlane.f32.xlu1 %v2998_v8  ;;  %v4511_v8 = vunpack.i.h.bf16 %v4509_v60 }
 0x96d   : > { %v2858_v29 = vsel %vm2846_vm9, %v2841_v46, %v4491_v13  ;;  %v2857_v7 = vsel %vm2846_vm9, %v2840_v52, %v4490_v21  ;;  %v2922_v53 = vpop.f32.mrf.mxu2  ;;  %v7418_v13 = vld [vmem:[#allocation27_spill] sm:$0xff]  ;;  %v7419_v46 = vld [vmem:[#allocation26_spill] sm:$0xff] }
 0x96e   : > { %v2868_v15 = vpack.c.bf16 %v2858_v29, %v2857_v7  ;;  %v2961_v31 = vadd.f32 %v4917_v47, %v2922_v53  ;;  %v2828_v21 = vsel %vm1236_vm6, %v7418_v13, %v4511_v8  ;;  %v2827_v52 = vsel %vm1236_vm6, %v7419_v46, %v4510_v10 }
 0x970   : > { %v6823_v41 = vadd.f32 %v6805_v51, %v2961_v31  ;;  %4247 = vmatmul.msk.bf16.gmra.mxu2 %vm701_vm1, %v2868_v15 }
 0x972   : > { %v3001_v3 = vsel %vm701_vm1, %v6823_v41, 0.0 }
 0x974   : > { %3002 = vadd.xlane.f32.xlu2 %v3001_v3 }
 0x975   : > { %v2925_v59 = vpop.f32.mrf.mxu2 }
 0x976   : > { %v2962_v49 = vadd.f32 %v4918_v6, %v2925_v59  ;;  %v7420_v6 = vld [vmem:[#allocation9_spill] sm:$0xff] }
 0x978   : > { %v6830_v61 = vadd.f32 %v6805_v51, %v2962_v49 }
 0x97a   : > { %v3004_v30 = vsel %vm701_vm1, %v6830_v61, 0.0 }
 0x97d   : > { %3005 = vadd.xlane.f32.xlu0 %v3004_v30  ;;  %v2927_v58 = vpop.f32.mrf.mxu2 }
 0x97e   : > { %v2963_v39 = vadd.f32 %v4919_v16, %v2927_v58 }
 0x980   : > { %v6836_v23 = vadd.f32 %v6805_v51, %v2963_v39  ;;  %v4923_v39 = vld [vmem:[%s5156_s2 + $0x38] sm:$0xff] }
 0x982   : > { %v3007_v1 = vsel %vm701_vm1, %v6836_v23, 0.0 }
 0x983   : > { %3008 = vadd.xlane.f32.xlu2 %v3007_v1 }
 0x998   : > { %v2930_v20 = vpop.f32.mrf.mxu2 }
 0x999   : > { %v2964_v25 = vadd.f32 %v4920_v42, %v2930_v20 }
 0x99b   : > { %v6842_v57 = vadd.f32 %v6805_v51, %v2964_v25 }
 0x99d   : > { %v3010_v9 = vsel %vm701_vm1, %v6842_v57, 0.0 }
 0x99e   : > { %3011 = vadd.xlane.f32.xlu1 %v3010_v9 }
 0x9a0   : > { %v2932_v18 = vpop.f32.mrf.mxu2 }
 0x9a1   : > { %v2965_v63 = vadd.f32 %v4921_v26, %v2932_v18 }
 0x9a3   : > { %v6848_v32 = vadd.f32 %v6805_v51, %v2965_v63 }
 0x9a5   : > { %v3013_v37 = vsel %vm701_vm1, %v6848_v32, 0.0  ;;  %v4514_v56 = vpop.permute.xlu2 %4513 }
 0x9a6   : > { %3014 = vadd.xlane.f32.xlu0 %v3013_v37  ;;  %v4516_v5 = vunpack.i.h.bf16 %v4514_v56  ;;  %v4515_v50 = vunpack.i.l.bf16 %v4514_v56  ;;  %v4924_v37 = vld [vmem:[%s5156_s2 + $0x40] sm:$0xff] }
 0x9a8   : > { %v2935_v24 = vpop.f32.mrf.mxu2  ;;  %v2845_v53 = vsel %vm2829_vm8, %v2828_v21, %v4516_v5  ;;  %v2844_v15 = vsel %vm2829_vm8, %v2827_v52, %v4515_v50  ;;  %v4927_v21 = vld [vmem:[%s5156_s2 + $0x58] sm:$0xff] }
 0x9a9   : > { %v2966_v28 = vadd.f32 %v4922_v2, %v2935_v24 }
 0x9ab   : > { %v6854_v19 = vadd.f32 %v6805_v51, %v2966_v28 }
 0x9ad   : > { %v4504_v44 = vpop.permute.xlu0 %4503  ;;  %v3016_v48 = vsel %vm701_vm1, %v6854_v19, 0.0 }
 0x9ae   : > { %v4506_v55 = vunpack.i.h.bf16 %v4504_v44  ;;  %v4505_v43 = vunpack.i.l.bf16 %v4504_v44  ;;  %3017 = vadd.xlane.f32.xlu0 %v3016_v48 }
 0x9b0   : > { %v2860_v27 = vsel %vm2846_vm9, %v2843_v33, %v4506_v55  ;;  %v2859_v45 = vsel %vm2846_vm9, %v2842_v38, %v4505_v43  ;;  %v2937_v58 = vpop.f32.mrf.mxu2 }
 0x9b1   : > { %v2869_v62 = vpack.c.bf16 %v2860_v27, %v2859_v45  ;;  %v2967_v1 = vadd.f32 %v4923_v39, %v2937_v58  ;;  %v4926_v45 = vld [vmem:[%s5156_s2 + $0x50] sm:$0xff] }
 0x9b3   : > { %4248 = vmatmul.msk.bf16.gmra.mxu2 %vm701_vm1, %v2869_v62  ;;  %v6886_v9 = vadd.f32 %v6805_v51, %v2967_v1 }
 0x9b5   : > { %v3019_v54 = vsel %vm701_vm1, %v6886_v9, 0.0 }
 0x9c5   : > { %v4519_v4 = vpop.permute.xlu0 %4518 }
 0x9c6   : > { %v4521_v29 = vunpack.i.h.bf16 %v4519_v4  ;;  %v4520_v7 = vunpack.i.l.bf16 %v4519_v4 }
 0x9c8   : > { %v2862_v47 = vsel %vm2846_vm9, %v2845_v53, %v4521_v29  ;;  %v2861_v31 = vsel %vm2846_vm9, %v2844_v15, %v4520_v7 }
 0x9c9   : > { %v2870_v3 = vpack.c.bf16 %v2862_v47, %v2861_v31 }
 0x9cb   : > { %4249 = vmatmul.msk.bf16.gmra.mxu2 %vm701_vm1, %v2870_v3 }
 0x9d7   : > { %v2940_v18 = vpop.f32.mrf.mxu2 }
 0x9d8   : > { %v2968_v14 = vadd.f32 %v4924_v37, %v2940_v18  ;;  %v4929_v37 = vld [vmem:[%s5156_s2 + $0x68] sm:$0xff] }
 0x9da   : > { %v6898_v28 = vadd.f32 %v6805_v51, %v2968_v14 }
 0x9dc   : > { %v3022_v11 = vsel %vm701_vm1, %v6898_v28, 0.0 }
 0x9de   : > { %v3000_v59 = vpop.xlane.xlu1 %2999 }
 0x9df   : > { %v3046_v49 = vmul.f32 %v3000_v59, %v7420_v6  ;;  %v2942_v22 = vpop.f32.mrf.mxu2 }
 0x9e0   : > { %v2969_v35 = vadd.f32 %v4925_v12, %v2942_v22  ;;  %v4930_v22 = vld [vmem:[%s5156_s2 + $0x78] sm:$0xff] }
 0x9e1   : > { %v6878_v30 = vsub.f32 %v6809_v40, %v3046_v49 }
 0x9e2   : > { %v6915_v43 = vadd.f32 %v6805_v51, %v2969_v35  ;;  %v4327_v35 = vld [vmem:[%s5137_s26 + $0x8] sm:$0xff] }
 0x9e3   : > { %v3078_v16 = vmul.f32 %v6878_v30, %v6878_v30  ;;  %3446 = vmatpush.bf16.msra.mxu1 %v4327_v35  ;;  %4336 = vmatpush.bf16.msrb.mxu2 %v4327_v35 }
 0x9e4   : > { %v3025_v60 = vsel %vm701_vm1, %v6915_v43, 0.0 }
 0x9e5   : > { %v3094_v20 = vsel %vm701_vm1, %v3078_v16, 0.0 }
 0x9e6   : > { %3095 = vadd.xlane.f32.xlu2 %v3094_v20  ;;  %v4928_v20 = vld [vmem:[%s5156_s2 + $0x60] sm:$0xff] }
 0x9e7   : > { %v3003_v42 = vpop.xlane.xlu2 %3002 }
 0x9e8   : > { %v3047_v25 = vmul.f32 %v3003_v42, %v7420_v6 }
 0x9ea   : > { %v6889_v26 = vsub.f32 %v6823_v41, %v3047_v25 }
 0x9ec   : > { %v3079_v63 = vmul.f32 %v6889_v26, %v6889_v26 }
 0x9ee   : > { %3020 = vadd.xlane.f32.xlu2 %v3019_v54  ;;  %v3097_v24 = vsel %vm701_vm1, %v3079_v63, 0.0 }
 0x9ef   : > { %3098 = vadd.xlane.f32.xlu1 %v3097_v24 }
 0x9f0   : > { %v3006_v2 = vpop.xlane.xlu0 %3005 }
 0x9f1   : > { %v3048_v17 = vmul.f32 %v3006_v2, %v7420_v6 }
 0x9f3   : > { %v6902_v0 = vsub.f32 %v6830_v61, %v3048_v17  ;;  %v2945_v38 = vpop.f32.mrf.mxu2 }
 0x9f4   : > { %v2970_v62 = vadd.f32 %v4926_v45, %v2945_v38 }
 0x9f5   : > { %v3080_v44 = vmul.f32 %v6902_v0, %v6902_v0 }
 0x9f6   : > { %v3009_v48 = vpop.xlane.xlu2 %3008  ;;  %3023 = vadd.xlane.f32.xlu2 %v3022_v11  ;;  %v6924_v56 = vadd.f32 %v6805_v51, %v2970_v62 }
 0x9f7   : > { %v3049_v34 = vmul.f32 %v3009_v48, %v7420_v6  ;;  %v3100_v36 = vsel %vm701_vm1, %v3080_v44, 0.0 }
 0x9f8   : > { %3101 = vadd.xlane.f32.xlu1 %v3100_v36  ;;  %v3028_v8 = vsel %vm701_vm1, %v6924_v56, 0.0 }
 0x9f9   : > { %v6912_v55 = vsub.f32 %v6836_v23, %v3049_v34 }
 0x9fb   : > { %v3081_v33 = vmul.f32 %v6912_v55, %v6912_v55  ;;  %v2947_v4 = vpop.f32.mrf.mxu2 }
 0x9fc   : > { %v2971_v46 = vadd.f32 %v4927_v21, %v2947_v4  ;;  %v4931_v21 = vld [vmem:[%s5156_s2 + $0x70] sm:$0xff] }
 0x9fd   : > { %v3103_v27 = vsel %vm701_vm1, %v3081_v33, 0.0  ;;  %v4326_v33 = vld [vmem:[%s5137_s26] sm:$0xff] }
 0x9fe   : > { %3104 = vadd.xlane.f32.xlu0 %v3103_v27  ;;  %v6938_v53 = vadd.f32 %v6805_v51, %v2971_v46  ;;  %3447 = vmatpush.bf16.msra.mxu1 %v4326_v33 }
 0x9ff   : > { %4337 = vmatpush.bf16.msrb.mxu2 %v4326_v33 }
 0xa00   : > { %3026 = vadd.xlane.f32.xlu1 %v3025_v60  ;;  %v3031_v3 = vsel %vm701_vm1, %v6938_v53, 0.0 }
 0xa08   : > { %3029 = vadd.xlane.f32.xlu1 %v3028_v8 }
 0xa11   : > { %v3012_v10 = vpop.xlane.xlu1 %3011 }
 0xa12   : > { %v3050_v5 = vmul.f32 %v3012_v10, %v7420_v6 }
 0xa14   : > { %v6930_v50 = vsub.f32 %v6842_v57, %v3050_v5 }
 0xa16   : > { %v3082_v13 = vmul.f32 %v6930_v50, %v6930_v50 }
 0xa18   : > { %v3106_v52 = vsel %vm701_vm1, %v3082_v13, 0.0 }
 0xa19   : > { %v3015_v29 = vpop.xlane.xlu0 %3014  ;;  %3107 = vadd.xlane.f32.xlu0 %v3106_v52 }
 0xa1a   : > { %v3051_v7 = vmul.f32 %v3015_v29, %v7420_v6 }
 0xa1c   : > { %v6941_v15 = vsub.f32 %v6848_v32, %v3051_v7 }
 0xa1e   : > { %v3083_v47 = vmul.f32 %v6941_v15, %v6941_v15 }
 0xa20   : > { %v3109_v31 = vsel %vm701_vm1, %v3083_v47, 0.0 }
 0xa21   : > { %v3018_v59 = vpop.xlane.xlu0 %3017  ;;  %3110 = vadd.xlane.f32.xlu2 %v3109_v31  ;;  %3032 = vadd.xlane.f32.xlu0 %v3031_v3 }
 0xa22   : > { %v3052_v49 = vmul.f32 %v3018_v59, %v7420_v6 }
 0xa24   : > { %v6950_v58 = vsub.f32 %v6854_v19, %v3052_v49 }
 0xa26   : > { %v3084_v16 = vmul.f32 %v6950_v58, %v6950_v58 }
 0xa28   : > { %v3112_v39 = vsel %vm701_vm1, %v3084_v16, 0.0 }
 0xa29   : > { %3113 = vadd.xlane.f32.xlu2 %v3112_v39 }
 0xa36   : > { %v2950_v1 = vpop.f32.mrf.mxu2 }
 0xa37   : > { %v2972_v42 = vadd.f32 %v4928_v20, %v2950_v1 }
 0xa39   : > { %v6957_v25 = vadd.f32 %v6805_v51, %v2972_v42 }
 0xa3b   : > { %v3034_v18 = vsel %vm701_vm1, %v6957_v25, 0.0 }
 0xa3c   : > { %3035 = vadd.xlane.f32.xlu0 %v3034_v18 }
 0xa3e   : > { %v2952_v63 = vpop.f32.mrf.mxu2 }
 0xa3f   : > { %v2973_v14 = vadd.f32 %v4929_v37, %v2952_v63 }
 0xa41   : > { %v6963_v54 = vadd.f32 %v6805_v51, %v2973_v14 }
 0xa43   : > { %v3037_v24 = vsel %vm701_vm1, %v6963_v54, 0.0 }
 0xa44   : > { %3038 = vadd.xlane.f32.xlu2 %v3037_v24 }
 0xa4e   : > { %v2955_v2 = vpop.f32.mrf.mxu2 }
 0xa4f   : > { %v2974_v46 = vadd.f32 %v4931_v21, %v2955_v2 }
 0xa51   : > { %v6987_v59 = vadd.f32 %v6805_v51, %v2974_v46 }
 0xa56   : > { %v2957_v17 = vpop.f32.mrf.mxu2 }
 0xa57   : > { %v2975_v11 = vadd.f32 %v4930_v22, %v2957_v17 }
 0xa59   : > { %v6969_v44 = vadd.f32 %v6805_v51, %v2975_v11  ;;  %v3096_v48 = vpop.xlane.xlu2 %3095  ;;  %v3040_v51 = vsel %vm701_vm1, %v6987_v59, 0.0  ;;  %v7004_v11 = vld [vmem:[%s7421_s29] ss:$0 sm:$0xff] }
 0xa5a   : > { %v3142_v12 = vmul.f32 %v3096_v48, %v7420_v6 }
 0xa5b   : > { %v3043_v34 = vsel %vm701_vm1, %v6969_v44, 0.0 }
 0xa5c   : > { %v3158_v36 = vadd.f32 1e-05, %v3142_v12  ;;  %3044 = vadd.xlane.f32.xlu0 %v3043_v34 }
 0xa5e   : > { %4820 = vrsqrt.f32 %v3158_v36  ;;  %vm3180_vm11 = vweird.f32 %v3158_v36 }
 0xa61   : > { %v3021_v38 = vpop.xlane.xlu2 %3020 }
 0xa62   : > { %v3053_v27 = vmul.f32 %v3021_v38, %v7420_v6  ;;  %v3099_v45 = vpop.xlane.xlu1 %3098 }
 0xa63   : > { %v3143_v62 = vmul.f32 %v3099_v45, %v7420_v6  ;;  %v7016_v45 = vld [vmem:[%s623_s3] ss:$0 sm:$0xff] }
 0xa64   : > { %v4821_v60 = vpop.eup %4820  ;;  %v6979_v8 = vsub.f32 %v6886_v9, %v3053_v27 }
 0xa65   : > { %v3175_v10 = vmul.f32 %v4821_v60, %v3158_v36  ;;  %v3159_v5 = vadd.f32 1e-05, %v3143_v62  ;;  %vm3181_vm10 = vweird.f32 %v4821_v60 }
 0xa66   : > { %v3085_v4 = vmul.f32 %v6979_v8, %v6979_v8  ;;  %vm3182_vm12 = vmor %vm3180_vm11, %vm3181_vm10 }
 0xa67   : > { %v3176_v13 = vmul.f32 %v4821_v60, %v3175_v10  ;;  %4822 = vrsqrt.f32 %v3159_v5  ;;  %vm3190_vm14 = vweird.f32 %v3159_v5 }
 0xa68   : > { %v3115_v52 = vsel %vm701_vm1, %v3085_v4, 0.0 }
 0xa69   : > { %v3177_v29 = vmul.f32 0.5, %v3176_v13  ;;  %v3024_v7 = vpop.xlane.xlu2 %3023  ;;  %3116 = vadd.xlane.f32.xlu1 %v3115_v52 }
 0xa6a   : > { %v3054_v47 = vmul.f32 %v3024_v7, %v7420_v6 }
 0xa6b   : > { %v3178_v31 = vsub.f32 1.5, %v3177_v29  ;;  %v3102_v3 = vpop.xlane.xlu1 %3101 }
 0xa6c   : > { %v6990_v49 = vsub.f32 %v6898_v28, %v3054_v47  ;;  %v3144_v16 = vmul.f32 %v3102_v3, %v7420_v6 }
 0xa6d   : > { %v4823_v39 = vpop.eup %4822  ;;  %v3179_v1 = vmul.f32 %v4821_v60, %v3178_v31 }
 0xa6e   : > { %v3185_v20 = vmul.f32 %v4823_v39, %v3159_v5  ;;  %v3160_v42 = vadd.f32 1e-05, %v3144_v16  ;;  %v3086_v18 = vmul.f32 %v6990_v49, %v6990_v49  ;;  %vm3191_vm13 = vweird.f32 %v4823_v39 }
 0xa6f   : > { %v3183_v37 = vsel %vm3182_vm12, %v4821_v60, %v3179_v1  ;;  %vm3192_vm15 = vmor %vm3190_vm14, %vm3191_vm13 }
 0xa70   : > { %v3186_v63 = vmul.f32 %v4823_v39, %v3185_v20  ;;  %4824 = vrsqrt.f32 %v3160_v42  ;;  %v3118_v24 = vsel %vm701_vm1, %v3086_v18, 0.0  ;;  %v3334_v48 = vmul.f32 %v3183_v37, %v6878_v30 }
 0xa71   : > { %v3105_v14 = vpop.xlane.xlu0 %3104  ;;  %3041 = vadd.xlane.f32.xlu1 %v3040_v51  ;;  %3119 = vadd.xlane.f32.xlu2 %v3118_v24  ;;  %vm3200_vm2 = vweird.f32 %v3160_v42 }
 0xa72   : > { %v3187_v2 = vmul.f32 0.5, %v3186_v63  ;;  %v3145_v17 = vmul.f32 %v3105_v14, %v7420_v6  ;;  %v3353_v30 = vmul.f32 %v7004_v11, %v3334_v48 }
 0xa73   : > { %v3027_v22 = vpop.xlane.xlu1 %3026 }
 0xa74   : > { %v3188_v12 = vsub.f32 1.5, %v3187_v2  ;;  %v3161_v35 = vadd.f32 1e-05, %v3145_v17  ;;  %v3055_v34 = vmul.f32 %v3027_v22, %v7420_v6  ;;  %v3372_v29 = vadd.f32 %v7016_v45, %v3353_v30 }
 0xa76   : > { %v4825_v36 = vpop.eup %4824  ;;  %v3189_v33 = vmul.f32 %v4823_v39, %v3188_v12  ;;  %4826 = vrsqrt.f32 %v3161_v35  ;;  %v7009_v38 = vsub.f32 %v6915_v43, %v3055_v34  ;;  %vm3210_vm5 = vweird.f32 %v3161_v35 }
 0xa77   : > { %v3195_v27 = vmul.f32 %v4825_v36, %v3160_v42  ;;  %vm3201_vm0 = vweird.f32 %v4825_v36 }
 0xa78   : > { %v3193_v62 = vsel %vm3192_vm15, %v4823_v39, %v3189_v33  ;;  %v3087_v60 = vmul.f32 %v7009_v38, %v7009_v38  ;;  %vm3202_vm3 = vmor %vm3200_vm2, %vm3201_vm0 }
 0xa79   : > { %v3335_v10 = vmul.f32 %v3193_v62, %v6889_v26  ;;  %v3196_v5 = vmul.f32 %v4825_v36, %v3195_v27 }
 0xa7a   : > { %v3121_v4 = vsel %vm701_vm1, %v3087_v60, 0.0 }
 0xa7b   : > { %v3354_v13 = vmul.f32 %v7004_v11, %v3335_v10  ;;  %v3197_v21 = vmul.f32 0.5, %v3196_v5  ;;  %v3030_v46 = vpop.xlane.xlu1 %3029  ;;  %3122 = vadd.xlane.f32.xlu1 %v3121_v4 }
 0xa7c   : > { %v4827_v52 = vpop.eup %4826  ;;  %v3056_v7 = vmul.f32 %v3030_v46, %v7420_v6 }
 0xa7d   : > { %v3373_v47 = vadd.f32 %v7016_v45, %v3354_v13  ;;  %v3198_v31 = vsub.f32 1.5, %v3197_v21  ;;  %v3205_v3 = vmul.f32 %v4827_v52, %v3161_v35  ;;  %vm3211_vm4 = vweird.f32 %v4827_v52 }
 0xa7e   : > { %v7028_v26 = vsub.f32 %v6924_v56, %v3056_v7  ;;  %vm3212_vm6 = vmor %vm3210_vm5, %vm3211_vm4 }
 0xa7f   : > { %v3388_v16 = vpack.c.bf16 %v3373_v47, %v3372_v29  ;;  %v3199_v39 = vmul.f32 %v4825_v36, %v3198_v31  ;;  %v3206_v1 = vmul.f32 %v4827_v52, %v3205_v3 }
 0xa80   : > { %v3088_v20 = vmul.f32 %v7028_v26, %v7028_v26 }
 0xa81   : > { %v3203_v18 = vsel %vm3202_vm3, %v4825_v36, %v3199_v39  ;;  %v3207_v63 = vmul.f32 0.5, %v3206_v1  ;;  %4258 = vmatmul.msk.bf16.vlgmr.msra.gmra.mxu1 %vm701_vm1, %v3388_v16 }
 0xa82   : > { %v3124_v51 = vsel %vm701_vm1, %v3088_v20, 0.0  ;;  %v3336_v14 = vmul.f32 %v3203_v18, %v6902_v0 }
 0xa83   : > { %v3208_v37 = vsub.f32 1.5, %v3207_v63  ;;  %3125 = vadd.xlane.f32.xlu0 %v3124_v51 }
 0xa84   : > { %v3355_v17 = vmul.f32 %v7004_v11, %v3336_v14 }
 0xa85   : > { %v3209_v24 = vmul.f32 %v4827_v52, %v3208_v37 }
 0xa86   : > { %v3374_v12 = vadd.f32 %v7016_v45, %v3355_v17 }
 0xa87   : > { %v3213_v42 = vsel %vm3212_vm6, %v4827_v52, %v3209_v24 }
 0xa88   : > { %v3337_v2 = vmul.f32 %v3213_v42, %v6912_v55 }
 0xa8a   : > { %v3356_v22 = vmul.f32 %v7004_v11, %v3337_v2 }
 0xa8c   : > { %v3108_v48 = vpop.xlane.xlu0 %3107  ;;  %v3375_v34 = vadd.f32 %v7016_v45, %v3356_v22 }
 0xa8d   : > { %v3146_v36 = vmul.f32 %v3108_v48, %v7420_v6 }
 0xa8e   : > { %v3389_v33 = vpack.c.bf16 %v3375_v34, %v3374_v12 }
 0xa8f   : > { %v3162_v27 = vadd.f32 1e-05, %v3146_v36 }
 0xa91   : > { %4828 = vrsqrt.f32 %v3162_v27  ;;  %4259 = vmatmul.msk.bf16.gmra.mxu1 %vm701_vm1, %v3389_v33  ;;  %vm3220_vm8 = vweird.f32 %v3162_v27 }
 0xa94   : > { %v3111_v0 = vpop.xlane.xlu2 %3110  ;;  %v3033_v35 = vpop.xlane.xlu0 %3032 }
 0xa95   : > { %v3147_v55 = vmul.f32 %v3111_v0, %v7420_v6  ;;  %v3057_v30 = vmul.f32 %v3033_v35, %v7420_v6 }
 0xa97   : > { %v4829_v62 = vpop.eup %4828  ;;  %v3163_v60 = vadd.f32 1e-05, %v3147_v55  ;;  %v7045_v10 = vsub.f32 %v6938_v53, %v3057_v30 }
 0xa98   : > { %v3215_v5 = vmul.f32 %v4829_v62, %v3162_v27  ;;  %vm3221_vm7 = vweird.f32 %v4829_v62 }
 0xa99   : > { %4830 = vrsqrt.f32 %v3163_v60  ;;  %v3089_v4 = vmul.f32 %v7045_v10, %v7045_v10  ;;  %vm3222_vm9 = vmor %vm3220_vm8, %vm3221_vm7  ;;  %vm3230_vm11 = vweird.f32 %v3163_v60 }
 0xa9a   : > { %v3216_v13 = vmul.f32 %v4829_v62, %v3215_v5 }
 0xa9b   : > { %v3127_v21 = vsel %vm701_vm1, %v3089_v4, 0.0 }
 0xa9c   : > { %v3217_v46 = vmul.f32 0.5, %v3216_v13  ;;  %3128 = vadd.xlane.f32.xlu2 %v3127_v21  ;;  %v3114_v14 = vpop.xlane.xlu2 %3113 }
 0xa9d   : > { %v3148_v0 = vmul.f32 %v3114_v14, %v7420_v6 }
 0xa9e   : > { %v3218_v52 = vsub.f32 1.5, %v3217_v46 }
 0xa9f   : > { %v4831_v29 = vpop.eup %4830  ;;  %v3164_v35 = vadd.f32 1e-05, %v3148_v0 }
 0xaa0   : > { %v3219_v7 = vmul.f32 %v4829_v62, %v3218_v52  ;;  %v3225_v47 = vmul.f32 %v4831_v29, %v3163_v60  ;;  %vm3231_vm10 = vweird.f32 %v4831_v29 }
 0xaa1   : > { %vm3232_vm12 = vmor %vm3230_vm11, %vm3231_vm10  ;;  %4832 = vrsqrt.f32 %v3164_v35  ;;  %vm3240_vm14 = vweird.f32 %v3164_v35 }
 0xaa2   : > { %v3226_v31 = vmul.f32 %v4831_v29, %v3225_v47  ;;  %v3223_v3 = vsel %vm3222_vm9, %v4829_v62, %v3219_v7 }
 0xaa3   : > { %v3338_v1 = vmul.f32 %v3223_v3, %v6930_v50 }
 0xaa4   : > { %v3227_v16 = vmul.f32 0.5, %v3226_v31 }
 0xaa5   : > { %v3357_v51 = vmul.f32 %v7004_v11, %v3338_v1 }
 0xaa6   : > { %v3228_v39 = vsub.f32 1.5, %v3227_v16 }
 0xaa7   : > { %v3376_v42 = vadd.f32 %v7016_v45, %v3357_v51  ;;  %v4833_v5 = vpop.eup %4832 }
 0xaa8   : > { %v3229_v20 = vmul.f32 %v4831_v29, %v3228_v39  ;;  %v3235_v13 = vmul.f32 %v4833_v5, %v3164_v35  ;;  %vm3241_vm13 = vweird.f32 %v4833_v5 }
 0xaa9   : > { %vm3242_vm15 = vmor %vm3240_vm14, %vm3241_vm13 }
 0xaaa   : > { %v3233_v18 = vsel %vm3232_vm12, %v4831_v29, %v3229_v20  ;;  %v3236_v21 = vmul.f32 %v4833_v5, %v3235_v13 }
 0xaab   : > { %v3339_v63 = vmul.f32 %v3233_v18, %v6941_v15 }
 0xaac   : > { %v3237_v7 = vmul.f32 0.5, %v3236_v21 }
 0xaad   : > { %v3358_v37 = vmul.f32 %v7004_v11, %v3339_v63 }
 0xaae   : > { %v3238_v47 = vsub.f32 1.5, %v3237_v7 }
 0xaaf   : > { %v3036_v24 = vpop.xlane.xlu0 %3035  ;;  %v3377_v2 = vadd.f32 %v7016_v45, %v3358_v37 }
 0xab0   : > { %v3058_v17 = vmul.f32 %v3036_v24, %v7420_v6  ;;  %v3239_v18 = vmul.f32 %v4833_v5, %v3238_v47 }
 0xab1   : > { %v3390_v22 = vpack.c.bf16 %v3377_v2, %v3376_v42 }
 0xab2   : > { %v7058_v50 = vsub.f32 %v6957_v25, %v3058_v17  ;;  %v3243_v42 = vsel %vm3242_vm15, %v4833_v5, %v3239_v18  ;;  %v4335_v17 = vld [vmem:[%s5151_s22 + $0x38] sm:$0xff] }
 0xab3   : > { %4260 = vmatmul.msk.bf16.gmra.mxu1 %vm701_vm1, %v3390_v22  ;;  %3901 = vmatpush.bf16.msrb.mxu0 %v4335_v17 }
 0xab4   : > { %v3090_v15 = vmul.f32 %v7058_v50, %v7058_v50  ;;  %4338 = vmatpush.bf16.msra.mxu3 %v4335_v17 }
 0xab6   : > { %v3130_v48 = vsel %vm701_vm1, %v3090_v15, 0.0 }
 0xab7   : > { %v3039_v12 = vpop.xlane.xlu2 %3038  ;;  %3131 = vadd.xlane.f32.xlu1 %v3130_v48  ;;  %v3340_v48 = vmul.f32 %v3243_v42, %v6950_v58  ;;  %v4333_v58 = vld [vmem:[%s5151_s22 + $0x28] sm:$0xff] }
 0xab8   : > { %v3059_v34 = vmul.f32 %v3039_v12, %v7420_v6 }
 0xab9   : > { %v3359_v5 = vmul.f32 %v7004_v11, %v3340_v48 }
 0xaba   : > { %v7066_v36 = vsub.f32 %v6963_v54, %v3059_v34 }
 0xabc   : > { %v3091_v33 = vmul.f32 %v7066_v36, %v7066_v36 }
 0xabe   : > { %v3133_v27 = vsel %vm701_vm1, %v3091_v33, 0.0 }
 0xabf   : > { %3134 = vadd.xlane.f32.xlu0 %v3133_v27  ;;  %v4334_v27 = vld [vmem:[%s5151_s22 + $0x30] sm:$0xff] }
 0xac0   : > { %3902 = vmatpush.bf16.msrb.mxu0 %v4334_v27  ;;  %4339 = vmatpush.bf16.msra.mxu3 %v4334_v27 }
 0xac4   : > { %3903 = vmatpush.bf16.msrb.mxu0 %v4333_v58  ;;  %4340 = vmatpush.bf16.msra.mxu3 %v4333_v58  ;;  %v4328_v58 = vld [vmem:[%s5151_s22] sm:$0xff] }
 0xacf   : > { %v3045_v55 = vpop.xlane.xlu0 %3044 }
 0xad0   : > { %v3061_v30 = vmul.f32 %v3045_v55, %v7420_v6 }
 0xad2   : > { %v7074_v62 = vsub.f32 %v6969_v44, %v3061_v30 }
 0xad4   : > { %v3093_v60 = vmul.f32 %v7074_v62, %v7074_v62 }
 0xad6   : > { %v3139_v4 = vsel %vm701_vm1, %v3093_v60, 0.0 }
 0xad7   : > { %3140 = vadd.xlane.f32.xlu1 %v3139_v4 }
 0xadc   : > { %v3117_v46 = vpop.xlane.xlu1 %3116 }
 0xadd   : > { %v3149_v52 = vmul.f32 %v3117_v46, %v7420_v6 }
 0xadf   : > { %v3165_v29 = vadd.f32 1e-05, %v3149_v52  ;;  %v3378_v52 = vadd.f32 %v7016_v45, %v3359_v5 }
 0xae1   : > { %4834 = vrsqrt.f32 %v3165_v29  ;;  %vm3250_vm2 = vweird.f32 %v3165_v29 }
 0xae4   : > { %v3042_v31 = vpop.xlane.xlu1 %3041  ;;  %v3120_v3 = vpop.xlane.xlu2 %3119 }
 0xae5   : > { %v3060_v16 = vmul.f32 %v3042_v31, %v7420_v6  ;;  %v3150_v39 = vmul.f32 %v3120_v3, %v7420_v6 }
 0xae7   : > { %v4835_v1 = vpop.eup %4834  ;;  %v7083_v20 = vsub.f32 %v6987_v59, %v3060_v16  ;;  %v3166_v51 = vadd.f32 1e-05, %v3150_v39  ;;  %v4332_v16 = vld [vmem:[%s5151_s22 + $0x20] sm:$0xff] }
 0xae8   : > { %v3245_v63 = vmul.f32 %v4835_v1, %v3165_v29  ;;  %vm3251_vm0 = vweird.f32 %v4835_v1  ;;  %v7106_v39 = vld [vmem:[%s631_s17] ss:$0 sm:$0xff]  ;;  %3904 = vmatpush.bf16.msrb.mxu0 %v4332_v16  ;;  %4341 = vmatpush.bf16.msra.mxu3 %v4332_v16 }
 0xae9   : > { %v3092_v37 = vmul.f32 %v7083_v20, %v7083_v20  ;;  %4836 = vrsqrt.f32 %v3166_v51  ;;  %vm3252_vm3 = vmor %vm3250_vm2, %vm3251_vm0  ;;  %vm3260_vm5 = vweird.f32 %v3166_v51 }
 0xaea   : > { %v3246_v14 = vmul.f32 %v4835_v1, %v3245_v63 }
 0xaeb   : > { %v3136_v24 = vsel %vm701_vm1, %v3092_v37, 0.0 }
 0xaec   : > { %v3247_v2 = vmul.f32 0.5, %v3246_v14  ;;  %3137 = vadd.xlane.f32.xlu2 %v3136_v24  ;;  %v4331_v24 = vld [vmem:[%s5151_s22 + $0x18] sm:$0xff] }
 0xaed   : > { %3905 = vmatpush.bf16.msrb.mxu0 %v4331_v24  ;;  %4342 = vmatpush.bf16.msra.mxu3 %v4331_v24 }
 0xaee   : > { %v3248_v22 = vsub.f32 1.5, %v3247_v2  ;;  %v3123_v15 = vpop.xlane.xlu1 %3122 }
 0xaef   : > { %v3151_v12 = vmul.f32 %v3123_v15, %v7420_v6  ;;  %v4837_v34 = vpop.eup %4836  ;;  %v4330_v15 = vld [vmem:[%s5151_s22 + $0x10] sm:$0xff] }
 0xaf0   : > { %v3249_v33 = vmul.f32 %v4835_v1, %v3248_v22  ;;  %v3255_v0 = vmul.f32 %v4837_v34, %v3166_v51  ;;  %vm3261_vm4 = vweird.f32 %v4837_v34 }
 0xaf1   : > { %v3167_v35 = vadd.f32 1e-05, %v3151_v12  ;;  %vm3262_vm6 = vmor %vm3260_vm5, %vm3261_vm4  ;;  %3906 = vmatpush.bf16.msrb.mxu0 %v4330_v15  ;;  %4343 = vmatpush.bf16.msra.mxu3 %v4330_v15 }
 0xaf2   : > { %v3253_v55 = vsel %vm3252_vm3, %v4835_v1, %v3249_v33  ;;  %v3256_v60 = vmul.f32 %v4837_v34, %v3255_v0 }
 0xaf3   : > { %v3341_v30 = vmul.f32 %v3253_v55, %v6979_v8  ;;  %4838 = vrsqrt.f32 %v3167_v35  ;;  %vm3270_vm8 = vweird.f32 %v3167_v35 }
 0xaf4   : > { %v3257_v4 = vmul.f32 0.5, %v3256_v60 }
 0xaf5   : > { %v3360_v13 = vmul.f32 %v7004_v11, %v3341_v30 }
 0xaf6   : > { %v3126_v21 = vpop.xlane.xlu0 %3125  ;;  %v3258_v46 = vsub.f32 1.5, %v3257_v4 }
 0xaf7   : > { %v3379_v29 = vadd.f32 %v7016_v45, %v3360_v13  ;;  %v3152_v8 = vmul.f32 %v3126_v21, %v7420_v6 }
 0xaf8   : > { %v3259_v31 = vmul.f32 %v4837_v34, %v3258_v46 }
 0xaf9   : > { %v4839_v7 = vpop.eup %4838  ;;  %v3391_v47 = vpack.c.bf16 %v3379_v29, %v3378_v52  ;;  %v7108_v18 = vadd.f32 1e-05, %v3152_v8 }
 0xafa   : > { %v3265_v3 = vmul.f32 %v4839_v7, %v3167_v35  ;;  %v3263_v63 = vsel %vm3262_vm6, %v4837_v34, %v3259_v31  ;;  %vm3271_vm7 = vweird.f32 %v4839_v7 }
 0xafb   : > { %4261 = vmatmul.msk.bf16.gmra.mxu1 %vm701_vm1, %v3391_v47  ;;  %v3342_v51 = vmul.f32 %v3263_v63, %v6990_v49  ;;  %4840 = vrsqrt.f32 %v7108_v18  ;;  %vm3272_vm9 = vmor %vm3270_vm8, %vm3271_vm7  ;;  %v4329_v49 = vld [vmem:[%s5151_s22 + $0x8] sm:$0xff]  ;;  %vm3280_vm11 = vweird.f32 %v7108_v18 }
 0xafc   : > { %v3266_v1 = vmul.f32 %v4839_v7, %v3265_v3  ;;  %3907 = vmatpush.bf16.msrb.mxu0 %v4329_v49  ;;  %4344 = vmatpush.bf16.msra.mxu3 %v4329_v49 }
 0xafd   : > { %v3361_v33 = vmul.f32 %v7004_v11, %v3342_v51 }
 0xafe   : > { %v3267_v37 = vmul.f32 0.5, %v3266_v1  ;;  %v3449_v14 = vpop.f32.mrf.mxu1 }
 0xaff   : > { %v7112_v42 = vadd.f32 %v7106_v39, %v3449_v14  ;;  %v3380_v60 = vadd.f32 %v7016_v45, %v3361_v33 }
 0xb00   : > { %v3268_v2 = vsub.f32 1.5, %v3267_v37  ;;  %3908 = vmatpush.bf16.msrb.mxu0 %v4328_v58  ;;  %4345 = vmatpush.bf16.msra.mxu3 %v4328_v58 }
 0xb01   : > { %v4266_v17 = vmul.f32 -1.702, %v7112_v42  ;;  %v7121_v0 = vpop.eup %4840 }
 0xb02   : > { %v3269_v22 = vmul.f32 %v4839_v7, %v3268_v2  ;;  %v3275_v5 = vmul.f32 %v7121_v0, %v7108_v18  ;;  %vm3281_vm10 = vweird.f32 %v7121_v0 }
 0xb03   : > { %v3521_v48 = vmul.f32 1.442695, %v4266_v17  ;;  %vm7149_vm12 = vmor %vm3280_vm11, %vm3281_vm10 }
 0xb04   : > { %v3273_v12 = vsel %vm3272_vm9, %v4839_v7, %v3269_v22  ;;  %v3276_v52 = vmul.f32 %v7121_v0, %v3275_v5 }
 0xb05   : > { %v3343_v34 = vmul.f32 %v3273_v12, %v7009_v38  ;;  %4842 = vpow2.f32 %v3521_v48 }
 0xb06   : > { %v3451_v27 = vpop.f32.mrf.mxu1  ;;  %v3277_v3 = vmul.f32 0.5, %v3276_v52 }
 0xb07   : > { %v7124_v55 = vadd.f32 %v7106_v39, %v3451_v27  ;;  %v3362_v35 = vmul.f32 %v7004_v11, %v3343_v34 }
 0xb08   : > { %v3278_v2 = vsub.f32 1.5, %v3277_v3 }
 0xb09   : > { %v4267_v30 = vmul.f32 -1.702, %v7124_v55  ;;  %v3381_v38 = vadd.f32 %v7016_v45, %v3362_v35 }
 0xb0a   : > { %v3279_v34 = vmul.f32 %v7121_v0, %v3278_v2 }
 0xb0b   : > { %v4843_v4 = vpop.eup %4842  ;;  %v3523_v13 = vmul.f32 1.442695, %v4267_v30  ;;  %v3392_v21 = vpack.c.bf16 %v3381_v38, %v3380_v60 }
 0xb0c   : > { %v3553_v46 = vadd.f32 1.0, %v4843_v4  ;;  %v3283_v4 = vsel %vm7149_vm12, %v7121_v0, %v3279_v34 }
 0xb0d   : > { %4844 = vpow2.f32 %v3523_v13  ;;  %4262 = vmatmul.msk.bf16.gmra.mxu1 %vm701_vm1, %v3392_v21 }
 0xb0e   : > { %4846 = vrcp.f32 %v3553_v46  ;;  %v3454_v29 = vpop.f32.mrf.mxu1  ;;  %v3580_v13 = vand.u32 2147483648, %v3553_v46  ;;  %vm3574_vm14 = vweird.f32 %v3553_v46  ;;  %v3578_v18 = vand.u32 2147483647, %v3553_v46 }
 0xb0f   : > { %v7136_v7 = vadd.f32 %v7106_v39, %v3454_v29  ;;  %v3129_v8 = vpop.xlane.xlu2 %3128 }
 0xb10   : > { %v3153_v47 = vmul.f32 %v3129_v8, %v7420_v6  ;;  %vm3579_vm4 = vcmp.eq.f32.partialorder %v3578_v18, 8.507059e+37 }
 0xb11   : > { %v4268_v31 = vmul.f32 -1.702, %v7136_v7 }
 0xb12   : > { %v3169_v16 = vadd.f32 1e-05, %v3153_v47 }
 0xb13   : > { %v4845_v1 = vpop.eup %4844  ;;  %v3525_v63 = vmul.f32 1.442695, %v4268_v31 }
 0xb14   : > { %v4847_v37 = vpop.eup %4846  ;;  %v3554_v14 = vadd.f32 1.0, %v4845_v1  ;;  %4848 = vrsqrt.f32 %v3169_v16  ;;  %v3344_v1 = vmul.f32 %v3283_v4, %v7028_v26  ;;  %vm3290_vm3 = vweird.f32 %v3169_v16 }
 0xb15   : > { %v3570_v24 = vmul.f32 %v4847_v37, %v3553_v46  ;;  %4850 = vpow2.f32 %v3525_v63  ;;  %vm3575_vm13 = vweird.f32 %v4847_v37  ;;  %v3581_v63 = vor.u32 1.1754944e-38, %v3580_v13 }
 0xb16   : > { %4852 = vrcp.f32 %v3554_v14  ;;  %v3456_v51 = vpop.f32.mrf.mxu1  ;;  %vm7157_vm15 = vmor %vm3574_vm14, %vm3575_vm13  ;;  %v3593_v8 = vand.u32 2147483647, %v3554_v14  ;;  %v3595_v47 = vand.u32 2147483648, %v3554_v14  ;;  %vm3589_vm5 = vweird.f32 %v3554_v14 }
 0xb17   : > { %v3571_v17 = vsub.f32 1.0, %v3570_v24  ;;  %v7141_v22 = vadd.f32 %v7106_v39, %v3456_v51 }
 0xb18   : > { %vm3594_vm8 = vcmp.eq.f32.partialorder %v3593_v8, 8.507059e+37 }
 0xb19   : > { %v3572_v15 = vmul.f32 %v4847_v37, %v3571_v17  ;;  %v4269_v48 = vmul.f32 -1.702, %v7141_v22  ;;  %v3596_v17 = vor.u32 1.1754944e-38, %v3595_v47 }
 0xb1a   : > { %v4849_v12 = vpop.eup %4848 }
 0xb1b   : > { %v4851_v33 = vpop.eup %4850  ;;  %v3285_v27 = vmul.f32 %v4849_v12, %v3169_v16  ;;  %v3527_v30 = vmul.f32 1.442695, %v4269_v48  ;;  %v3573_v38 = vadd.f32 %v4847_v37, %v3572_v15  ;;  %vm3291_vm0 = vweird.f32 %v4849_v12 }
 0xb1c   : > { %v4853_v49 = vpop.eup %4852  ;;  %v7147_v35 = vadd.f32 1.0, %v4851_v33  ;;  %vm3292_vm6 = vmor %vm3290_vm3, %vm3291_vm0  ;;  %v3363_v16 = vmul.f32 %v7004_v11, %v3344_v1 }
 0xb1d   : > { %v3585_v5 = vmul.f32 %v4853_v49, %v3554_v14  ;;  %v3286_v58 = vmul.f32 %v4849_v12, %v3285_v27  ;;  %v3577_v31 = vsel %vm7157_vm15, %v4847_v37, %v3573_v38  ;;  %vm3590_vm2 = vweird.f32 %v4853_v49 }
 0xb1e   : > { %4854 = vrcp.f32 %v7147_v35  ;;  %v3582_v51 = vsel %vm3579_vm4, %v3581_v63, %v3577_v31  ;;  %vm3591_vm7 = vmor %vm3589_vm5, %vm3590_vm2  ;;  %v3610_v29 = vand.u32 2147483648, %v7147_v35  ;;  %vm3604_vm10 = vweird.f32 %v7147_v35 }
 0xb1f   : > { %v3586_v21 = vsub.f32 1.0, %v3585_v5  ;;  %v3287_v52 = vmul.f32 0.5, %v3286_v58  ;;  %4856 = vpow2.f32 %v3527_v30  ;;  %v3809_v27 = vmul.f32 %v3582_v51, %v7112_v42 }
 0xb20   : > { %v3382_v58 = vadd.f32 %v7016_v45, %v3363_v16  ;;  %v3608_v47 = vand.u32 2147483647, %v7147_v35 }
 0xb21   : > { %v3587_v3 = vmul.f32 %v4853_v49, %v3586_v21  ;;  %v3288_v0 = vsub.f32 1.5, %v3287_v52 }
 0xb22   : > { %vm3609_vm13 = vcmp.eq.f32.partialorder %v3608_v47, 8.507059e+37 }
 0xb23   : > { %v3588_v46 = vadd.f32 %v4853_v49, %v3587_v3  ;;  %v3289_v24 = vmul.f32 %v4849_v12, %v3288_v0 }
 0xb24   : > { %v4855_v2 = vpop.eup %4854 }
 0xb25   : > { %v3592_v15 = vsel %vm3591_vm7, %v4853_v49, %v3588_v46  ;;  %v3600_v37 = vmul.f32 %v4855_v2, %v7147_v35  ;;  %v3293_v48 = vsel %vm3292_vm6, %v4849_v12, %v3289_v24  ;;  %v4857_v34 = vpop.eup %4856  ;;  %vm3605_vm9 = vweird.f32 %v4855_v2 }
 0xb26   : > { %v3597_v33 = vsel %vm3594_vm8, %v3596_v17, %v3592_v15  ;;  %v3345_v26 = vmul.f32 %v3293_v48, %v7045_v10  ;;  %v3556_v30 = vadd.f32 1.0, %v4857_v34  ;;  %vm7180_vm11 = vmor %vm3604_vm10, %vm3605_vm9 }
 0xb27   : > { %v3810_v14 = vmul.f32 %v3597_v33, %v7124_v55  ;;  %v3601_v60 = vsub.f32 1.0, %v3600_v37  ;;  %v3611_v37 = vor.u32 1.1754944e-38, %v3610_v29 }
 0xb28   : > { %v3364_v38 = vmul.f32 %v7004_v11, %v3345_v26  ;;  %4858 = vrcp.f32 %v3556_v30  ;;  %v3625_v1 = vand.u32 2147483648, %v3556_v30  ;;  %v3623_v17 = vand.u32 2147483647, %v3556_v30 }
 0xb29   : > { %v3825_v5 = vpack.c.bf16 %v3810_v14, %v3809_v27  ;;  %v3602_v10 = vmul.f32 %v4855_v2, %v3601_v60  ;;  %vm3619_vm14 = vweird.f32 %v3556_v30 }
 0xb2a   : > { %v3132_v49 = vpop.xlane.xlu1 %3131  ;;  %v3383_v12 = vadd.f32 %v7016_v45, %v3364_v38  ;;  %v3626_v16 = vor.u32 1.1754944e-38, %v3625_v1  ;;  %vm3624_vm0 = vcmp.eq.f32.partialorder %v3623_v17, 8.507059e+37 }
 0xb2b   : > { %v3154_v4 = vmul.f32 %v3132_v49, %v7420_v6  ;;  %3909 = vmatmul.bf16.vlgmr.msrb.gmra.mxu0 %v3825_v5  ;;  %v3603_v55 = vadd.f32 %v4855_v2, %v3602_v10 }
 0xb2c   : > { %v3393_v13 = vpack.c.bf16 %v3383_v12, %v3382_v58 }
 0xb2d   : > { %v3170_v18 = vadd.f32 1e-05, %v3154_v4  ;;  %v3607_v24 = vsel %vm7180_vm11, %v4855_v2, %v3603_v55 }
 0xb2e   : > { %4263 = vmatmul.msk.bf16.gmra.mxu1 %vm701_vm1, %v3393_v13  ;;  %v4859_v42 = vpop.eup %4858  ;;  %v3612_v26 = vsel %vm3609_vm13, %v3611_v37, %v3607_v24 }
 0xb2f   : > { %4860 = vrsqrt.f32 %v3170_v18  ;;  %v3615_v21 = vmul.f32 %v4859_v42, %v3556_v30  ;;  %vm3620_vm12 = vweird.f32 %v4859_v42  ;;  %v3811_v5 = vmul.f32 %v3612_v26, %v7136_v7 }
 0xb30   : > { %v3459_v52 = vpop.f32.mrf.mxu1  ;;  %vm3621_vm15 = vmor %vm3619_vm14, %vm3620_vm12  ;;  %vm3300_vm3 = vweird.f32 %v3170_v18 }
 0xb31   : > { %v7176_v8 = vadd.f32 %v7106_v39, %v3459_v52  ;;  %v3616_v31 = vsub.f32 1.0, %v3615_v21 }
 0xb32   : > { %v3135_v3 = vpop.xlane.xlu0 %3134 }
 0xb33   : > { %v4270_v63 = vmul.f32 -1.702, %v7176_v8  ;;  %v3155_v46 = vmul.f32 %v3135_v3, %v7420_v6  ;;  %v3617_v51 = vmul.f32 %v4859_v42, %v3616_v31 }
 0xb35   : > { %v4861_v15 = vpop.eup %4860  ;;  %v3529_v35 = vmul.f32 1.442695, %v4270_v63  ;;  %v3171_v48 = vadd.f32 1e-05, %v3155_v46  ;;  %v3618_v34 = vadd.f32 %v4859_v42, %v3617_v51 }
 0xb36   : > { %v3295_v33 = vmul.f32 %v4861_v15, %v3170_v18  ;;  %vm3301_vm2 = vweird.f32 %v4861_v15 }
 0xb37   : > { %4862 = vpow2.f32 %v3529_v35  ;;  %v3622_v27 = vsel %vm3621_vm15, %v4859_v42, %v3618_v34  ;;  %vm3302_vm4 = vmor %vm3300_vm3, %vm3301_vm2  ;;  %vm3310_vm6 = vweird.f32 %v3171_v48 }
 0xb38   : > { %v3296_v14 = vmul.f32 %v4861_v15, %v3295_v33  ;;  %4864 = vrsqrt.f32 %v3171_v48  ;;  %v3461_v2 = vpop.f32.mrf.mxu1  ;;  %v3627_v60 = vsel %vm3624_vm0, %v3626_v16, %v3622_v27 }
 0xb39   : > { %v7189_v38 = vadd.f32 %v7106_v39, %v3461_v2  ;;  %v3812_v49 = vmul.f32 %v3627_v60, %v7141_v22 }
 0xb3a   : > { %v3297_v58 = vmul.f32 0.5, %v3296_v14 }
 0xb3b   : > { %v4271_v30 = vmul.f32 -1.702, %v7189_v38  ;;  %v3826_v12 = vpack.c.bf16 %v3812_v49, %v3811_v5 }
 0xb3c   : > { %v3298_v4 = vsub.f32 1.5, %v3297_v58 }
 0xb3d   : > { %v4863_v10 = vpop.eup %4862  ;;  %v3531_v13 = vmul.f32 1.442695, %v4271_v30  ;;  %3914 = vmatmul.bf16.vlgmr.msra.gmra.mxu3 %v3826_v12 }
 0xb3e   : > { %v4865_v42 = vpop.eup %4864  ;;  %v3557_v55 = vadd.f32 1.0, %v4863_v10  ;;  %v3299_v21 = vmul.f32 %v4861_v15, %v3298_v4 }
 0xb3f   : > { %v3305_v52 = vmul.f32 %v4865_v42, %v3171_v48  ;;  %4866 = vpow2.f32 %v3531_v13  ;;  %vm3311_vm5 = vweird.f32 %v4865_v42 }
 0xb40   : > { %4868 = vrcp.f32 %v3557_v55  ;;  %v3303_v7 = vsel %vm3302_vm4, %v4861_v15, %v3299_v21  ;;  %vm3312_vm7 = vmor %vm3310_vm6, %vm3311_vm5  ;;  %v3640_v14 = vand.u32 2147483648, %v3557_v55  ;;  %vm3634_vm9 = vweird.f32 %v3557_v55 }
 0xb41   : > { %v3306_v29 = vmul.f32 %v4865_v42, %v3305_v52  ;;  %v3346_v0 = vmul.f32 %v3303_v7, %v7058_v50 }
 0xb42   : > { %v3641_v12 = vor.u32 1.1754944e-38, %v3640_v14 }
 0xb43   : > { %v3307_v22 = vmul.f32 0.5, %v3306_v29  ;;  %v3365_v15 = vmul.f32 %v7004_v11, %v3346_v0 }
 0xb45   : > { %v4867_v47 = vpop.eup %4866  ;;  %v3308_v31 = vsub.f32 1.5, %v3307_v22  ;;  %v3384_v26 = vadd.f32 %v7016_v45, %v3365_v15 }
 0xb46   : > { %v4869_v3 = vpop.eup %4868  ;;  %v3558_v1 = vadd.f32 1.0, %v4867_v47 }
 0xb47   : > { %v3630_v63 = vmul.f32 %v4869_v3, %v3557_v55  ;;  %v3309_v46 = vmul.f32 %v4865_v42, %v3308_v31  ;;  %vm3635_vm8 = vweird.f32 %v4869_v3 }
 0xb48   : > { %4870 = vrcp.f32 %v3558_v1  ;;  %vm3636_vm10 = vmor %vm3634_vm9, %vm3635_vm8  ;;  %v3655_v5 = vand.u32 2147483648, %v3558_v1  ;;  %v3653_v30 = vand.u32 2147483647, %v3558_v1  ;;  %vm3649_vm13 = vweird.f32 %v3558_v1 }
 0xb49   : > { %v3631_v24 = vsub.f32 1.0, %v3630_v63  ;;  %v3313_v51 = vsel %vm3312_vm7, %v4865_v42, %v3309_v46 }
 0xb4a   : > { %v3347_v18 = vmul.f32 %v3313_v51, %v7066_v36  ;;  %v3141_v17 = vpop.xlane.xlu1 %3140  ;;  %v3638_v36 = vand.u32 2147483647, %v3557_v55  ;;  %v3656_v13 = vor.u32 1.1754944e-38, %v3655_v5  ;;  %vm3654_vm15 = vcmp.eq.f32.partialorder %v3653_v30, 8.507059e+37 }
 0xb4b   : > { %v3632_v37 = vmul.f32 %v4869_v3, %v3631_v24  ;;  %v3157_v35 = vmul.f32 %v3141_v17, %v7420_v6 }
 0xb4c   : > { %v3366_v34 = vmul.f32 %v7004_v11, %v3347_v18  ;;  %vm3639_vm12 = vcmp.eq.f32.partialorder %v3638_v36, 8.507059e+37 }
 0xb4d   : > { %v3173_v50 = vadd.f32 1e-05, %v3157_v35  ;;  %v3633_v16 = vadd.f32 %v4869_v3, %v3632_v37 }
 0xb4e   : > { %v4871_v33 = vpop.eup %4870  ;;  %v3385_v48 = vadd.f32 %v7016_v45, %v3366_v34 }
 0xb4f   : > { %v3645_v27 = vmul.f32 %v4871_v33, %v3558_v1  ;;  %4872 = vrsqrt.f32 %v3173_v50  ;;  %v3637_v49 = vsel %vm3636_vm10, %v4869_v3, %v3633_v16  ;;  %vm3650_vm11 = vweird.f32 %v4871_v33 }
 0xb50   : > { %v3394_v2 = vpack.c.bf16 %v3385_v48, %v3384_v26  ;;  %v3642_v10 = vsel %vm3639_vm12, %v3641_v12, %v3637_v49  ;;  %vm3651_vm14 = vmor %vm3649_vm13, %vm3650_vm11  ;;  %vm3330_vm2 = vweird.f32 %v3173_v50 }
 0xb51   : > { %v3646_v60 = vsub.f32 1.0, %v3645_v27  ;;  %v3813_v52 = vmul.f32 %v3642_v10, %v7176_v8 }
 0xb52   : > { %4264 = vmatmul.msk.bf16.gmra.mxu1 %vm701_vm1, %v3394_v2 }
 0xb53   : > { %v3647_v58 = vmul.f32 %v4871_v33, %v3646_v60 }
 0xb55   : > { %v3648_v4 = vadd.f32 %v4871_v33, %v3647_v58  ;;  %v4873_v55 = vpop.eup %4872 }
 0xb56   : > { %v3325_v7 = vmul.f32 %v4873_v55, %v3173_v50  ;;  %vm3331_vm0 = vweird.f32 %v4873_v55 }
 0xb57   : > { %v3652_v42 = vsel %vm3651_vm14, %v4871_v33, %v3648_v4  ;;  %vm3332_vm3 = vmor %vm3330_vm2, %vm3331_vm0 }
 0xb58   : > { %v3657_v21 = vsel %vm3654_vm15, %v3656_v13, %v3652_v42  ;;  %v3326_v47 = vmul.f32 %v4873_v55, %v3325_v7 }
 0xb59   : > { %v3814_v29 = vmul.f32 %v3657_v21, %v7189_v38 }
 0xb5a   : > { %v3327_v1 = vmul.f32 0.5, %v3326_v47 }
 0xb5b   : > { %v3827_v22 = vpack.c.bf16 %v3814_v29, %v3813_v52 }
 0xb5c   : > { %v3328_v63 = vsub.f32 1.5, %v3327_v1 }
 0xb5d   : > { %3919 = vmatmul.bf16.gmra.mxu3 %v3827_v22 }
 0xb5e   : > { %v3329_v24 = vmul.f32 %v4873_v55, %v3328_v63 }
 0xb5f   : > { %v3138_v31 = vpop.xlane.xlu2 %3137 }
 0xb60   : > { %v3156_v3 = vmul.f32 %v3138_v31, %v7420_v6  ;;  %v3333_v8 = vsel %vm3332_vm3, %v4873_v55, %v3329_v24 }
 0xb61   : > { %v3349_v15 = vmul.f32 %v3333_v8, %v7074_v62 }
 0xb62   : > { %v3172_v0 = vadd.f32 1e-05, %v3156_v3 }
 0xb63   : > { %v3368_v35 = vmul.f32 %v7004_v11, %v3349_v15 }
 0xb64   : > { %4874 = vrsqrt.f32 %v3172_v0  ;;  %vm3320_vm5 = vweird.f32 %v3172_v0 }
 0xb65   : > { %v3387_v48 = vadd.f32 %v7016_v45, %v3368_v35 }
 0xb6a   : > { %v4875_v46 = vpop.eup %4874 }
 0xb6b   : > { %v3315_v51 = vmul.f32 %v4875_v46, %v3172_v0  ;;  %vm3321_vm4 = vweird.f32 %v4875_v46 }
 0xb6c   : > { %vm3322_vm6 = vmor %vm3320_vm5, %vm3321_vm4 }
 0xb6d   : > { %v3316_v18 = vmul.f32 %v4875_v46, %v3315_v51 }
 0xb6f   : > { %v3317_v38 = vmul.f32 0.5, %v3316_v18 }
 0xb71   : > { %v3318_v17 = vsub.f32 1.5, %v3317_v38 }
 0xb73   : > { %v3319_v37 = vmul.f32 %v4875_v46, %v3318_v17 }
 0xb75   : > { %v3323_v6 = vsel %vm3322_vm6, %v4875_v46, %v3319_v37 }
 0xb76   : > { %v3348_v34 = vmul.f32 %v3323_v6, %v7083_v20 }
 0xb78   : > { %v3367_v33 = vmul.f32 %v7004_v11, %v3348_v34  ;;  %v3464_v26 = vpop.f32.mrf.mxu1 }
 0xb79   : > { %v7210_v50 = vadd.f32 %v7106_v39, %v3464_v26 }
 0xb7a   : > { %v3386_v16 = vadd.f32 %v7016_v45, %v3367_v33 }
 0xb7b   : > { %v4272_v62 = vmul.f32 -1.702, %v7210_v50 }
 0xb7c   : > { %v3395_v27 = vpack.c.bf16 %v3387_v48, %v3386_v16 }
 0xb7d   : > { %v3533_v14 = vmul.f32 1.442695, %v4272_v62 }
 0xb7e   : > { %4265 = vmatmul.msk.bf16.vlgmr.msrb.gmra.mxu2 %vm701_vm1, %v3395_v27 }
 0xb7f   : > { %4876 = vpow2.f32 %v3533_v14 }
 0xb80   : > { %v3466_v2 = vpop.f32.mrf.mxu1 }
 0xb81   : > { %v3467_v20 = vadd.f32 %v7106_v39, %v3466_v2 }
 0xb83   : > { %v4273_v36 = vmul.f32 -1.702, %v3467_v20 }
 0xb85   : > { %v4877_v11 = vpop.eup %4876  ;;  %v3535_v60 = vmul.f32 1.442695, %v4273_v36  ;;  %v7231_v36 = vld [vmem:[%s639_s23] ss:$0 sm:$0xff] }
 0xb86   : > { %v3559_v5 = vadd.f32 1.0, %v4877_v11 }
 0xb87   : > { %4878 = vpow2.f32 %v3535_v60 }
 0xb88   : > { %4880 = vrcp.f32 %v3559_v5  ;;  %v3670_v0 = vand.u32 2147483648, %v3559_v5  ;;  %vm3664_vm8 = vweird.f32 %v3559_v5  ;;  %v3668_v63 = vand.u32 2147483647, %v3559_v5 }
 0xb8a   : > { %v3469_v49 = vpop.f32.mrf.mxu1  ;;  %v3671_v38 = vor.u32 1.1754944e-38, %v3670_v0  ;;  %vm3669_vm11 = vcmp.eq.f32.partialorder %v3668_v63, 8.507059e+37 }
 0xb8b   : > { %v7218_v58 = vadd.f32 %v7106_v39, %v3469_v49 }
 0xb8d   : > { %v4879_v45 = vpop.eup %4878  ;;  %v4274_v30 = vmul.f32 -1.702, %v7218_v58 }
 0xb8e   : > { %v4881_v12 = vpop.eup %4880  ;;  %v3560_v4 = vadd.f32 1.0, %v4879_v45 }
 0xb8f   : > { %v3660_v10 = vmul.f32 %v4881_v12, %v3559_v5  ;;  %v3537_v13 = vmul.f32 1.442695, %v4274_v30  ;;  %vm3665_vm7 = vweird.f32 %v4881_v12 }
 0xb90   : > { %4882 = vrcp.f32 %v3560_v4  ;;  %vm3666_vm9 = vmor %vm3664_vm8, %vm3665_vm7  ;;  %v3685_v24 = vand.u32 2147483648, %v3560_v4  ;;  %v3683_v8 = vand.u32 2147483647, %v3560_v4  ;;  %vm3679_vm12 = vweird.f32 %v3560_v4 }
 0xb91   : > { %v3661_v42 = vsub.f32 1.0, %v3660_v10  ;;  %4884 = vpow2.f32 %v3537_v13 }
 0xb92   : > { %v3471_v55 = vpop.f32.mrf.mxu1  ;;  %v3686_v37 = vor.u32 1.1754944e-38, %v3685_v24  ;;  %vm3684_vm14 = vcmp.eq.f32.partialorder %v3683_v8, 8.507059e+37 }
 0xb93   : > { %v3662_v21 = vmul.f32 %v4881_v12, %v3661_v42  ;;  %v7222_v52 = vadd.f32 %v7106_v39, %v3471_v55 }
 0xb95   : > { %v4275_v29 = vmul.f32 -1.702, %v7222_v52  ;;  %v3663_v47 = vadd.f32 %v4881_v12, %v3662_v21 }
 0xb96   : > { %v4883_v7 = vpop.eup %4882 }
 0xb97   : > { %v4885_v22 = vpop.eup %4884  ;;  %v3675_v31 = vmul.f32 %v4883_v7, %v3560_v4  ;;  %v3539_v3 = vmul.f32 1.442695, %v4275_v29  ;;  %v3667_v51 = vsel %vm3666_vm9, %v4881_v12, %v3663_v47  ;;  %vm3680_vm10 = vweird.f32 %v4883_v7 }
 0xb98   : > { %v3561_v1 = vadd.f32 1.0, %v4885_v22  ;;  %v3672_v15 = vsel %vm3669_vm11, %v3671_v38, %v3667_v51  ;;  %vm3681_vm13 = vmor %vm3679_vm12, %vm3680_vm10 }
 0xb99   : > { %v3676_v46 = vsub.f32 1.0, %v3675_v31  ;;  %4886 = vpow2.f32 %v3539_v3  ;;  %v3815_v48 = vmul.f32 %v3672_v15, %v7210_v50 }
 0xb9a   : > { %4888 = vrcp.f32 %v3561_v1  ;;  %vm3694_vm0 = vweird.f32 %v3561_v1  ;;  %v3698_v45 = vand.u32 2147483647, %v3561_v1 }
 0xb9b   : > { %v3677_v18 = vmul.f32 %v4883_v7, %v3676_v46 }
 0xb9c   : > { %vm3699_vm4 = vcmp.eq.f32.partialorder %v3698_v45, 8.507059e+37 }
 0xb9d   : > { %v3678_v17 = vadd.f32 %v4883_v7, %v3677_v18 }
 0xb9f   : > { %v4887_v6 = vpop.eup %4886  ;;  %v3682_v35 = vsel %vm3681_vm13, %v4883_v7, %v3678_v17 }
 0xba0   : > { %v4889_v34 = vpop.eup %4888  ;;  %v3687_v33 = vsel %vm3684_vm14, %v3686_v37, %v3682_v35  ;;  %v3562_v26 = vadd.f32 1.0, %v4887_v6 }
 0xba1   : > { %v3816_v16 = vmul.f32 %v3687_v33, %v3467_v20  ;;  %v3690_v62 = vmul.f32 %v4889_v34, %v3561_v1  ;;  %vm3695_vm15 = vweird.f32 %v4889_v34  ;;  %v3700_v20 = vand.u32 2147483648, %v3561_v1 }
 0xba2   : > { %4890 = vrcp.f32 %v3562_v26  ;;  %vm3696_vm2 = vmor %vm3694_vm0, %vm3695_vm15  ;;  %v3715_v10 = vand.u32 2147483648, %v3562_v26  ;;  %v3713_v21 = vand.u32 2147483647, %v3562_v26  ;;  %vm3709_vm5 = vweird.f32 %v3562_v26 }
 0xba3   : > { %v3691_v27 = vsub.f32 1.0, %v3690_v62  ;;  %v3828_v14 = vpack.c.bf16 %v3816_v16, %v3815_v48  ;;  %v3701_v29 = vor.u32 1.1754944e-38, %v3700_v20 }
 0xba4   : > { %v3716_v47 = vor.u32 1.1754944e-38, %v3715_v10  ;;  %vm3714_vm7 = vcmp.eq.f32.partialorder %v3713_v21, 8.507059e+37 }
 0xba5   : > { %v3692_v2 = vmul.f32 %v4889_v34, %v3691_v27  ;;  %3924 = vmatmul.bf16.gmra.mxu3 %v3828_v14 }
 0xba7   : > { %v3693_v5 = vadd.f32 %v4889_v34, %v3692_v2 }
 0xba8   : > { %v4891_v11 = vpop.eup %4890  ;;  %v3910_v60 = vpop.f32.mrf.mxu0 }
 0xba9   : > { %v3705_v49 = vmul.f32 %v4891_v11, %v3562_v26  ;;  %v3911_v50 = vadd.f32 %v7231_v36, %v3910_v60  ;;  %v3697_v42 = vsel %vm3696_vm2, %v4889_v34, %v3693_v5  ;;  %vm3710_vm3 = vweird.f32 %v4891_v11 }
 0xbaa   : > { %vm3711_vm6 = vmor %vm3709_vm5, %vm3710_vm3 }
 0xbab   : > { %v3706_v30 = vsub.f32 1.0, %v3705_v49  ;;  %v3950_v12 = vadd.f32 %v3911_v50, %v6809_v40  ;;  %v3474_v4 = vpop.f32.mrf.mxu1  ;;  %v3702_v40 = vsel %vm3699_vm4, %v3701_v29, %v3697_v42 }
 0xbac   : > { %v7236_v13 = vadd.f32 %v7106_v39, %v3474_v4  ;;  %v3817_v46 = vmul.f32 %v3702_v40, %v7218_v58 }
 0xbad   : > { %v3707_v55 = vmul.f32 %v4891_v11, %v3706_v30  ;;  %3966 = vst.msk [vmem:[%s5156_s2] sm:$0xff] %vm701_vm1, %v3950_v12 }
 0xbae   : > { %v4276_v7 = vmul.f32 -1.702, %v7236_v13 }
 0xbaf   : > { %v3708_v22 = vadd.f32 %v4891_v11, %v3707_v55 }
 0xbb0   : > { %v3541_v31 = vmul.f32 1.442695, %v4276_v7  ;;  %v3912_v3 = vpop.f32.mrf.mxu0 }
 0xbb1   : > { %v3712_v0 = vsel %vm3711_vm6, %v4891_v11, %v3708_v22  ;;  %v3913_v1 = vadd.f32 %v7231_v36, %v3912_v3 }
 0xbb2   : > { %v3717_v63 = vsel %vm3714_vm7, %v3716_v47, %v3712_v0  ;;  %4892 = vpow2.f32 %v3541_v31 }
 0xbb3   : > { %v3818_v24 = vmul.f32 %v3717_v63, %v7222_v52  ;;  %v3951_v51 = vadd.f32 %v3913_v1, %v6823_v41  ;;  %v3476_v18 = vpop.f32.mrf.mxu1 }
 0xbb4   : > { %v3477_v8 = vadd.f32 %v7106_v39, %v3476_v18 }
 0xbb5   : > { %3967 = vst.msk [vmem:[%s5156_s2 + $0x8] sm:$0xff] %vm701_vm1, %v3951_v51  ;;  %v3829_v38 = vpack.c.bf16 %v3818_v24, %v3817_v46 }
 0xbb6   : > { %v4277_v17 = vmul.f32 -1.702, %v3477_v8 }
 0xbb7   : > { %3929 = vmatmul.bf16.gmra.mxu3 %v3829_v38 }
 0xbb8   : > { %v4893_v15 = vpop.eup %4892  ;;  %v3543_v37 = vmul.f32 1.442695, %v4277_v17 }
 0xbb9   : > { %v3563_v6 = vadd.f32 1.0, %v4893_v15 }
 0xbba   : > { %4894 = vpow2.f32 %v3543_v37 }
 0xbbb   : > { %4896 = vrcp.f32 %v3563_v6  ;;  %v3730_v60 = vand.u32 2147483648, %v3563_v6  ;;  %vm3724_vm9 = vweird.f32 %v3563_v6  ;;  %v3728_v5 = vand.u32 2147483647, %v3563_v6 }
 0xbbd   : > { %v3731_v12 = vor.u32 1.1754944e-38, %v3730_v60  ;;  %vm3729_vm12 = vcmp.eq.f32.partialorder %v3728_v5, 8.507059e+37 }
 0xbc0   : > { %v4895_v35 = vpop.eup %4894  ;;  %v3915_v52 = vpop.f32.mrf.mxu3 }
 0xbc1   : > { %v4897_v58 = vpop.eup %4896  ;;  %v3564_v34 = vadd.f32 1.0, %v4895_v35  ;;  %v3916_v41 = vadd.f32 %v7231_v36, %v3915_v52 }
 0xbc2   : > { %v3720_v33 = vmul.f32 %v4897_v58, %v3563_v6  ;;  %vm3725_vm8 = vweird.f32 %v4897_v58 }
 0xbc3   : > { %4898 = vrcp.f32 %v3564_v34  ;;  %v3952_v48 = vadd.f32 %v3916_v41, %v6830_v61  ;;  %vm3726_vm10 = vmor %vm3724_vm9, %vm3725_vm8  ;;  %v3745_v20 = vand.u32 2147483648, %v3564_v34  ;;  %v3743_v30 = vand.u32 2147483647, %v3564_v34 }
 0xbc4   : > { %v3721_v26 = vsub.f32 1.0, %v3720_v33  ;;  %vm3739_vm13 = vweird.f32 %v3564_v34 }
 0xbc5   : > { %3968 = vst.msk [vmem:[%s5156_s2 + $0x10] sm:$0xff] %vm701_vm1, %v3952_v48  ;;  %v3746_v21 = vor.u32 1.1754944e-38, %v3745_v20  ;;  %vm3744_vm15 = vcmp.eq.f32.partialorder %v3743_v30, 8.507059e+37 }
 0xbc6   : > { %v3722_v16 = vmul.f32 %v4897_v58, %v3721_v26 }
 0xbc8   : > { %v3917_v27 = vpop.f32.mrf.mxu3  ;;  %v3723_v14 = vadd.f32 %v4897_v58, %v3722_v16 }
 0xbc9   : > { %v4899_v62 = vpop.eup %4898  ;;  %v3918_v11 = vadd.f32 %v7231_v36, %v3917_v27 }
 0xbca   : > { %v3735_v2 = vmul.f32 %v4899_v62, %v3564_v34  ;;  %v3727_v61 = vsel %vm3726_vm10, %v4897_v58, %v3723_v14  ;;  %vm3740_vm11 = vweird.f32 %v4899_v62 }
 0xbcb   : > { %v3953_v50 = vadd.f32 %v3918_v11, %v6836_v23  ;;  %v3732_v55 = vsel %vm3729_vm12, %v3731_v12, %v3727_v61  ;;  %vm3741_vm14 = vmor %vm3739_vm13, %vm3740_vm11 }
 0xbcc   : > { %v3736_v49 = vsub.f32 1.0, %v3735_v2  ;;  %v3819_v22 = vmul.f32 %v3732_v55, %v7236_v13 }
 0xbcd   : > { %3969 = vst.msk [vmem:[%s5156_s2 + $0x18] sm:$0xff] %vm701_vm1, %v3953_v50 }
 0xbce   : > { %v3737_v45 = vmul.f32 %v4899_v62, %v3736_v49 }
 0xbcf   : > { %v3479_v4 = vpop.f32.mrf.mxu1 }
 0xbd0   : > { %v3738_v10 = vadd.f32 %v4899_v62, %v3737_v45  ;;  %v3480_v42 = vadd.f32 %v7106_v39, %v3479_v4 }
 0xbd2   : > { %v3742_v29 = vsel %vm3741_vm14, %v4899_v62, %v3738_v10  ;;  %v4278_v23 = vmul.f32 -1.702, %v3480_v42 }
 0xbd3   : > { %v3747_v7 = vsel %vm3744_vm15, %v3746_v21, %v3742_v29 }
 0xbd4   : > { %v3820_v40 = vmul.f32 %v3747_v7, %v3477_v8  ;;  %v3545_v47 = vmul.f32 1.442695, %v4278_v23 }
 0xbd6   : > { %4900 = vpow2.f32 %v3545_v47  ;;  %v3830_v31 = vpack.c.bf16 %v3820_v40, %v3819_v22 }
 0xbd7   : > { %v3481_v3 = vpop.f32.mrf.mxu1 }
 0xbd8   : > { %v3482_v0 = vadd.f32 %v7106_v39, %v3481_v3  ;;  %3934 = vmatmul.bf16.gmra.mxu3 %v3830_v31 }
 0xbda   : > { %v4279_v1 = vmul.f32 -1.702, %v3482_v0 }
 0xbdc   : > { %v4901_v63 = vpop.eup %4900  ;;  %v3547_v46 = vmul.f32 1.442695, %v4279_v1 }
 0xbdd   : > { %v3565_v24 = vadd.f32 1.0, %v4901_v63 }
 0xbde   : > { %4902 = vpow2.f32 %v3547_v46 }
 0xbdf   : > { %4904 = vrcp.f32 %v3565_v24  ;;  %v3760_v41 = vand.u32 2147483648, %v3565_v24  ;;  %vm3754_vm2 = vweird.f32 %v3565_v24  ;;  %v3758_v26 = vand.u32 2147483647, %v3565_v24 }
 0xbe0   : > { %v3920_v51 = vpop.f32.mrf.mxu3 }
 0xbe1   : > { %v3921_v18 = vadd.f32 %v7231_v36, %v3920_v51  ;;  %v3761_v2 = vor.u32 1.1754944e-38, %v3760_v41  ;;  %vm3759_vm5 = vcmp.eq.f32.partialorder %v3758_v26, 8.507059e+37 }
 0xbe3   : > { %v3954_v13 = vadd.f32 %v3921_v18, %v6842_v57 }
 0xbe4   : > { %v4903_v8 = vpop.eup %4902 }
 0xbe5   : > { %v4905_v38 = vpop.eup %4904  ;;  %v3566_v17 = vadd.f32 1.0, %v4903_v8  ;;  %3970 = vst.msk [vmem:[%s5156_s2 + $0x20] sm:$0xff] %vm701_vm1, %v3954_v13 }
 0xbe6   : > { %v3750_v15 = vmul.f32 %v4905_v38, %v3565_v24  ;;  %vm3755_vm0 = vweird.f32 %v4905_v38 }
 0xbe7   : > { %4906 = vrcp.f32 %v3566_v17  ;;  %vm3756_vm3 = vmor %vm3754_vm2, %vm3755_vm0  ;;  %v3775_v16 = vand.u32 2147483648, %v3566_v17  ;;  %v3773_v14 = vand.u32 2147483647, %v3566_v17  ;;  %vm3769_vm6 = vweird.f32 %v3566_v17 }
 0xbe8   : > { %v3751_v37 = vsub.f32 1.0, %v3750_v15  ;;  %v3922_v6 = vpop.f32.mrf.mxu3 }
 0xbe9   : > { %v3923_v35 = vadd.f32 %v7231_v36, %v3922_v6  ;;  %v3776_v60 = vor.u32 1.1754944e-38, %v3775_v16  ;;  %vm3774_vm8 = vcmp.eq.f32.partialorder %v3773_v14, 8.507059e+37 }
 0xbea   : > { %v3752_v58 = vmul.f32 %v4905_v38, %v3751_v37 }
 0xbeb   : > { %v3955_v34 = vadd.f32 %v3923_v35, %v6848_v32 }
 0xbec   : > { %v3753_v33 = vadd.f32 %v4905_v38, %v3752_v58 }
 0xbed   : > { %v4907_v52 = vpop.eup %4906  ;;  %3971 = vst.msk [vmem:[%s5156_s2 + $0x28] sm:$0xff] %vm701_vm1, %v3955_v34 }
 0xbee   : > { %v3765_v57 = vmul.f32 %v4907_v52, %v3566_v17  ;;  %v3757_v62 = vsel %vm3756_vm3, %v4905_v38, %v3753_v33  ;;  %vm3770_vm4 = vweird.f32 %v4907_v52 }
 0xbef   : > { %v3762_v32 = vsel %vm3759_vm5, %v3761_v2, %v3757_v62  ;;  %vm3771_vm7 = vmor %vm3769_vm6, %vm3770_vm4 }
 0xbf0   : > { %v3766_v48 = vsub.f32 1.0, %v3765_v57  ;;  %v3821_v50 = vmul.f32 %v3762_v32, %v3480_v42 }
 0xbf2   : > { %v3767_v27 = vmul.f32 %v4907_v52, %v3766_v48 }
 0xbf4   : > { %v3768_v11 = vadd.f32 %v4907_v52, %v3767_v27 }
 0xbf6   : > { %v3772_v5 = vsel %vm3771_vm7, %v4907_v52, %v3768_v11 }
 0xbf7   : > { %v3777_v49 = vsel %vm3774_vm8, %v3776_v60, %v3772_v5 }
 0xbf8   : > { %v3822_v20 = vmul.f32 %v3777_v49, %v3482_v0 }
 0xbfa   : > { %v3831_v61 = vpack.c.bf16 %v3822_v20, %v3821_v50 }
 0xbfc   : > { %3939 = vmatmul.bf16.gmra.mxu3 %v3831_v61 }
 0xc01   : > { %v3484_v45 = vpop.f32.mrf.mxu2 }
 0xc02   : > { %v3485_v30 = vadd.f32 %v7106_v39, %v3484_v45 }
 0xc04   : > { %v4280_v12 = vmul.f32 -1.702, %v3485_v30 }
 0xc06   : > { %v3549_v4 = vmul.f32 1.442695, %v4280_v12 }
 0xc08   : > { %4908 = vpow2.f32 %v3549_v4 }
 0xc09   : > { %v3486_v10 = vpop.f32.mrf.mxu2 }
 0xc0a   : > { %v3487_v55 = vadd.f32 %v7106_v39, %v3486_v10 }
 0xc0c   : > { %v4281_v21 = vmul.f32 -1.702, %v3487_v55 }
 0xc0e   : > { %v4909_v29 = vpop.eup %4908  ;;  %v3551_v23 = vmul.f32 1.442695, %v4281_v21 }
 0xc0f   : > { %v3567_v7 = vadd.f32 1.0, %v4909_v29 }
 0xc10   : > { %4910 = vpow2.f32 %v3551_v23 }
 0xc11   : > { %4912 = vrcp.f32 %v3567_v7  ;;  %v3790_v46 = vand.u32 2147483648, %v3567_v7  ;;  %vm3784_vm10 = vweird.f32 %v3567_v7  ;;  %v3788_v39 = vand.u32 2147483647, %v3567_v7 }
 0xc13   : > { %v3791_v38 = vor.u32 1.1754944e-38, %v3790_v46  ;;  %vm3789_vm13 = vcmp.eq.f32.partialorder %v3788_v39, 8.507059e+37 }
 0xc16   : > { %v4911_v22 = vpop.eup %4910 }
 0xc17   : > { %v4913_v42 = vpop.eup %4912  ;;  %v3568_v40 = vadd.f32 1.0, %v4911_v22 }
 0xc18   : > { %v3780_v47 = vmul.f32 %v4913_v42, %v3567_v7  ;;  %vm3785_vm9 = vweird.f32 %v4913_v42 }
 0xc19   : > { %4914 = vrcp.f32 %v3568_v40  ;;  %vm3786_vm11 = vmor %vm3784_vm10, %vm3785_vm9  ;;  %v3805_v51 = vand.u32 2147483648, %v3568_v40  ;;  %v3803_v8 = vand.u32 2147483647, %v3568_v40  ;;  %vm3799_vm14 = vweird.f32 %v3568_v40 }
 0xc1a   : > { %v3781_v31 = vsub.f32 1.0, %v3780_v47 }
 0xc1b   : > { %v3806_v37 = vor.u32 1.1754944e-38, %v3805_v51  ;;  %vm3804_vm0 = vcmp.eq.f32.partialorder %v3803_v8, 8.507059e+37 }
 0xc1c   : > { %v3782_v3 = vmul.f32 %v4913_v42, %v3781_v31 }
 0xc1e   : > { %v3783_v1 = vadd.f32 %v4913_v42, %v3782_v3 }
 0xc1f   : > { %v4915_v0 = vpop.eup %4914 }
 0xc20   : > { %v3795_v63 = vmul.f32 %v4915_v0, %v3568_v40  ;;  %v3787_v18 = vsel %vm3786_vm11, %v4913_v42, %v3783_v1  ;;  %vm3800_vm12 = vweird.f32 %v4915_v0 }
 0xc21   : > { %v3792_v15 = vsel %vm3789_vm13, %v3791_v38, %v3787_v18  ;;  %vm3801_vm15 = vmor %vm3799_vm14, %vm3800_vm12 }
 0xc22   : > { %v3796_v24 = vsub.f32 1.0, %v3795_v63  ;;  %v3823_v52 = vmul.f32 %v3792_v15, %v3485_v30 }
 0xc24   : > { %v3797_v13 = vmul.f32 %v4915_v0, %v3796_v24 }
 0xc26   : > { %v3798_v17 = vadd.f32 %v4915_v0, %v3797_v13 }
 0xc28   : > { %v3802_v6 = vsel %vm3801_vm15, %v4915_v0, %v3798_v17  ;;  %v3925_v35 = vpop.f32.mrf.mxu3 }
 0xc29   : > { %v3807_v58 = vsel %vm3804_vm0, %v3806_v37, %v3802_v6  ;;  %v3926_v34 = vadd.f32 %v7231_v36, %v3925_v35 }
 0xc2a   : > { %v3824_v33 = vmul.f32 %v3807_v58, %v3487_v55 }
 0xc2b   : > { %v3956_v57 = vadd.f32 %v3926_v34, %v6854_v19 }
 0xc2c   : > { %v3832_v41 = vpack.c.bf16 %v3824_v33, %v3823_v52 }
 0xc2d   : > { %3972 = vst.msk [vmem:[%s5156_s2 + $0x30] sm:$0xff] %vm701_vm1, %v3956_v57 }
 0xc2e   : > { %3944 = vmatmul.bf16.gmra.mxu3 %v3832_v41 }
 0xc30   : > { %v3927_v26 = vpop.f32.mrf.mxu3 }
 0xc31   : > { %v3928_v48 = vadd.f32 %v7231_v36, %v3927_v26 }
 0xc33   : > { %v3957_v16 = vadd.f32 %v3928_v48, %v6886_v9 }
 0xc35   : > { %3973 = vst.msk [vmem:[%s5156_s2 + $0x38] sm:$0xff] %vm701_vm1, %v3957_v16 }
 0xc3a   : > { %v3930_v62 = vpop.f32.mrf.mxu3 }
 0xc3b   : > { %v3931_v27 = vadd.f32 %v7231_v36, %v3930_v62 }
 0xc3d   : > { %v3958_v14 = vadd.f32 %v3931_v27, %v6898_v28 }
 0xc3f   : > { %3974 = vst.msk [vmem:[%s5156_s2 + $0x40] sm:$0xff] %vm701_vm1, %v3958_v14 }
 0xc42   : > { %v3932_v19 = vpop.f32.mrf.mxu3 }
 0xc43   : > { %v3933_v2 = vadd.f32 %v7231_v36, %v3932_v19 }
 0xc45   : > { %v3959_v11 = vadd.f32 %v3933_v2, %v6915_v43 }
 0xc47   : > { %3975 = vst.msk [vmem:[%s5156_s2 + $0x48] sm:$0xff] %vm701_vm1, %v3959_v11 }
 0xc5b   : > { %v3935_v9 = vpop.f32.mrf.mxu3 }
 0xc5c   : > { %v3936_v32 = vadd.f32 %v7231_v36, %v3935_v9 }
 0xc5e   : > { %v3960_v60 = vadd.f32 %v3936_v32, %v6924_v56 }
 0xc60   : > { %3976 = vst.msk [vmem:[%s5156_s2 + $0x50] sm:$0xff] %vm701_vm1, %v3960_v60 }
 0xc63   : > { %v3937_v28 = vpop.f32.mrf.mxu3 }
 0xc64   : > { %v3938_v5 = vadd.f32 %v7231_v36, %v3937_v28 }
 0xc66   : > { %v3961_v49 = vadd.f32 %v3938_v5, %v6938_v53 }
 0xc68   : > { %3977 = vst.msk [vmem:[%s5156_s2 + $0x58] sm:$0xff] %vm701_vm1, %v3961_v49 }
 0xc7f   : > { %v3940_v43 = vpop.f32.mrf.mxu3 }
 0xc80   : > { %v3941_v50 = vadd.f32 %v7231_v36, %v3940_v43 }
 0xc82   : > { %v3962_v20 = vadd.f32 %v3941_v50, %v6957_v25 }
 0xc84   : > { %3978 = vst.msk [vmem:[%s5156_s2 + $0x60] sm:$0xff] %vm701_vm1, %v3962_v20 }
 0xc87   : > { %v3942_v61 = vpop.f32.mrf.mxu3 }
 0xc88   : > { %v3943_v56 = vadd.f32 %v7231_v36, %v3942_v61 }
 0xc8a   : > { %v3963_v45 = vadd.f32 %v3943_v56, %v6963_v54 }
 0xc8c   : > { %3979 = vst.msk [vmem:[%s5156_s2 + $0x68] sm:$0xff] %vm701_vm1, %v3963_v45 }
 0xcb1   : > { %v3945_v30 = vpop.f32.mrf.mxu3 }
 0xcb2   : > { %v3946_v53 = vadd.f32 %v7231_v36, %v3945_v30 }
 0xcb4   : > { %v3964_v12 = vadd.f32 %v3946_v53, %v6987_v59 }
 0xcb6   : > { %3980 = vst.msk [vmem:[%s5156_s2 + $0x70] sm:$0xff] %vm701_vm1, %v3964_v12 }
 0xcb9   : > { %v3947_v4 = vpop.f32.mrf.mxu3 }
 0xcba   : > { %v3948_v10 = vadd.f32 %v7231_v36, %v3947_v4 }
 0xcbc   : > { %v3965_v25 = vadd.f32 %v3948_v10, %v6969_v44 }
 0xcbe   : > { %3981 = vst.msk [vmem:[%s5156_s2 + $0x78] sm:$0xff] %vm701_vm1, %v3965_v25 }
 0xcbf PF: > { %s7428_s15 = sld [smem:[#allocation5_spill]] }
 0xcc0   : > { %s7429_s25 = sld [smem:[#allocation3_spill]] }
 0xcc1   : > { %s7430_s26 = sld [smem:[#allocation4_spill]] }
 0xcc2   : > { %s7431_s27 = sld [smem:[#allocation6_spill]] }
 0xcc3   : > { %s7432_s28 = sld [smem:[#allocation7_spill]] }
 0xcc5   : > { %s23_s29 = sadd.s32 1, %s7428_s15  }
 0xcc6   : > { %p20_p8 = scmp.ge.s32.totalorder %s23_s29, 6  }
 0xcc8   :  { %22 = sbr.rel (!%p20_p8) target bundleno = 5 (0x5), region = 142 }

</bundles_post_ra>
